<compile_context>
chip_gen: v5e
topology: v5e:2x2
jax: 0.10.0
libtpu: 0.0.40
codegen_flags: <defaults>
</compile_context>

<pallas_src>
import math
import jax
import jax.numpy as jnp
from jax.experimental import pallas as pl
from jax.experimental.pallas import tpu as pltpu

# ----------------------- small CCT configuration -----------------------
B           = 2                      # batch
C_IN        = 4                      # n_input_channels
IMG         = 16                     # img_size
EMBED       = 32                     # embedding_dim
KSIZE, STRIDE, PAD      = 7, 2, 3    # tokenizer conv
POOL_K, POOL_S, POOL_P  = 3, 2, 1    # tokenizer max-pool
NUM_HEADS   = 4
HEAD_DIM    = EMBED // NUM_HEADS
FF          = int(EMBED * 4.0)       # mlp_ratio = 4.0
NUM_LAYERS  = 2
NUM_CLASSES = 16
LN_EPS      = 1e-5

CONV_H = (IMG + 2 * PAD - KSIZE) // STRIDE + 1
CONV_W = CONV_H
POOL_H = (CONV_H + 2 * POOL_P - POOL_K) // POOL_S + 1
POOL_W = POOL_H
SEQ    = POOL_H * POOL_W             # tokenizer.sequence_length()

K_RAW  = C_IN * KSIZE * KSIZE        # im2col contraction dim (196)
K_PAD  = 256                         # padded to a lane-aligned multiple of 128


# ----------------------- in-kernel math helpers -----------------------
def _layer_norm(v, g, b):
    mu = jnp.mean(v, axis=-1, keepdims=True)
    d = v - mu
    var = jnp.mean(d * d, axis=-1, keepdims=True)
    return d * jax.lax.rsqrt(var + LN_EPS) * g + b


def _erf_f32(x):
    # TODO(synk): lax.erf has no guaranteed Mosaic lowering; use the
    # Abramowitz & Stegun 7.1.26 rational approximation (|abs err| < 1.5e-7)
    # so GELU matches torch F.gelu (exact erf form) at f32 precision.
    a1, a2, a3, a4, a5 = 0.254829592, -0.284496736, 1.421413741, -1.453152027, 1.061405429
    p = 0.3275911
    z = jnp.abs(x)
    t = 1.0 / (1.0 + p * z)
    poly = ((((a5 * t + a4) * t + a3) * t + a2) * t + a1) * t
    y = 1.0 - poly * jnp.exp(-z * z)
    return jnp.where(x >= 0, y, -y)


def _gelu_exact(x):
    return 0.5 * x * (1.0 + _erf_f32(x * (1.0 / math.sqrt(2.0))))


# ----------------------- the single fused Pallas kernel -----------------------
def _cct_fused_kernel(
        patches_ref, convw_ref, pos_ref,
        ln0g_ref, ln0b_ref, wq_ref, wk_ref, wv_ref, wo_ref, bo_ref,
        ln1g_ref, ln1b_ref, w1_ref, b1_ref, w2_ref, b2_ref,
        lnfg_ref, lnfb_ref, wpool_ref, bpool_ref, wfc_ref, bfc_ref,
        out_ref):
    f32 = jnp.float32

    # ---------- Tokenizer: conv (im2col matmul, lane-aligned K) + ReLU ----------
    conv = jnp.maximum(
        jnp.dot(patches_ref[...], convw_ref[...], preferred_element_type=f32), 0.0)
    conv4 = conv.reshape(B, CONV_H, CONV_W, EMBED)          # layout-preserving reshape

    # ---------- MaxPool2d(k=3, s=2, p=1), fused in-kernel (separable max) ----------
    toks = []
    for pi in range(POOL_H):
        hh0 = max(pi * POOL_S - POOL_P, 0)
        hh1 = min(pi * POOL_S - POOL_P + POOL_K, CONV_H)
        hrow = jnp.max(conv4[:, hh0:hh1, :, :], axis=1)      # (B, CONV_W, EMBED)
        for pj in range(POOL_W):
            ww0 = max(pj * POOL_S - POOL_P, 0)
            ww1 = min(pj * POOL_S - POOL_P + POOL_K, CONV_W)
            toks.append(jnp.max(hrow[:, ww0:ww1, :], axis=1))  # (B, EMBED)
    tokens = jnp.stack(toks, axis=1)                         # (B, SEQ, EMBED)

    # ---------- learnable positional embedding (dropout p=0 -> identity) ----------
    x = (tokens + pos_ref[...]).reshape(B * SEQ, EMBED)      # (B*N, C)

    # ---------- transformer encoder layers (pre-norm attention + MLP) ----------
    scale = 1.0 / math.sqrt(HEAD_DIM)
    dn_b = (((2,), (1,)), ((0,), (0,)))                      # batched over heads
    for l in range(NUM_LAYERS):
        # --- attention branch: src + Attn(pre_norm(src)) ---
        h = _layer_norm(x, ln0g_ref[l], ln0b_ref[l])         # (B*N, C)
        hx = jnp.broadcast_to(h[None], (NUM_HEADS, B * SEQ, EMBED))
        q = jax.lax.dot_general(hx, wq_ref[l], dn_b, preferred_element_type=f32)
        k = jax.lax.dot_general(hx, wk_ref[l], dn_b, preferred_element_type=f32)
        v = jax.lax.dot_general(hx, wv_ref[l], dn_b, preferred_element_type=f32)
        # (H, B*N, Dh) -> (H*B, N, Dh): head-and-batch become one batch axis.
        q = q.reshape(NUM_HEADS * B, SEQ, HEAD_DIM)
        k = k.reshape(NUM_HEADS * B, SEQ, HEAD_DIM)
        v = v.reshape(NUM_HEADS * B, SEQ, HEAD_DIM)
        s = jnp.einsum('gnd,gmd->gnm', q, k, preferred_element_type=f32) * scale
        s = s - jnp.max(s, axis=-1, keepdims=True)
        p = jnp.exp(s)
        p = p * pl.reciprocal(jnp.sum(p, axis=-1, keepdims=True), approx=True)
        ctx = jnp.einsum('gnm,gmd->gnd', p, v, preferred_element_type=f32)
        ctx = ctx.reshape(NUM_HEADS, B * SEQ, HEAD_DIM)
        proj = jax.lax.dot_general(ctx, wo_ref[l], dn_b, preferred_element_type=f32)
        attn = jnp.sum(proj, axis=0) + bo_ref[l]             # merge heads by summation
        x = x + attn

        # --- MLP branch: src = norm1(src); src = src + MLP(src) ---
        x = _layer_norm(x, ln1g_ref[l], ln1b_ref[l])
        h1 = jnp.dot(x, w1_ref[l], preferred_element_type=f32) + b1_ref[l]
        h1 = _gelu_exact(h1)
        h2 = jnp.dot(h1, w2_ref[l], preferred_element_type=f32) + b2_ref[l]
        x = x + h2

    # ---------- head: final LayerNorm -> seq-pool (softmax over sequence) -> fc ----------
    xl = _layer_norm(x, lnfg_ref[...], lnfb_ref[...])        # (B*N, C)
    x3 = xl.reshape(B, SEQ, EMBED)
    a = jnp.sum(x3 * wpool_ref[...], axis=-1, keepdims=True) + bpool_ref[...]  # (B, N, 1)
    a = a - jnp.max(a, axis=1, keepdims=True)
    e = jnp.exp(a)
    w = e * pl.reciprocal(jnp.sum(e, axis=1, keepdims=True), approx=True)
    pooled = jnp.sum(w * x3, axis=1)                         # (B, C)
    out_ref[...] = (jnp.dot(pooled, wfc_ref[...], preferred_element_type=f32)
                    + bfc_ref[...])                          # (B, NUM_CLASSES)


# ----------------------- JAX glue: im2col (data layout only) -----------------------
def _im2col_padded(x_nchw):
    # TODO(synk): the patch gather stays as one-shot XLA layout glue (strided
    # slices over a ~100 KB tensor); doing it in-kernel would need lane-dim
    # gathers on a 4-channel image with no measurable upside at this size.
    xp = jnp.pad(x_nchw, ((0, 0), (0, 0), (PAD, PAD), (PAD, PAD)))
    cols = []
    for di in range(KSIZE):
        for dj in range(KSIZE):
            cols.append(xp[:, :, di:di + CONV_H * STRIDE:STRIDE,
                               dj:dj + CONV_W * STRIDE:STRIDE])   # (B, Cin, Ho, Wo)
    patches = jnp.stack(cols, axis=-1)                            # (B, Cin, Ho, Wo, k*k)
    patches = patches.transpose(0, 2, 3, 1, 4)                    # (B, Ho, Wo, Cin, k*k)
    patches = patches.reshape(B * CONV_H * CONV_W, K_RAW)
    return jnp.pad(patches, ((0, 0), (0, K_PAD - K_RAW)))         # lane-align K: 196 -> 256


_PARAM_ORDER = ("conv_w_t", "pos_emb",
                "ln0_g", "ln0_b", "wq", "wk", "wv", "wo", "bo",
                "ln1_g", "ln1_b", "w1", "b1", "w2", "b2",
                "lnf_g", "lnf_b", "wpool", "bpool", "wfc_t", "bfc")


def cct_forward(x_nchw, params):
    patches = _im2col_padded(x_nchw)
    args = [patches] + [params[k] for k in _PARAM_ORDER]
    return pl.pallas_call(
        _cct_fused_kernel,
        out_shape=jax.ShapeDtypeStruct((B, NUM_CLASSES), jnp.float32),
    )(*args)


# ----------------------- deterministic parameter init -----------------------
def init_params(key):
    keys = iter(jax.random.split(key, 64))

    def nrm(shape, std):
        return (std * jax.random.normal(next(keys), shape)).astype(jnp.float32)

    def stack(fn):
        return jnp.stack([fn() for _ in range(NUM_LAYERS)], axis=0)

    conv_w = nrm((EMBED, C_IN, KSIZE, KSIZE), 0.05)          # PyTorch (Cout,Cin,kh,kw), bias=False
    conv_w_t = jnp.pad(conv_w.reshape(EMBED, K_RAW).T,       # (Cin*k*k, Cout)
                       ((0, K_PAD - K_RAW), (0, 0)))

    params = {
        "conv_w_t": conv_w_t,                                 # (K_PAD, EMBED)
        "pos_emb": nrm((SEQ, EMBED), 0.2),                    # learnable positional embedding
        # per-layer weights stacked on a leading NUM_LAYERS axis (indexed in-kernel)
        "ln0_g": jnp.ones((NUM_LAYERS, 1, EMBED), jnp.float32),   # pre_norm gamma
        "ln0_b": jnp.zeros((NUM_LAYERS, 1, EMBED), jnp.float32),  # pre_norm beta
        "wq": stack(lambda: nrm((NUM_HEADS, EMBED, HEAD_DIM), 0.02)),   # qkv Linear, bias=False
        "wk": stack(lambda: nrm((NUM_HEADS, EMBED, HEAD_DIM), 0.02)),
        "wv": stack(lambda: nrm((NUM_HEADS, EMBED, HEAD_DIM), 0.02)),
        "wo": stack(lambda: nrm((NUM_HEADS, HEAD_DIM, EMBED), 0.02)),   # proj weight, per-head
        "bo": jnp.zeros((NUM_LAYERS, 1, EMBED), jnp.float32),           # proj bias
        "ln1_g": jnp.ones((NUM_LAYERS, 1, EMBED), jnp.float32),
        "ln1_b": jnp.zeros((NUM_LAYERS, 1, EMBED), jnp.float32),
        "w1": stack(lambda: nrm((EMBED, FF), 0.02)),
        "b1": jnp.zeros((NUM_LAYERS, 1, FF), jnp.float32),
        "w2": stack(lambda: nrm((FF, EMBED), 0.02)),
        "b2": jnp.zeros((NUM_LAYERS, 1, EMBED), jnp.float32),
        # classifier head
        "lnf_g": jnp.ones((1, EMBED), jnp.float32),
        "lnf_b": jnp.zeros((1, EMBED), jnp.float32),
        "wpool": nrm((1, 1, EMBED), 0.02),                    # attention_pool Linear(C, 1) weight
        "bpool": jnp.zeros((1, 1, 1), jnp.float32),           # (constant shift; cancels in softmax)
        "wfc_t": nrm((NUM_CLASSES, EMBED), 0.02).T,           # fc weight, transposed (C, classes)
        "bfc": jnp.zeros((1, NUM_CLASSES), jnp.float32),
    }
    return params


if __name__ == "__main__":
    key = jax.random.PRNGKey(0)
    kx, kp = jax.random.split(key)
    x = jax.random.normal(kx, (B, C_IN, IMG, IMG), dtype=jnp.float32)   # NCHW like PyTorch
    params = init_params(kp)

    logits = jax.jit(cct_forward)(x, params)
    jax.block_until_ready(logits)

    assert logits.shape == (B, NUM_CLASSES), logits.shape
    assert bool(jnp.all(jnp.isfinite(logits)))
    print("KERNEL_OK")
</pallas_src>

<mosaic_0001>
module attributes {stable_mosaic.version = 11 : i64} {
  func.func @_cct_fused_kernel(%arg0: memref<128x256xf32, #tpu.memory_space<vmem>>, %arg1: memref<256x32xf32, #tpu.memory_space<vmem>>, %arg2: memref<16x32xf32, #tpu.memory_space<vmem>>, %arg3: memref<2x1x32xf32, #tpu.memory_space<vmem>>, %arg4: memref<2x1x32xf32, #tpu.memory_space<vmem>>, %arg5: memref<2x4x32x8xf32, #tpu.memory_space<vmem>>, %arg6: memref<2x4x32x8xf32, #tpu.memory_space<vmem>>, %arg7: memref<2x4x32x8xf32, #tpu.memory_space<vmem>>, %arg8: memref<2x4x8x32xf32, #tpu.memory_space<vmem>>, %arg9: memref<2x1x32xf32, #tpu.memory_space<vmem>>, %arg10: memref<2x1x32xf32, #tpu.memory_space<vmem>>, %arg11: memref<2x1x32xf32, #tpu.memory_space<vmem>>, %arg12: memref<2x32x128xf32, #tpu.memory_space<vmem>>, %arg13: memref<2x1x128xf32, #tpu.memory_space<vmem>>, %arg14: memref<2x128x32xf32, #tpu.memory_space<vmem>>, %arg15: memref<2x1x32xf32, #tpu.memory_space<vmem>>, %arg16: memref<1x32xf32, #tpu.memory_space<vmem>>, %arg17: memref<1x32xf32, #tpu.memory_space<vmem>>, %arg18: memref<1x1x32xf32, #tpu.memory_space<vmem>>, %arg19: memref<1x1x1xf32, #tpu.memory_space<vmem>>, %arg20: memref<32x16xf32, #tpu.memory_space<vmem>>, %arg21: memref<1x16xf32, #tpu.memory_space<vmem>>, %arg22: memref<2x16xf32, #tpu.memory_space<vmem>>) attributes {dimension_semantics = [], scalar_prefetch = 0 : i64, scratch_operands = 0 : i64, tpu.core_type = #tpu.core_type<tc>} {
    %c0 = arith.constant 0 : index
    %c0_0 = arith.constant 0 : index
    %0 = vector.load %arg0[%c0, %c0_0] : memref<128x256xf32, #tpu.memory_space<vmem>>, vector<128x256xf32>
    %c0_1 = arith.constant 0 : index
    %c0_2 = arith.constant 0 : index
    %1 = vector.load %arg1[%c0_1, %c0_2] : memref<256x32xf32, #tpu.memory_space<vmem>>, vector<256x32xf32>
    %cst = arith.constant dense<0.000000e+00> : vector<128x32xf32>
    %2 = tpu.matmul %0, %1, %cst {dimension_numbers = #tpu.dot_dimension_numbers<[1], [0], [0], [1], [0, 0, 1, 1], [], []>} : vector<128x256xf32>, vector<256x32xf32>, vector<128x32xf32> -> vector<128x32xf32>
    %cst_3 = arith.constant 0.000000e+00 : f32
    %3 = vector.broadcast %cst_3 : f32 to vector<128x32xf32>
    %4 = arith.maximumf %2, %3 : vector<128x32xf32>
    %5 = vector.shape_cast %4 : vector<128x32xf32> to vector<2x8x8x32xf32>
    %6 = vector.extract_strided_slice %5 {offsets = [0, 0, 0, 0], sizes = [2, 2, 8, 32], strides = [1, 1, 1, 1]} : vector<2x8x8x32xf32> to vector<2x2x8x32xf32>
    %cst_4 = arith.constant dense<0xFF800000> : vector<2x8x32xf32>
    %7 = vector.multi_reduction <maximumf>, %6, %cst_4 [1] : vector<2x2x8x32xf32> to vector<2x8x32xf32>
    %8 = vector.extract_strided_slice %7 {offsets = [0, 0, 0], sizes = [2, 2, 32], strides = [1, 1, 1]} : vector<2x8x32xf32> to vector<2x2x32xf32>
    %cst_5 = arith.constant dense<0xFF800000> : vector<2x32xf32>
    %9 = vector.multi_reduction <maximumf>, %8, %cst_5 [1] : vector<2x2x32xf32> to vector<2x32xf32>
    %10 = vector.extract_strided_slice %7 {offsets = [0, 1, 0], sizes = [2, 3, 32], strides = [1, 1, 1]} : vector<2x8x32xf32> to vector<2x3x32xf32>
    %cst_6 = arith.constant dense<0xFF800000> : vector<2x32xf32>
    %11 = vector.multi_reduction <maximumf>, %10, %cst_6 [1] : vector<2x3x32xf32> to vector<2x32xf32>
    %12 = vector.extract_strided_slice %7 {offsets = [0, 3, 0], sizes = [2, 3, 32], strides = [1, 1, 1]} : vector<2x8x32xf32> to vector<2x3x32xf32>
    %cst_7 = arith.constant dense<0xFF800000> : vector<2x32xf32>
    %13 = vector.multi_reduction <maximumf>, %12, %cst_7 [1] : vector<2x3x32xf32> to vector<2x32xf32>
    %14 = vector.extract_strided_slice %7 {offsets = [0, 5, 0], sizes = [2, 3, 32], strides = [1, 1, 1]} : vector<2x8x32xf32> to vector<2x3x32xf32>
    %cst_8 = arith.constant dense<0xFF800000> : vector<2x32xf32>
    %15 = vector.multi_reduction <maximumf>, %14, %cst_8 [1] : vector<2x3x32xf32> to vector<2x32xf32>
    %16 = vector.extract_strided_slice %5 {offsets = [0, 1, 0, 0], sizes = [2, 3, 8, 32], strides = [1, 1, 1, 1]} : vector<2x8x8x32xf32> to vector<2x3x8x32xf32>
    %cst_9 = arith.constant dense<0xFF800000> : vector<2x8x32xf32>
    %17 = vector.multi_reduction <maximumf>, %16, %cst_9 [1] : vector<2x3x8x32xf32> to vector<2x8x32xf32>
    %18 = vector.extract_strided_slice %17 {offsets = [0, 0, 0], sizes = [2, 2, 32], strides = [1, 1, 1]} : vector<2x8x32xf32> to vector<2x2x32xf32>
    %cst_10 = arith.constant dense<0xFF800000> : vector<2x32xf32>
    %19 = vector.multi_reduction <maximumf>, %18, %cst_10 [1] : vector<2x2x32xf32> to vector<2x32xf32>
    %20 = vector.extract_strided_slice %17 {offsets = [0, 1, 0], sizes = [2, 3, 32], strides = [1, 1, 1]} : vector<2x8x32xf32> to vector<2x3x32xf32>
    %cst_11 = arith.constant dense<0xFF800000> : vector<2x32xf32>
    %21 = vector.multi_reduction <maximumf>, %20, %cst_11 [1] : vector<2x3x32xf32> to vector<2x32xf32>
    %22 = vector.extract_strided_slice %17 {offsets = [0, 3, 0], sizes = [2, 3, 32], strides = [1, 1, 1]} : vector<2x8x32xf32> to vector<2x3x32xf32>
    %cst_12 = arith.constant dense<0xFF800000> : vector<2x32xf32>
    %23 = vector.multi_reduction <maximumf>, %22, %cst_12 [1] : vector<2x3x32xf32> to vector<2x32xf32>
    %24 = vector.extract_strided_slice %17 {offsets = [0, 5, 0], sizes = [2, 3, 32], strides = [1, 1, 1]} : vector<2x8x32xf32> to vector<2x3x32xf32>
    %cst_13 = arith.constant dense<0xFF800000> : vector<2x32xf32>
    %25 = vector.multi_reduction <maximumf>, %24, %cst_13 [1] : vector<2x3x32xf32> to vector<2x32xf32>
    %26 = vector.extract_strided_slice %5 {offsets = [0, 3, 0, 0], sizes = [2, 3, 8, 32], strides = [1, 1, 1, 1]} : vector<2x8x8x32xf32> to vector<2x3x8x32xf32>
    %cst_14 = arith.constant dense<0xFF800000> : vector<2x8x32xf32>
    %27 = vector.multi_reduction <maximumf>, %26, %cst_14 [1] : vector<2x3x8x32xf32> to vector<2x8x32xf32>
    %28 = vector.extract_strided_slice %27 {offsets = [0, 0, 0], sizes = [2, 2, 32], strides = [1, 1, 1]} : vector<2x8x32xf32> to vector<2x2x32xf32>
    %cst_15 = arith.constant dense<0xFF800000> : vector<2x32xf32>
    %29 = vector.multi_reduction <maximumf>, %28, %cst_15 [1] : vector<2x2x32xf32> to vector<2x32xf32>
    %30 = vector.extract_strided_slice %27 {offsets = [0, 1, 0], sizes = [2, 3, 32], strides = [1, 1, 1]} : vector<2x8x32xf32> to vector<2x3x32xf32>
    %cst_16 = arith.constant dense<0xFF800000> : vector<2x32xf32>
    %31 = vector.multi_reduction <maximumf>, %30, %cst_16 [1] : vector<2x3x32xf32> to vector<2x32xf32>
    %32 = vector.extract_strided_slice %27 {offsets = [0, 3, 0], sizes = [2, 3, 32], strides = [1, 1, 1]} : vector<2x8x32xf32> to vector<2x3x32xf32>
    %cst_17 = arith.constant dense<0xFF800000> : vector<2x32xf32>
    %33 = vector.multi_reduction <maximumf>, %32, %cst_17 [1] : vector<2x3x32xf32> to vector<2x32xf32>
    %34 = vector.extract_strided_slice %27 {offsets = [0, 5, 0], sizes = [2, 3, 32], strides = [1, 1, 1]} : vector<2x8x32xf32> to vector<2x3x32xf32>
    %cst_18 = arith.constant dense<0xFF800000> : vector<2x32xf32>
    %35 = vector.multi_reduction <maximumf>, %34, %cst_18 [1] : vector<2x3x32xf32> to vector<2x32xf32>
    %36 = vector.extract_strided_slice %5 {offsets = [0, 5, 0, 0], sizes = [2, 3, 8, 32], strides = [1, 1, 1, 1]} : vector<2x8x8x32xf32> to vector<2x3x8x32xf32>
    %cst_19 = arith.constant dense<0xFF800000> : vector<2x8x32xf32>
    %37 = vector.multi_reduction <maximumf>, %36, %cst_19 [1] : vector<2x3x8x32xf32> to vector<2x8x32xf32>
    %38 = vector.extract_strided_slice %37 {offsets = [0, 0, 0], sizes = [2, 2, 32], strides = [1, 1, 1]} : vector<2x8x32xf32> to vector<2x2x32xf32>
    %cst_20 = arith.constant dense<0xFF800000> : vector<2x32xf32>
    %39 = vector.multi_reduction <maximumf>, %38, %cst_20 [1] : vector<2x2x32xf32> to vector<2x32xf32>
    %40 = vector.extract_strided_slice %37 {offsets = [0, 1, 0], sizes = [2, 3, 32], strides = [1, 1, 1]} : vector<2x8x32xf32> to vector<2x3x32xf32>
    %cst_21 = arith.constant dense<0xFF800000> : vector<2x32xf32>
    %41 = vector.multi_reduction <maximumf>, %40, %cst_21 [1] : vector<2x3x32xf32> to vector<2x32xf32>
    %42 = vector.extract_strided_slice %37 {offsets = [0, 3, 0], sizes = [2, 3, 32], strides = [1, 1, 1]} : vector<2x8x32xf32> to vector<2x3x32xf32>
    %cst_22 = arith.constant dense<0xFF800000> : vector<2x32xf32>
    %43 = vector.multi_reduction <maximumf>, %42, %cst_22 [1] : vector<2x3x32xf32> to vector<2x32xf32>
    %44 = vector.extract_strided_slice %37 {offsets = [0, 5, 0], sizes = [2, 3, 32], strides = [1, 1, 1]} : vector<2x8x32xf32> to vector<2x3x32xf32>
    %cst_23 = arith.constant dense<0xFF800000> : vector<2x32xf32>
    %45 = vector.multi_reduction <maximumf>, %44, %cst_23 [1] : vector<2x3x32xf32> to vector<2x32xf32>
    %46 = vector.shape_cast %9 : vector<2x32xf32> to vector<2x1x32xf32>
    %47 = vector.shape_cast %11 : vector<2x32xf32> to vector<2x1x32xf32>
    %48 = vector.shape_cast %13 : vector<2x32xf32> to vector<2x1x32xf32>
    %49 = vector.shape_cast %15 : vector<2x32xf32> to vector<2x1x32xf32>
    %50 = vector.shape_cast %19 : vector<2x32xf32> to vector<2x1x32xf32>
    %51 = vector.shape_cast %21 : vector<2x32xf32> to vector<2x1x32xf32>
    %52 = vector.shape_cast %23 : vector<2x32xf32> to vector<2x1x32xf32>
    %53 = vector.shape_cast %25 : vector<2x32xf32> to vector<2x1x32xf32>
    %54 = vector.shape_cast %29 : vector<2x32xf32> to vector<2x1x32xf32>
    %55 = vector.shape_cast %31 : vector<2x32xf32> to vector<2x1x32xf32>
    %56 = vector.shape_cast %33 : vector<2x32xf32> to vector<2x1x32xf32>
    %57 = vector.shape_cast %35 : vector<2x32xf32> to vector<2x1x32xf32>
    %58 = vector.shape_cast %39 : vector<2x32xf32> to vector<2x1x32xf32>
    %59 = vector.shape_cast %41 : vector<2x32xf32> to vector<2x1x32xf32>
    %60 = vector.shape_cast %43 : vector<2x32xf32> to vector<2x1x32xf32>
    %61 = vector.shape_cast %45 : vector<2x32xf32> to vector<2x1x32xf32>
    %62 = tpu.concatenate %46, %47, %48, %49, %50, %51, %52, %53, %54, %55, %56, %57, %58, %59, %60, %61 in 1 : vector<2x1x32xf32>, vector<2x1x32xf32>, vector<2x1x32xf32>, vector<2x1x32xf32>, vector<2x1x32xf32>, vector<2x1x32xf32>, vector<2x1x32xf32>, vector<2x1x32xf32>, vector<2x1x32xf32>, vector<2x1x32xf32>, vector<2x1x32xf32>, vector<2x1x32xf32>, vector<2x1x32xf32>, vector<2x1x32xf32>, vector<2x1x32xf32>, vector<2x1x32xf32> -> vector<2x16x32xf32>
    %c0_24 = arith.constant 0 : index
    %c0_25 = arith.constant 0 : index
    %63 = vector.load %arg2[%c0_24, %c0_25] : memref<16x32xf32, #tpu.memory_space<vmem>>, vector<16x32xf32>
    %64 = vector.shape_cast %63 : vector<16x32xf32> to vector<1x16x32xf32>
    %65 = vector.broadcast %64 : vector<1x16x32xf32> to vector<2x16x32xf32>
    %66 = arith.addf %62, %65 : vector<2x16x32xf32>
    %67 = vector.shape_cast %66 : vector<2x16x32xf32> to vector<32x32xf32>
    %c0_26 = arith.constant 0 : index
    %c0_27 = arith.constant 0 : index
    %c0_28 = arith.constant 0 : index
    %68 = vector.load %arg3[%c0_26, %c0_27, %c0_28] : memref<2x1x32xf32, #tpu.memory_space<vmem>>, vector<1x1x32xf32>
    %69 = vector.shape_cast %68 : vector<1x1x32xf32> to vector<1x32xf32>
    %c0_29 = arith.constant 0 : index
    %c0_30 = arith.constant 0 : index
    %c0_31 = arith.constant 0 : index
    %70 = vector.load %arg4[%c0_29, %c0_30, %c0_31] : memref<2x1x32xf32, #tpu.memory_space<vmem>>, vector<1x1x32xf32>
    %71 = vector.shape_cast %70 : vector<1x1x32xf32> to vector<1x32xf32>
    %cst_32 = arith.constant dense<0.000000e+00> : vector<32xf32>
    %72 = vector.multi_reduction <add>, %67, %cst_32 [1] : vector<32x32xf32> to vector<32xf32>
    %73 = vector.shape_cast %72 : vector<32xf32> to vector<32x1xf32>
    %cst_33 = arith.constant 3.200000e+01 : f32
    %74 = vector.broadcast %cst_33 : f32 to vector<32x1xf32>
    %75 = arith.divf %73, %74 : vector<32x1xf32>
    %76 = vector.broadcast %75 : vector<32x1xf32> to vector<32x32xf32>
    %77 = arith.subf %67, %76 : vector<32x32xf32>
    %78 = arith.mulf %77, %77 : vector<32x32xf32>
    %cst_34 = arith.constant dense<0.000000e+00> : vector<32xf32>
    %79 = vector.multi_reduction <add>, %78, %cst_34 [1] : vector<32x32xf32> to vector<32xf32>
    %80 = vector.shape_cast %79 : vector<32xf32> to vector<32x1xf32>
    %cst_35 = arith.constant 3.200000e+01 : f32
    %81 = vector.broadcast %cst_35 : f32 to vector<32x1xf32>
    %82 = arith.divf %80, %81 : vector<32x1xf32>
    %cst_36 = arith.constant 9.99999974E-6 : f32
    %83 = vector.broadcast %cst_36 : f32 to vector<32x1xf32>
    %84 = arith.addf %82, %83 : vector<32x1xf32>
    %85 = math.rsqrt %84 : vector<32x1xf32>
    %86 = vector.broadcast %85 : vector<32x1xf32> to vector<32x32xf32>
    %87 = arith.mulf %77, %86 : vector<32x32xf32>
    %88 = vector.broadcast %69 : vector<1x32xf32> to vector<32x32xf32>
    %89 = arith.mulf %87, %88 : vector<32x32xf32>
    %90 = vector.broadcast %71 : vector<1x32xf32> to vector<32x32xf32>
    %91 = arith.addf %89, %90 : vector<32x32xf32>
    %92 = vector.shape_cast %91 : vector<32x32xf32> to vector<1x32x32xf32>
    %93 = vector.shape_cast %92 : vector<1x32x32xf32> to vector<1x32x32xf32>
    %94 = vector.broadcast %93 : vector<1x32x32xf32> to vector<4x32x32xf32>
    %c0_37 = arith.constant 0 : index
    %c0_38 = arith.constant 0 : index
    %c0_39 = arith.constant 0 : index
    %c0_40 = arith.constant 0 : index
    %95 = vector.load %arg5[%c0_37, %c0_38, %c0_39, %c0_40] : memref<2x4x32x8xf32, #tpu.memory_space<vmem>>, vector<1x4x32x8xf32>
    %96 = vector.shape_cast %95 : vector<1x4x32x8xf32> to vector<4x32x8xf32>
    %cst_41 = arith.constant dense<0.000000e+00> : vector<4x32x8xf32>
    %97 = tpu.matmul %94, %96, %cst_41 {dimension_numbers = #tpu.dot_dimension_numbers<[2], [1], [1], [2], [0, 0, 0, 1, 1, 2], [0], [0]>} : vector<4x32x32xf32>, vector<4x32x8xf32>, vector<4x32x8xf32> -> vector<4x32x8xf32>
    %c0_42 = arith.constant 0 : index
    %c0_43 = arith.constant 0 : index
    %c0_44 = arith.constant 0 : index
    %c0_45 = arith.constant 0 : index
    %98 = vector.load %arg6[%c0_42, %c0_43, %c0_44, %c0_45] : memref<2x4x32x8xf32, #tpu.memory_space<vmem>>, vector<1x4x32x8xf32>
    %99 = vector.shape_cast %98 : vector<1x4x32x8xf32> to vector<4x32x8xf32>
    %cst_46 = arith.constant dense<0.000000e+00> : vector<4x32x8xf32>
    %100 = tpu.matmul %94, %99, %cst_46 {dimension_numbers = #tpu.dot_dimension_numbers<[2], [1], [1], [2], [0, 0, 0, 1, 1, 2], [0], [0]>} : vector<4x32x32xf32>, vector<4x32x8xf32>, vector<4x32x8xf32> -> vector<4x32x8xf32>
    %c0_47 = arith.constant 0 : index
    %c0_48 = arith.constant 0 : index
    %c0_49 = arith.constant 0 : index
    %c0_50 = arith.constant 0 : index
    %101 = vector.load %arg7[%c0_47, %c0_48, %c0_49, %c0_50] : memref<2x4x32x8xf32, #tpu.memory_space<vmem>>, vector<1x4x32x8xf32>
    %102 = vector.shape_cast %101 : vector<1x4x32x8xf32> to vector<4x32x8xf32>
    %cst_51 = arith.constant dense<0.000000e+00> : vector<4x32x8xf32>
    %103 = tpu.matmul %94, %102, %cst_51 {dimension_numbers = #tpu.dot_dimension_numbers<[2], [1], [1], [2], [0, 0, 0, 1, 1, 2], [0], [0]>} : vector<4x32x32xf32>, vector<4x32x8xf32>, vector<4x32x8xf32> -> vector<4x32x8xf32>
    %104 = vector.shape_cast %97 : vector<4x32x8xf32> to vector<8x16x8xf32>
    %105 = vector.shape_cast %100 : vector<4x32x8xf32> to vector<8x16x8xf32>
    %106 = vector.shape_cast %103 : vector<4x32x8xf32> to vector<8x16x8xf32>
    "tpu.trace_start"() <{level = 10 : i32, message = "gnd,gmd->gnm"}> : () -> ()
    %cst_52 = arith.constant dense<0.000000e+00> : vector<8x16x16xf32>
    %107 = tpu.matmul %104, %105, %cst_52 {dimension_numbers = #tpu.dot_dimension_numbers<[2], [2], [1], [1], [0, 0, 0, 1, 1, 1], [0], [0]>} : vector<8x16x8xf32>, vector<8x16x8xf32>, vector<8x16x16xf32> -> vector<8x16x16xf32>
    "tpu.trace_stop"() : () -> ()
    %cst_53 = arith.constant 0.353553385 : f32
    %108 = vector.broadcast %cst_53 : f32 to vector<8x16x16xf32>
    %109 = arith.mulf %107, %108 : vector<8x16x16xf32>
    %cst_54 = arith.constant dense<0xFF800000> : vector<8x16xf32>
    %110 = vector.multi_reduction <maximumf>, %109, %cst_54 [2] : vector<8x16x16xf32> to vector<8x16xf32>
    %111 = vector.shape_cast %110 : vector<8x16xf32> to vector<8x16x1xf32>
    %112 = vector.broadcast %111 : vector<8x16x1xf32> to vector<8x16x16xf32>
    %113 = arith.subf %109, %112 : vector<8x16x16xf32>
    %114 = math.exp %113 : vector<8x16x16xf32>
    %cst_55 = arith.constant dense<0.000000e+00> : vector<8x16xf32>
    %115 = vector.multi_reduction <add>, %114, %cst_55 [2] : vector<8x16x16xf32> to vector<8x16xf32>
    %116 = vector.shape_cast %115 : vector<8x16xf32> to vector<8x16x1xf32>
    %117 = tpu.reciprocal %116 {approx = true} : vector<8x16x1xf32> -> vector<8x16x1xf32>
    %118 = vector.broadcast %117 : vector<8x16x1xf32> to vector<8x16x16xf32>
    %119 = arith.mulf %114, %118 : vector<8x16x16xf32>
    "tpu.trace_start"() <{level = 10 : i32, message = "gnm,gmd->gnd"}> : () -> ()
    %cst_56 = arith.constant dense<0.000000e+00> : vector<8x16x8xf32>
    %120 = tpu.matmul %119, %106, %cst_56 {dimension_numbers = #tpu.dot_dimension_numbers<[2], [1], [1], [2], [0, 0, 0, 1, 1, 2], [0], [0]>} : vector<8x16x16xf32>, vector<8x16x8xf32>, vector<8x16x8xf32> -> vector<8x16x8xf32>
    "tpu.trace_stop"() : () -> ()
    %121 = vector.shape_cast %120 : vector<8x16x8xf32> to vector<4x32x8xf32>
    %c0_57 = arith.constant 0 : index
    %c0_58 = arith.constant 0 : index
    %c0_59 = arith.constant 0 : index
    %c0_60 = arith.constant 0 : index
    %122 = vector.load %arg8[%c0_57, %c0_58, %c0_59, %c0_60] : memref<2x4x8x32xf32, #tpu.memory_space<vmem>>, vector<1x4x8x32xf32>
    %123 = vector.shape_cast %122 : vector<1x4x8x32xf32> to vector<4x8x32xf32>
    %cst_61 = arith.constant dense<0.000000e+00> : vector<4x32x32xf32>
    %124 = tpu.matmul %121, %123, %cst_61 {dimension_numbers = #tpu.dot_dimension_numbers<[2], [1], [1], [2], [0, 0, 0, 1, 1, 2], [0], [0]>} : vector<4x32x8xf32>, vector<4x8x32xf32>, vector<4x32x32xf32> -> vector<4x32x32xf32>
    %cst_62 = arith.constant dense<0.000000e+00> : vector<32x32xf32>
    %125 = vector.multi_reduction <add>, %124, %cst_62 [0] : vector<4x32x32xf32> to vector<32x32xf32>
    %c0_63 = arith.constant 0 : index
    %c0_64 = arith.constant 0 : index
    %c0_65 = arith.constant 0 : index
    %126 = vector.load %arg9[%c0_63, %c0_64, %c0_65] : memref<2x1x32xf32, #tpu.memory_space<vmem>>, vector<1x1x32xf32>
    %127 = vector.shape_cast %126 : vector<1x1x32xf32> to vector<1x32xf32>
    %128 = vector.broadcast %127 : vector<1x32xf32> to vector<32x32xf32>
    %129 = arith.addf %125, %128 : vector<32x32xf32>
    %130 = arith.addf %67, %129 : vector<32x32xf32>
    %c0_66 = arith.constant 0 : index
    %c0_67 = arith.constant 0 : index
    %c0_68 = arith.constant 0 : index
    %131 = vector.load %arg10[%c0_66, %c0_67, %c0_68] : memref<2x1x32xf32, #tpu.memory_space<vmem>>, vector<1x1x32xf32>
    %132 = vector.shape_cast %131 : vector<1x1x32xf32> to vector<1x32xf32>
    %c0_69 = arith.constant 0 : index
    %c0_70 = arith.constant 0 : index
    %c0_71 = arith.constant 0 : index
    %133 = vector.load %arg11[%c0_69, %c0_70, %c0_71] : memref<2x1x32xf32, #tpu.memory_space<vmem>>, vector<1x1x32xf32>
    %134 = vector.shape_cast %133 : vector<1x1x32xf32> to vector<1x32xf32>
    %cst_72 = arith.constant dense<0.000000e+00> : vector<32xf32>
    %135 = vector.multi_reduction <add>, %130, %cst_72 [1] : vector<32x32xf32> to vector<32xf32>
    %136 = vector.shape_cast %135 : vector<32xf32> to vector<32x1xf32>
    %cst_73 = arith.constant 3.200000e+01 : f32
    %137 = vector.broadcast %cst_73 : f32 to vector<32x1xf32>
    %138 = arith.divf %136, %137 : vector<32x1xf32>
    %139 = vector.broadcast %138 : vector<32x1xf32> to vector<32x32xf32>
    %140 = arith.subf %130, %139 : vector<32x32xf32>
    %141 = arith.mulf %140, %140 : vector<32x32xf32>
    %cst_74 = arith.constant dense<0.000000e+00> : vector<32xf32>
    %142 = vector.multi_reduction <add>, %141, %cst_74 [1] : vector<32x32xf32> to vector<32xf32>
    %143 = vector.shape_cast %142 : vector<32xf32> to vector<32x1xf32>
    %cst_75 = arith.constant 3.200000e+01 : f32
    %144 = vector.broadcast %cst_75 : f32 to vector<32x1xf32>
    %145 = arith.divf %143, %144 : vector<32x1xf32>
    %cst_76 = arith.constant 9.99999974E-6 : f32
    %146 = vector.broadcast %cst_76 : f32 to vector<32x1xf32>
    %147 = arith.addf %145, %146 : vector<32x1xf32>
    %148 = math.rsqrt %147 : vector<32x1xf32>
    %149 = vector.broadcast %148 : vector<32x1xf32> to vector<32x32xf32>
    %150 = arith.mulf %140, %149 : vector<32x32xf32>
    %151 = vector.broadcast %132 : vector<1x32xf32> to vector<32x32xf32>
    %152 = arith.mulf %150, %151 : vector<32x32xf32>
    %153 = vector.broadcast %134 : vector<1x32xf32> to vector<32x32xf32>
    %154 = arith.addf %152, %153 : vector<32x32xf32>
    %c0_77 = arith.constant 0 : index
    %c0_78 = arith.constant 0 : index
    %c0_79 = arith.constant 0 : index
    %155 = vector.load %arg12[%c0_77, %c0_78, %c0_79] : memref<2x32x128xf32, #tpu.memory_space<vmem>>, vector<1x32x128xf32>
    %156 = vector.shape_cast %155 : vector<1x32x128xf32> to vector<32x128xf32>
    %cst_80 = arith.constant dense<0.000000e+00> : vector<32x128xf32>
    %157 = tpu.matmul %154, %156, %cst_80 {dimension_numbers = #tpu.dot_dimension_numbers<[1], [0], [0], [1], [0, 0, 1, 1], [], []>} : vector<32x32xf32>, vector<32x128xf32>, vector<32x128xf32> -> vector<32x128xf32>
    %c0_81 = arith.constant 0 : index
    %c0_82 = arith.constant 0 : index
    %c0_83 = arith.constant 0 : index
    %158 = vector.load %arg13[%c0_81, %c0_82, %c0_83] : memref<2x1x128xf32, #tpu.memory_space<vmem>>, vector<1x1x128xf32>
    %159 = vector.shape_cast %158 : vector<1x1x128xf32> to vector<1x128xf32>
    %160 = vector.broadcast %159 : vector<1x128xf32> to vector<32x128xf32>
    %161 = arith.addf %157, %160 : vector<32x128xf32>
    %cst_84 = arith.constant 5.000000e-01 : f32
    %162 = vector.broadcast %cst_84 : f32 to vector<32x128xf32>
    %163 = arith.mulf %162, %161 : vector<32x128xf32>
    %cst_85 = arith.constant 0.707106769 : f32
    %164 = vector.broadcast %cst_85 : f32 to vector<32x128xf32>
    %165 = arith.mulf %161, %164 : vector<32x128xf32>
    %166 = math.absf %165 : vector<32x128xf32>
    %cst_86 = arith.constant 0.327591091 : f32
    %167 = vector.broadcast %cst_86 : f32 to vector<32x128xf32>
    %168 = arith.mulf %167, %166 : vector<32x128xf32>
    %cst_87 = arith.constant 1.000000e+00 : f32
    %169 = vector.broadcast %cst_87 : f32 to vector<32x128xf32>
    %170 = arith.addf %169, %168 : vector<32x128xf32>
    %cst_88 = arith.constant 1.000000e+00 : f32
    %171 = vector.broadcast %cst_88 : f32 to vector<32x128xf32>
    %172 = arith.divf %171, %170 : vector<32x128xf32>
    %cst_89 = arith.constant 1.06140542 : f32
    %173 = vector.broadcast %cst_89 : f32 to vector<32x128xf32>
    %174 = arith.mulf %173, %172 : vector<32x128xf32>
    %cst_90 = arith.constant -1.45315206 : f32
    %175 = vector.broadcast %cst_90 : f32 to vector<32x128xf32>
    %176 = arith.addf %174, %175 : vector<32x128xf32>
    %177 = arith.mulf %176, %172 : vector<32x128xf32>
    %cst_91 = arith.constant 1.42141378 : f32
    %178 = vector.broadcast %cst_91 : f32 to vector<32x128xf32>
    %179 = arith.addf %177, %178 : vector<32x128xf32>
    %180 = arith.mulf %179, %172 : vector<32x128xf32>
    %cst_92 = arith.constant -0.284496725 : f32
    %181 = vector.broadcast %cst_92 : f32 to vector<32x128xf32>
    %182 = arith.addf %180, %181 : vector<32x128xf32>
    %183 = arith.mulf %182, %172 : vector<32x128xf32>
    %cst_93 = arith.constant 0.254829586 : f32
    %184 = vector.broadcast %cst_93 : f32 to vector<32x128xf32>
    %185 = arith.addf %183, %184 : vector<32x128xf32>
    %186 = arith.mulf %185, %172 : vector<32x128xf32>
    %cst_94 = arith.constant 0.000000e+00 : f32
    %187 = vector.broadcast %cst_94 : f32 to vector<32x128xf32>
    %188 = arith.subf %187, %166 : vector<32x128xf32>
    %189 = arith.mulf %188, %166 : vector<32x128xf32>
    %190 = math.exp %189 : vector<32x128xf32>
    %191 = arith.mulf %186, %190 : vector<32x128xf32>
    %cst_95 = arith.constant 1.000000e+00 : f32
    %192 = vector.broadcast %cst_95 : f32 to vector<32x128xf32>
    %193 = arith.subf %192, %191 : vector<32x128xf32>
    %cst_96 = arith.constant 0.000000e+00 : f32
    %194 = vector.broadcast %cst_96 : f32 to vector<32x128xf32>
    %195 = arith.cmpf oge, %165, %194 : vector<32x128xf32>
    %cst_97 = arith.constant 0.000000e+00 : f32
    %196 = vector.broadcast %cst_97 : f32 to vector<32x128xf32>
    %197 = arith.subf %196, %193 : vector<32x128xf32>
    %198 = arith.select %195, %193, %197 : vector<32x128xi1>, vector<32x128xf32>
    %cst_98 = arith.constant 1.000000e+00 : f32
    %199 = vector.broadcast %cst_98 : f32 to vector<32x128xf32>
    %200 = arith.addf %199, %198 : vector<32x128xf32>
    %201 = arith.mulf %163, %200 : vector<32x128xf32>
    %c0_99 = arith.constant 0 : index
    %c0_100 = arith.constant 0 : index
    %c0_101 = arith.constant 0 : index
    %202 = vector.load %arg14[%c0_99, %c0_100, %c0_101] : memref<2x128x32xf32, #tpu.memory_space<vmem>>, vector<1x128x32xf32>
    %203 = vector.shape_cast %202 : vector<1x128x32xf32> to vector<128x32xf32>
    %cst_102 = arith.constant dense<0.000000e+00> : vector<32x32xf32>
    %204 = tpu.matmul %201, %203, %cst_102 {dimension_numbers = #tpu.dot_dimension_numbers<[1], [0], [0], [1], [0, 0, 1, 1], [], []>} : vector<32x128xf32>, vector<128x32xf32>, vector<32x32xf32> -> vector<32x32xf32>
    %c0_103 = arith.constant 0 : index
    %c0_104 = arith.constant 0 : index
    %c0_105 = arith.constant 0 : index
    %205 = vector.load %arg15[%c0_103, %c0_104, %c0_105] : memref<2x1x32xf32, #tpu.memory_space<vmem>>, vector<1x1x32xf32>
    %206 = vector.shape_cast %205 : vector<1x1x32xf32> to vector<1x32xf32>
    %207 = vector.broadcast %206 : vector<1x32xf32> to vector<32x32xf32>
    %208 = arith.addf %204, %207 : vector<32x32xf32>
    %209 = arith.addf %154, %208 : vector<32x32xf32>
    %c1 = arith.constant 1 : index
    %c0_106 = arith.constant 0 : index
    %c0_107 = arith.constant 0 : index
    %210 = vector.load %arg3[%c1, %c0_106, %c0_107] : memref<2x1x32xf32, #tpu.memory_space<vmem>>, vector<1x1x32xf32>
    %211 = vector.shape_cast %210 : vector<1x1x32xf32> to vector<1x32xf32>
    %c1_108 = arith.constant 1 : index
    %c0_109 = arith.constant 0 : index
    %c0_110 = arith.constant 0 : index
    %212 = vector.load %arg4[%c1_108, %c0_109, %c0_110] : memref<2x1x32xf32, #tpu.memory_space<vmem>>, vector<1x1x32xf32>
    %213 = vector.shape_cast %212 : vector<1x1x32xf32> to vector<1x32xf32>
    %cst_111 = arith.constant dense<0.000000e+00> : vector<32xf32>
    %214 = vector.multi_reduction <add>, %209, %cst_111 [1] : vector<32x32xf32> to vector<32xf32>
    %215 = vector.shape_cast %214 : vector<32xf32> to vector<32x1xf32>
    %cst_112 = arith.constant 3.200000e+01 : f32
    %216 = vector.broadcast %cst_112 : f32 to vector<32x1xf32>
    %217 = arith.divf %215, %216 : vector<32x1xf32>
    %218 = vector.broadcast %217 : vector<32x1xf32> to vector<32x32xf32>
    %219 = arith.subf %209, %218 : vector<32x32xf32>
    %220 = arith.mulf %219, %219 : vector<32x32xf32>
    %cst_113 = arith.constant dense<0.000000e+00> : vector<32xf32>
    %221 = vector.multi_reduction <add>, %220, %cst_113 [1] : vector<32x32xf32> to vector<32xf32>
    %222 = vector.shape_cast %221 : vector<32xf32> to vector<32x1xf32>
    %cst_114 = arith.constant 3.200000e+01 : f32
    %223 = vector.broadcast %cst_114 : f32 to vector<32x1xf32>
    %224 = arith.divf %222, %223 : vector<32x1xf32>
    %cst_115 = arith.constant 9.99999974E-6 : f32
    %225 = vector.broadcast %cst_115 : f32 to vector<32x1xf32>
    %226 = arith.addf %224, %225 : vector<32x1xf32>
    %227 = math.rsqrt %226 : vector<32x1xf32>
    %228 = vector.broadcast %227 : vector<32x1xf32> to vector<32x32xf32>
    %229 = arith.mulf %219, %228 : vector<32x32xf32>
    %230 = vector.broadcast %211 : vector<1x32xf32> to vector<32x32xf32>
    %231 = arith.mulf %229, %230 : vector<32x32xf32>
    %232 = vector.broadcast %213 : vector<1x32xf32> to vector<32x32xf32>
    %233 = arith.addf %231, %232 : vector<32x32xf32>
    %234 = vector.shape_cast %233 : vector<32x32xf32> to vector<1x32x32xf32>
    %235 = vector.shape_cast %234 : vector<1x32x32xf32> to vector<1x32x32xf32>
    %236 = vector.broadcast %235 : vector<1x32x32xf32> to vector<4x32x32xf32>
    %c1_116 = arith.constant 1 : index
    %c0_117 = arith.constant 0 : index
    %c0_118 = arith.constant 0 : index
    %c0_119 = arith.constant 0 : index
    %237 = vector.load %arg5[%c1_116, %c0_117, %c0_118, %c0_119] : memref<2x4x32x8xf32, #tpu.memory_space<vmem>>, vector<1x4x32x8xf32>
    %238 = vector.shape_cast %237 : vector<1x4x32x8xf32> to vector<4x32x8xf32>
    %cst_120 = arith.constant dense<0.000000e+00> : vector<4x32x8xf32>
    %239 = tpu.matmul %236, %238, %cst_120 {dimension_numbers = #tpu.dot_dimension_numbers<[2], [1], [1], [2], [0, 0, 0, 1, 1, 2], [0], [0]>} : vector<4x32x32xf32>, vector<4x32x8xf32>, vector<4x32x8xf32> -> vector<4x32x8xf32>
    %c1_121 = arith.constant 1 : index
    %c0_122 = arith.constant 0 : index
    %c0_123 = arith.constant 0 : index
    %c0_124 = arith.constant 0 : index
    %240 = vector.load %arg6[%c1_121, %c0_122, %c0_123, %c0_124] : memref<2x4x32x8xf32, #tpu.memory_space<vmem>>, vector<1x4x32x8xf32>
    %241 = vector.shape_cast %240 : vector<1x4x32x8xf32> to vector<4x32x8xf32>
    %cst_125 = arith.constant dense<0.000000e+00> : vector<4x32x8xf32>
    %242 = tpu.matmul %236, %241, %cst_125 {dimension_numbers = #tpu.dot_dimension_numbers<[2], [1], [1], [2], [0, 0, 0, 1, 1, 2], [0], [0]>} : vector<4x32x32xf32>, vector<4x32x8xf32>, vector<4x32x8xf32> -> vector<4x32x8xf32>
    %c1_126 = arith.constant 1 : index
    %c0_127 = arith.constant 0 : index
    %c0_128 = arith.constant 0 : index
    %c0_129 = arith.constant 0 : index
    %243 = vector.load %arg7[%c1_126, %c0_127, %c0_128, %c0_129] : memref<2x4x32x8xf32, #tpu.memory_space<vmem>>, vector<1x4x32x8xf32>
    %244 = vector.shape_cast %243 : vector<1x4x32x8xf32> to vector<4x32x8xf32>
    %cst_130 = arith.constant dense<0.000000e+00> : vector<4x32x8xf32>
    %245 = tpu.matmul %236, %244, %cst_130 {dimension_numbers = #tpu.dot_dimension_numbers<[2], [1], [1], [2], [0, 0, 0, 1, 1, 2], [0], [0]>} : vector<4x32x32xf32>, vector<4x32x8xf32>, vector<4x32x8xf32> -> vector<4x32x8xf32>
    %246 = vector.shape_cast %239 : vector<4x32x8xf32> to vector<8x16x8xf32>
    %247 = vector.shape_cast %242 : vector<4x32x8xf32> to vector<8x16x8xf32>
    %248 = vector.shape_cast %245 : vector<4x32x8xf32> to vector<8x16x8xf32>
    "tpu.trace_start"() <{level = 10 : i32, message = "gnd,gmd->gnm"}> : () -> ()
    %cst_131 = arith.constant dense<0.000000e+00> : vector<8x16x16xf32>
    %249 = tpu.matmul %246, %247, %cst_131 {dimension_numbers = #tpu.dot_dimension_numbers<[2], [2], [1], [1], [0, 0, 0, 1, 1, 1], [0], [0]>} : vector<8x16x8xf32>, vector<8x16x8xf32>, vector<8x16x16xf32> -> vector<8x16x16xf32>
    "tpu.trace_stop"() : () -> ()
    %cst_132 = arith.constant 0.353553385 : f32
    %250 = vector.broadcast %cst_132 : f32 to vector<8x16x16xf32>
    %251 = arith.mulf %249, %250 : vector<8x16x16xf32>
    %cst_133 = arith.constant dense<0xFF800000> : vector<8x16xf32>
    %252 = vector.multi_reduction <maximumf>, %251, %cst_133 [2] : vector<8x16x16xf32> to vector<8x16xf32>
    %253 = vector.shape_cast %252 : vector<8x16xf32> to vector<8x16x1xf32>
    %254 = vector.broadcast %253 : vector<8x16x1xf32> to vector<8x16x16xf32>
    %255 = arith.subf %251, %254 : vector<8x16x16xf32>
    %256 = math.exp %255 : vector<8x16x16xf32>
    %cst_134 = arith.constant dense<0.000000e+00> : vector<8x16xf32>
    %257 = vector.multi_reduction <add>, %256, %cst_134 [2] : vector<8x16x16xf32> to vector<8x16xf32>
    %258 = vector.shape_cast %257 : vector<8x16xf32> to vector<8x16x1xf32>
    %259 = tpu.reciprocal %258 {approx = true} : vector<8x16x1xf32> -> vector<8x16x1xf32>
    %260 = vector.broadcast %259 : vector<8x16x1xf32> to vector<8x16x16xf32>
    %261 = arith.mulf %256, %260 : vector<8x16x16xf32>
    "tpu.trace_start"() <{level = 10 : i32, message = "gnm,gmd->gnd"}> : () -> ()
    %cst_135 = arith.constant dense<0.000000e+00> : vector<8x16x8xf32>
    %262 = tpu.matmul %261, %248, %cst_135 {dimension_numbers = #tpu.dot_dimension_numbers<[2], [1], [1], [2], [0, 0, 0, 1, 1, 2], [0], [0]>} : vector<8x16x16xf32>, vector<8x16x8xf32>, vector<8x16x8xf32> -> vector<8x16x8xf32>
    "tpu.trace_stop"() : () -> ()
    %263 = vector.shape_cast %262 : vector<8x16x8xf32> to vector<4x32x8xf32>
    %c1_136 = arith.constant 1 : index
    %c0_137 = arith.constant 0 : index
    %c0_138 = arith.constant 0 : index
    %c0_139 = arith.constant 0 : index
    %264 = vector.load %arg8[%c1_136, %c0_137, %c0_138, %c0_139] : memref<2x4x8x32xf32, #tpu.memory_space<vmem>>, vector<1x4x8x32xf32>
    %265 = vector.shape_cast %264 : vector<1x4x8x32xf32> to vector<4x8x32xf32>
    %cst_140 = arith.constant dense<0.000000e+00> : vector<4x32x32xf32>
    %266 = tpu.matmul %263, %265, %cst_140 {dimension_numbers = #tpu.dot_dimension_numbers<[2], [1], [1], [2], [0, 0, 0, 1, 1, 2], [0], [0]>} : vector<4x32x8xf32>, vector<4x8x32xf32>, vector<4x32x32xf32> -> vector<4x32x32xf32>
    %cst_141 = arith.constant dense<0.000000e+00> : vector<32x32xf32>
    %267 = vector.multi_reduction <add>, %266, %cst_141 [0] : vector<4x32x32xf32> to vector<32x32xf32>
    %c1_142 = arith.constant 1 : index
    %c0_143 = arith.constant 0 : index
    %c0_144 = arith.constant 0 : index
    %268 = vector.load %arg9[%c1_142, %c0_143, %c0_144] : memref<2x1x32xf32, #tpu.memory_space<vmem>>, vector<1x1x32xf32>
    %269 = vector.shape_cast %268 : vector<1x1x32xf32> to vector<1x32xf32>
    %270 = vector.broadcast %269 : vector<1x32xf32> to vector<32x32xf32>
    %271 = arith.addf %267, %270 : vector<32x32xf32>
    %272 = arith.addf %209, %271 : vector<32x32xf32>
    %c1_145 = arith.constant 1 : index
    %c0_146 = arith.constant 0 : index
    %c0_147 = arith.constant 0 : index
    %273 = vector.load %arg10[%c1_145, %c0_146, %c0_147] : memref<2x1x32xf32, #tpu.memory_space<vmem>>, vector<1x1x32xf32>
    %274 = vector.shape_cast %273 : vector<1x1x32xf32> to vector<1x32xf32>
    %c1_148 = arith.constant 1 : index
    %c0_149 = arith.constant 0 : index
    %c0_150 = arith.constant 0 : index
    %275 = vector.load %arg11[%c1_148, %c0_149, %c0_150] : memref<2x1x32xf32, #tpu.memory_space<vmem>>, vector<1x1x32xf32>
    %276 = vector.shape_cast %275 : vector<1x1x32xf32> to vector<1x32xf32>
    %cst_151 = arith.constant dense<0.000000e+00> : vector<32xf32>
    %277 = vector.multi_reduction <add>, %272, %cst_151 [1] : vector<32x32xf32> to vector<32xf32>
    %278 = vector.shape_cast %277 : vector<32xf32> to vector<32x1xf32>
    %cst_152 = arith.constant 3.200000e+01 : f32
    %279 = vector.broadcast %cst_152 : f32 to vector<32x1xf32>
    %280 = arith.divf %278, %279 : vector<32x1xf32>
    %281 = vector.broadcast %280 : vector<32x1xf32> to vector<32x32xf32>
    %282 = arith.subf %272, %281 : vector<32x32xf32>
    %283 = arith.mulf %282, %282 : vector<32x32xf32>
    %cst_153 = arith.constant dense<0.000000e+00> : vector<32xf32>
    %284 = vector.multi_reduction <add>, %283, %cst_153 [1] : vector<32x32xf32> to vector<32xf32>
    %285 = vector.shape_cast %284 : vector<32xf32> to vector<32x1xf32>
    %cst_154 = arith.constant 3.200000e+01 : f32
    %286 = vector.broadcast %cst_154 : f32 to vector<32x1xf32>
    %287 = arith.divf %285, %286 : vector<32x1xf32>
    %cst_155 = arith.constant 9.99999974E-6 : f32
    %288 = vector.broadcast %cst_155 : f32 to vector<32x1xf32>
    %289 = arith.addf %287, %288 : vector<32x1xf32>
    %290 = math.rsqrt %289 : vector<32x1xf32>
    %291 = vector.broadcast %290 : vector<32x1xf32> to vector<32x32xf32>
    %292 = arith.mulf %282, %291 : vector<32x32xf32>
    %293 = vector.broadcast %274 : vector<1x32xf32> to vector<32x32xf32>
    %294 = arith.mulf %292, %293 : vector<32x32xf32>
    %295 = vector.broadcast %276 : vector<1x32xf32> to vector<32x32xf32>
    %296 = arith.addf %294, %295 : vector<32x32xf32>
    %c1_156 = arith.constant 1 : index
    %c0_157 = arith.constant 0 : index
    %c0_158 = arith.constant 0 : index
    %297 = vector.load %arg12[%c1_156, %c0_157, %c0_158] : memref<2x32x128xf32, #tpu.memory_space<vmem>>, vector<1x32x128xf32>
    %298 = vector.shape_cast %297 : vector<1x32x128xf32> to vector<32x128xf32>
    %cst_159 = arith.constant dense<0.000000e+00> : vector<32x128xf32>
    %299 = tpu.matmul %296, %298, %cst_159 {dimension_numbers = #tpu.dot_dimension_numbers<[1], [0], [0], [1], [0, 0, 1, 1], [], []>} : vector<32x32xf32>, vector<32x128xf32>, vector<32x128xf32> -> vector<32x128xf32>
    %c1_160 = arith.constant 1 : index
    %c0_161 = arith.constant 0 : index
    %c0_162 = arith.constant 0 : index
    %300 = vector.load %arg13[%c1_160, %c0_161, %c0_162] : memref<2x1x128xf32, #tpu.memory_space<vmem>>, vector<1x1x128xf32>
    %301 = vector.shape_cast %300 : vector<1x1x128xf32> to vector<1x128xf32>
    %302 = vector.broadcast %301 : vector<1x128xf32> to vector<32x128xf32>
    %303 = arith.addf %299, %302 : vector<32x128xf32>
    %cst_163 = arith.constant 5.000000e-01 : f32
    %304 = vector.broadcast %cst_163 : f32 to vector<32x128xf32>
    %305 = arith.mulf %304, %303 : vector<32x128xf32>
    %cst_164 = arith.constant 0.707106769 : f32
    %306 = vector.broadcast %cst_164 : f32 to vector<32x128xf32>
    %307 = arith.mulf %303, %306 : vector<32x128xf32>
    %308 = math.absf %307 : vector<32x128xf32>
    %cst_165 = arith.constant 0.327591091 : f32
    %309 = vector.broadcast %cst_165 : f32 to vector<32x128xf32>
    %310 = arith.mulf %309, %308 : vector<32x128xf32>
    %cst_166 = arith.constant 1.000000e+00 : f32
    %311 = vector.broadcast %cst_166 : f32 to vector<32x128xf32>
    %312 = arith.addf %311, %310 : vector<32x128xf32>
    %cst_167 = arith.constant 1.000000e+00 : f32
    %313 = vector.broadcast %cst_167 : f32 to vector<32x128xf32>
    %314 = arith.divf %313, %312 : vector<32x128xf32>
    %cst_168 = arith.constant 1.06140542 : f32
    %315 = vector.broadcast %cst_168 : f32 to vector<32x128xf32>
    %316 = arith.mulf %315, %314 : vector<32x128xf32>
    %cst_169 = arith.constant -1.45315206 : f32
    %317 = vector.broadcast %cst_169 : f32 to vector<32x128xf32>
    %318 = arith.addf %316, %317 : vector<32x128xf32>
    %319 = arith.mulf %318, %314 : vector<32x128xf32>
    %cst_170 = arith.constant 1.42141378 : f32
    %320 = vector.broadcast %cst_170 : f32 to vector<32x128xf32>
    %321 = arith.addf %319, %320 : vector<32x128xf32>
    %322 = arith.mulf %321, %314 : vector<32x128xf32>
    %cst_171 = arith.constant -0.284496725 : f32
    %323 = vector.broadcast %cst_171 : f32 to vector<32x128xf32>
    %324 = arith.addf %322, %323 : vector<32x128xf32>
    %325 = arith.mulf %324, %314 : vector<32x128xf32>
    %cst_172 = arith.constant 0.254829586 : f32
    %326 = vector.broadcast %cst_172 : f32 to vector<32x128xf32>
    %327 = arith.addf %325, %326 : vector<32x128xf32>
    %328 = arith.mulf %327, %314 : vector<32x128xf32>
    %cst_173 = arith.constant 0.000000e+00 : f32
    %329 = vector.broadcast %cst_173 : f32 to vector<32x128xf32>
    %330 = arith.subf %329, %308 : vector<32x128xf32>
    %331 = arith.mulf %330, %308 : vector<32x128xf32>
    %332 = math.exp %331 : vector<32x128xf32>
    %333 = arith.mulf %328, %332 : vector<32x128xf32>
    %cst_174 = arith.constant 1.000000e+00 : f32
    %334 = vector.broadcast %cst_174 : f32 to vector<32x128xf32>
    %335 = arith.subf %334, %333 : vector<32x128xf32>
    %cst_175 = arith.constant 0.000000e+00 : f32
    %336 = vector.broadcast %cst_175 : f32 to vector<32x128xf32>
    %337 = arith.cmpf oge, %307, %336 : vector<32x128xf32>
    %cst_176 = arith.constant 0.000000e+00 : f32
    %338 = vector.broadcast %cst_176 : f32 to vector<32x128xf32>
    %339 = arith.subf %338, %335 : vector<32x128xf32>
    %340 = arith.select %337, %335, %339 : vector<32x128xi1>, vector<32x128xf32>
    %cst_177 = arith.constant 1.000000e+00 : f32
    %341 = vector.broadcast %cst_177 : f32 to vector<32x128xf32>
    %342 = arith.addf %341, %340 : vector<32x128xf32>
    %343 = arith.mulf %305, %342 : vector<32x128xf32>
    %c1_178 = arith.constant 1 : index
    %c0_179 = arith.constant 0 : index
    %c0_180 = arith.constant 0 : index
    %344 = vector.load %arg14[%c1_178, %c0_179, %c0_180] : memref<2x128x32xf32, #tpu.memory_space<vmem>>, vector<1x128x32xf32>
    %345 = vector.shape_cast %344 : vector<1x128x32xf32> to vector<128x32xf32>
    %cst_181 = arith.constant dense<0.000000e+00> : vector<32x32xf32>
    %346 = tpu.matmul %343, %345, %cst_181 {dimension_numbers = #tpu.dot_dimension_numbers<[1], [0], [0], [1], [0, 0, 1, 1], [], []>} : vector<32x128xf32>, vector<128x32xf32>, vector<32x32xf32> -> vector<32x32xf32>
    %c1_182 = arith.constant 1 : index
    %c0_183 = arith.constant 0 : index
    %c0_184 = arith.constant 0 : index
    %347 = vector.load %arg15[%c1_182, %c0_183, %c0_184] : memref<2x1x32xf32, #tpu.memory_space<vmem>>, vector<1x1x32xf32>
    %348 = vector.shape_cast %347 : vector<1x1x32xf32> to vector<1x32xf32>
    %349 = vector.broadcast %348 : vector<1x32xf32> to vector<32x32xf32>
    %350 = arith.addf %346, %349 : vector<32x32xf32>
    %351 = arith.addf %296, %350 : vector<32x32xf32>
    %c0_185 = arith.constant 0 : index
    %c0_186 = arith.constant 0 : index
    %352 = vector.load %arg16[%c0_185, %c0_186] : memref<1x32xf32, #tpu.memory_space<vmem>>, vector<1x32xf32>
    %c0_187 = arith.constant 0 : index
    %c0_188 = arith.constant 0 : index
    %353 = vector.load %arg17[%c0_187, %c0_188] : memref<1x32xf32, #tpu.memory_space<vmem>>, vector<1x32xf32>
    %cst_189 = arith.constant dense<0.000000e+00> : vector<32xf32>
    %354 = vector.multi_reduction <add>, %351, %cst_189 [1] : vector<32x32xf32> to vector<32xf32>
    %355 = vector.shape_cast %354 : vector<32xf32> to vector<32x1xf32>
    %cst_190 = arith.constant 3.200000e+01 : f32
    %356 = vector.broadcast %cst_190 : f32 to vector<32x1xf32>
    %357 = arith.divf %355, %356 : vector<32x1xf32>
    %358 = vector.broadcast %357 : vector<32x1xf32> to vector<32x32xf32>
    %359 = arith.subf %351, %358 : vector<32x32xf32>
    %360 = arith.mulf %359, %359 : vector<32x32xf32>
    %cst_191 = arith.constant dense<0.000000e+00> : vector<32xf32>
    %361 = vector.multi_reduction <add>, %360, %cst_191 [1] : vector<32x32xf32> to vector<32xf32>
    %362 = vector.shape_cast %361 : vector<32xf32> to vector<32x1xf32>
    %cst_192 = arith.constant 3.200000e+01 : f32
    %363 = vector.broadcast %cst_192 : f32 to vector<32x1xf32>
    %364 = arith.divf %362, %363 : vector<32x1xf32>
    %cst_193 = arith.constant 9.99999974E-6 : f32
    %365 = vector.broadcast %cst_193 : f32 to vector<32x1xf32>
    %366 = arith.addf %364, %365 : vector<32x1xf32>
    %367 = math.rsqrt %366 : vector<32x1xf32>
    %368 = vector.broadcast %367 : vector<32x1xf32> to vector<32x32xf32>
    %369 = arith.mulf %359, %368 : vector<32x32xf32>
    %370 = vector.broadcast %352 : vector<1x32xf32> to vector<32x32xf32>
    %371 = arith.mulf %369, %370 : vector<32x32xf32>
    %372 = vector.broadcast %353 : vector<1x32xf32> to vector<32x32xf32>
    %373 = arith.addf %371, %372 : vector<32x32xf32>
    %374 = vector.shape_cast %373 : vector<32x32xf32> to vector<2x16x32xf32>
    %c0_194 = arith.constant 0 : index
    %c0_195 = arith.constant 0 : index
    %c0_196 = arith.constant 0 : index
    %375 = vector.load %arg18[%c0_194, %c0_195, %c0_196] : memref<1x1x32xf32, #tpu.memory_space<vmem>>, vector<1x1x32xf32>
    %376 = vector.broadcast %375 : vector<1x1x32xf32> to vector<2x16x32xf32>
    %377 = arith.mulf %374, %376 : vector<2x16x32xf32>
    %cst_197 = arith.constant dense<0.000000e+00> : vector<2x16xf32>
    %378 = vector.multi_reduction <add>, %377, %cst_197 [2] : vector<2x16x32xf32> to vector<2x16xf32>
    %379 = vector.shape_cast %378 : vector<2x16xf32> to vector<2x16x1xf32>
    %c0_198 = arith.constant 0 : index
    %c0_199 = arith.constant 0 : index
    %c0_200 = arith.constant 0 : index
    %380 = vector.load %arg19[%c0_198, %c0_199, %c0_200] : memref<1x1x1xf32, #tpu.memory_space<vmem>>, vector<1x1x1xf32>
    %381 = vector.broadcast %380 : vector<1x1x1xf32> to vector<2x16x1xf32>
    %382 = arith.addf %379, %381 : vector<2x16x1xf32>
    %cst_201 = arith.constant dense<0xFF800000> : vector<2x1xf32>
    %383 = vector.multi_reduction <maximumf>, %382, %cst_201 [1] : vector<2x16x1xf32> to vector<2x1xf32>
    %384 = vector.shape_cast %383 : vector<2x1xf32> to vector<2x1x1xf32>
    %385 = vector.broadcast %384 : vector<2x1x1xf32> to vector<2x16x1xf32>
    %386 = arith.subf %382, %385 : vector<2x16x1xf32>
    %387 = math.exp %386 : vector<2x16x1xf32>
    %cst_202 = arith.constant dense<0.000000e+00> : vector<2x1xf32>
    %388 = vector.multi_reduction <add>, %387, %cst_202 [1] : vector<2x16x1xf32> to vector<2x1xf32>
    %389 = vector.shape_cast %388 : vector<2x1xf32> to vector<2x1x1xf32>
    %390 = tpu.reciprocal %389 {approx = true} : vector<2x1x1xf32> -> vector<2x1x1xf32>
    %391 = vector.broadcast %390 : vector<2x1x1xf32> to vector<2x16x1xf32>
    %392 = arith.mulf %387, %391 : vector<2x16x1xf32>
    %393 = vector.broadcast %392 : vector<2x16x1xf32> to vector<2x16x32xf32>
    %394 = arith.mulf %393, %374 : vector<2x16x32xf32>
    %cst_203 = arith.constant dense<0.000000e+00> : vector<2x32xf32>
    %395 = vector.multi_reduction <add>, %394, %cst_203 [1] : vector<2x16x32xf32> to vector<2x32xf32>
    %c0_204 = arith.constant 0 : index
    %c0_205 = arith.constant 0 : index
    %396 = vector.load %arg20[%c0_204, %c0_205] : memref<32x16xf32, #tpu.memory_space<vmem>>, vector<32x16xf32>
    %cst_206 = arith.constant dense<0.000000e+00> : vector<2x16xf32>
    %397 = tpu.matmul %395, %396, %cst_206 {dimension_numbers = #tpu.dot_dimension_numbers<[1], [0], [0], [1], [0, 0, 1, 1], [], []>} : vector<2x32xf32>, vector<32x16xf32>, vector<2x16xf32> -> vector<2x16xf32>
    %c0_207 = arith.constant 0 : index
    %c0_208 = arith.constant 0 : index
    %398 = vector.load %arg21[%c0_207, %c0_208] : memref<1x16xf32, #tpu.memory_space<vmem>>, vector<1x16xf32>
    %399 = vector.broadcast %398 : vector<1x16xf32> to vector<2x16xf32>
    %400 = arith.addf %397, %399 : vector<2x16xf32>
    %c0_209 = arith.constant 0 : index
    %c0_210 = arith.constant 0 : index
    %401 = vector.load %arg22[%c0_209, %c0_210] : memref<2x16xf32, #tpu.memory_space<vmem>>, vector<2x16xf32>
    tpu.vector_store %arg22[%c0_209, %c0_210], %400 {strides = array<i32>} : memref<2x16xf32, #tpu.memory_space<vmem>>, vector<2x16xf32>,
    return
  }
}

</mosaic_0001>

<bundles_post_ra>
// kernel: cct_forward.1
= control target key start
LH: loop header
LB: loop body
LE: loop exit
PB: predicated region body
PF: predicated region fallthrough
CT: control target
= control target key end

     0   :  { %s7127_s0 = inlined_call_operand.vmem [shape: f32[128,256], index: 0, kind: input, shape index: {}]   ;;  %s7128_s1 = inlined_call_operand.vmem [shape: f32[256,32], index: 1, kind: input, shape index: {}]   ;;  %s7129_s2 = inlined_call_operand.vmem [shape: f32[16,32], index: 2, kind: input, shape index: {}]   ;;  %s7130_s3 = inlined_call_operand.vmem [shape: f32[2,1,32], index: 3, kind: input, shape index: {}]   ;;  %s7131_s4 = inlined_call_operand.vmem [shape: f32[2,1,32], index: 4, kind: input, shape index: {}]   ;;  %s7132_s5 = inlined_call_operand.vmem [shape: f32[2,4,32,8], index: 5, kind: input, shape index: {}]   ;;  %s7133_s6 = inlined_call_operand.vmem [shape: f32[2,4,32,8], index: 6, kind: input, shape index: {}]   ;;  %s7134_s7 = inlined_call_operand.vmem [shape: f32[2,4,32,8], index: 7, kind: input, shape index: {}]   ;;  %s7135_s8 = inlined_call_operand.vmem [shape: f32[2,4,8,32], index: 8, kind: input, shape index: {}]   ;;  %s7136_s9 = inlined_call_operand.vmem [shape: f32[2,1,32], index: 9, kind: input, shape index: {}]   ;;  %s7137_s10 = inlined_call_operand.vmem [shape: f32[2,1,32], index: 10, kind: input, shape index: {}]   ;;  %s7138_s11 = inlined_call_operand.vmem [shape: f32[2,1,32], index: 11, kind: input, shape index: {}]   ;;  %s7139_s12 = inlined_call_operand.vmem [shape: f32[2,32,128], index: 12, kind: input, shape index: {}]   ;;  %s7140_s13 = inlined_call_operand.vmem [shape: f32[2,1,128], index: 13, kind: input, shape index: {}]   ;;  %s7141_s14 = inlined_call_operand.vmem [shape: f32[2,128,32], index: 14, kind: input, shape index: {}]   ;;  %s7142_s15 = inlined_call_operand.vmem [shape: f32[2,1,32], index: 15, kind: input, shape index: {}]   ;;  %s7143_s16 = inlined_call_operand.vmem [shape: f32[1,32], index: 16, kind: input, shape index: {}]   ;;  %s7144_s17 = inlined_call_operand.vmem [shape: f32[1,32], index: 17, kind: input, shape index: {}]   ;;  %s7145_s18 = inlined_call_operand.vmem [shape: f32[1,1,32], index: 18, kind: input, shape index: {}]   ;;  %s7146_s19 = inlined_call_operand.<no memory space> [shape: f32[1,1,1], index: 19, kind: input, shape index: {}]   ;;  %s7147_s20 = inlined_call_operand.vmem [shape: f32[32,16], index: 20, kind: input, shape index: {}]   ;;  %s7148_s21 = inlined_call_operand.vmem [shape: f32[1,16], index: 21, kind: input, shape index: {}]   ;;  %s7149_s22 = inlined_call_operand.hbm [shape: f32[2,16], index: 22, kind: output, shape index: {}]  }
   0x1   :  { %7157 = sst [smem:[#allocation6_spill]] %s7127_s0  ;;  %v27_v0 = vstv %s7146_s19 }
   0x2   :  { %7158 = sst [smem:[#allocation7_spill]] %s7128_s1  ;;  %28 = vst [vmem:[#allocation2] sm:$0x1] %v27_v0 }
   0x3   :  { %7159 = sst [smem:[#allocation8_spill]] %s7129_s2 }
   0x4   :  { %7160 = sst [smem:[#allocation9_spill]] %s7130_s3 }
   0x5   :  { %7161 = sst [smem:[#allocation10_spill]] %s7131_s4 }
   0x6   :  { %7162 = sst [smem:[#allocation11_spill]] %s7132_s5 }
   0x7   :  { %7163 = sst [smem:[#allocation12_spill]] %s7133_s6 }
   0x8   :  { %s7164_s4 = sld [smem:[#allocation7_spill]] }
   0xe   :  { %v121_v1 = vld [vmem:[%s7164_s4 + $0x78] sm:$0xff]  ;;  %v120_v3 = vld [vmem:[%s7164_s4 + $0x70] sm:$0xff]  ;;  %v119_v5 = vld [vmem:[%s7164_s4 + $0x68] sm:$0xff] }
   0xf   :  { %v137_v2 = vld [vmem:[%s7164_s4 + $0xf8] sm:$0xff]  ;;  %138 = vmatpush.msra.mxu0 %v121_v1  ;;  %v136_v4 = vld [vmem:[%s7164_s4 + $0xf0] sm:$0xff]  ;;  %v135_v6 = vld [vmem:[%s7164_s4 + $0xe8] sm:$0xff] }
  0x10   :  { %203 = vmatpush.msra.mxu1 %v137_v2  ;;  %v118_v7 = vld [vmem:[%s7164_s4 + $0x60] sm:$0xff]  ;;  %v117_v9 = vld [vmem:[%s7164_s4 + $0x58] sm:$0xff]  ;;  %v116_v11 = vld [vmem:[%s7164_s4 + $0x50] sm:$0xff] }
  0x11   :  { %139 = vmatpush.msra.mxu0 %v120_v3  ;;  %v134_v8 = vld [vmem:[%s7164_s4 + $0xe0] sm:$0xff]  ;;  %v133_v10 = vld [vmem:[%s7164_s4 + $0xd8] sm:$0xff]  ;;  %v132_v12 = vld [vmem:[%s7164_s4 + $0xd0] sm:$0xff] }
  0x12   :  { %204 = vmatpush.msra.mxu1 %v136_v4  ;;  %v115_v13 = vld [vmem:[%s7164_s4 + $0x48] sm:$0xff]  ;;  %v114_v15 = vld [vmem:[%s7164_s4 + $0x40] sm:$0xff]  ;;  %v113_v17 = vld [vmem:[%s7164_s4 + $0x38] sm:$0xff] }
  0x13   :  { %140 = vmatpush.msra.mxu0 %v119_v5  ;;  %v131_v14 = vld [vmem:[%s7164_s4 + $0xc8] sm:$0xff]  ;;  %v130_v16 = vld [vmem:[%s7164_s4 + $0xc0] sm:$0xff]  ;;  %v129_v18 = vld [vmem:[%s7164_s4 + $0xb8] sm:$0xff] }
  0x14   :  { %205 = vmatpush.msra.mxu1 %v135_v6  ;;  %v112_v19 = vld [vmem:[%s7164_s4 + $0x30] sm:$0xff]  ;;  %v111_v21 = vld [vmem:[%s7164_s4 + $0x28] sm:$0xff] }
  0x15   :  { %141 = vmatpush.msra.mxu0 %v118_v7  ;;  %v128_v20 = vld [vmem:[%s7164_s4 + $0xb0] sm:$0xff]  ;;  %v127_v22 = vld [vmem:[%s7164_s4 + $0xa8] sm:$0xff] }
  0x16   :  { %206 = vmatpush.msra.mxu1 %v134_v8 }
  0x17   :  { %142 = vmatpush.msra.mxu0 %v117_v9 }
  0x18   :  { %207 = vmatpush.msra.mxu1 %v133_v10 }
  0x19   :  { %143 = vmatpush.msra.mxu0 %v116_v11 }
  0x1a   :  { %208 = vmatpush.msra.mxu1 %v132_v12 }
  0x1b   :  { %144 = vmatpush.msra.mxu0 %v115_v13 }
  0x1c   :  { %209 = vmatpush.msra.mxu1 %v131_v14 }
  0x1d   :  { %145 = vmatpush.msra.mxu0 %v114_v15 }
  0x1e   :  { %210 = vmatpush.msra.mxu1 %v130_v16 }
  0x1f   :  { %146 = vmatpush.msra.mxu0 %v113_v17 }
  0x20   :  { %211 = vmatpush.msra.mxu1 %v129_v18 }
  0x21   :  { %147 = vmatpush.msra.mxu0 %v112_v19 }
  0x22   :  { %212 = vmatpush.msra.mxu1 %v128_v20 }
  0x23   :  { %29 = vsyncpa [#allocation4], 0  ;;  %v110_v23 = vld [vmem:[%s7164_s4 + $0x20] sm:$0xff]  ;;  %148 = vmatpush.msra.mxu0 %v111_v21  ;;  %v109_v25 = vld [vmem:[%s7164_s4 + $0x18] sm:$0xff]  ;;  %s7165_s24 = sld [smem:[#allocation6_spill]]  ;;  %vm284_vm0 = vcmask 261120  }
  0x24   :  { %v126_v24 = vld [vmem:[%s7164_s4 + $0xa0] sm:$0xff]  ;;  %213 = vmatpush.msra.mxu1 %v127_v22  ;;  %v125_v26 = vld [vmem:[%s7164_s4 + $0x98] sm:$0xff]  ;;  %v108_v27 = vld [vmem:[%s7164_s4 + $0x10] sm:$0xff]  ;;  %vm291_vm1 = vcmask 254976   ;;  %vm306_vm2 = vcmask 257025   ;;  %vm321_vm3 = vcmask 259075  }
  0x25   :  { %149 = vmatpush.msra.mxu0 %v110_v23  ;;  %v124_v28 = vld [vmem:[%s7164_s4 + $0x90] sm:$0xff]  ;;  %v107_v29 = vld [vmem:[%s7164_s4 + $0x8] sm:$0xff]  ;;  %v106_v31 = vld [vmem:[%s7164_s4] sm:$0xff]  ;;  %vm336_vm4 = vcmask 261125   ;;  %vm543_vm5 = vcmask 1040384   ;;  %vm546_vm6 = vcmask 1041408  }
  0x26   :  { %214 = vmatpush.msra.mxu1 %v126_v24  ;;  %v123_v30 = vld [vmem:[%s7164_s4 + $0x88] sm:$0xff]  ;;  %v122_v32 = vld [vmem:[%s7164_s4 + $0x80] sm:$0xff]  ;;  %vm549_vm7 = vcmask 1042432   ;;  %vm552_vm8 = vcmask 1043456   ;;  %vm555_vm9 = vcmask 1044480   ;;  %vm558_vm10 = vcmask 1045504  }
  0x27   :  { %150 = vmatpush.msra.mxu0 %v109_v25  ;;  %vm561_vm11 = vcmask 1046528   ;;  %s7166_s26 = sld [smem:[#allocation8_spill]] }
  0x28   :  { %215 = vmatpush.msra.mxu1 %v125_v26  ;;  %s7167_s28 = sld [smem:[#allocation11_spill]] }
  0x29   :  { %151 = vmatpush.msra.mxu0 %v108_v27  ;;  %v74_v33 = vld [vmem:[%s7165_s24] sm:$0xff]  ;;  %v75_v34 = vld [vmem:[%s7165_s24 + $0x8] sm:$0xff]  ;;  %v76_v35 = vld [vmem:[%s7165_s24 + $0x10] sm:$0xff]  ;;  %s7168_s0 = sld [smem:[#allocation9_spill]] }
  0x2a   :  { %216 = vmatpush.msra.mxu1 %v124_v28  ;;  %v77_v36 = vld [vmem:[%s7165_s24 + $0x18] sm:$0xff]  ;;  %v78_v37 = vld [vmem:[%s7165_s24 + $0x20] sm:$0xff]  ;;  %v79_v38 = vld [vmem:[%s7165_s24 + $0x28] sm:$0xff]  ;;  %s7169_s5 = sld [smem:[#allocation10_spill]] }
  0x2b   :  { %152 = vmatpush.msra.mxu0 %v107_v29  ;;  %v80_v39 = vld [vmem:[%s7165_s24 + $0x30] sm:$0xff]  ;;  %v81_v40 = vld [vmem:[%s7165_s24 + $0x38] sm:$0xff]  ;;  %v82_v41 = vld [vmem:[%s7165_s24 + $0x40] sm:$0xff]  ;;  %s7170_s2 = sld [smem:[#allocation12_spill]] }
  0x2c   :  { %217 = vmatpush.msra.mxu1 %v123_v30  ;;  %v83_v42 = vld [vmem:[%s7165_s24 + $0x48] sm:$0xff]  ;;  %v84_v43 = vld [vmem:[%s7165_s24 + $0x50] sm:$0xff]  ;;  %v85_v44 = vld [vmem:[%s7165_s24 + $0x58] sm:$0xff] }
  0x2d   :  { %153 = vmatpush.msra.mxu0 %v106_v31  ;;  %v86_v45 = vld [vmem:[%s7165_s24 + $0x60] sm:$0xff]  ;;  %v87_v46 = vld [vmem:[%s7165_s24 + $0x68] sm:$0xff]  ;;  %v88_v47 = vld [vmem:[%s7165_s24 + $0x70] sm:$0xff] }
  0x2e   :  { %218 = vmatpush.msra.mxu1 %v122_v32  ;;  %154 = vmatmul.f32.vlgmr.msra.gmra.mxu0 %v74_v33  ;;  %v89_v48 = vld [vmem:[%s7165_s24 + $0x78] sm:$0xff]  ;;  %v90_v49 = vld [vmem:[%s7165_s24 + $0x80] sm:$0xff]  ;;  %v91_v50 = vld [vmem:[%s7165_s24 + $0x88] sm:$0xff] }
  0x2f   :  { %219 = vmatmul.f32.vlgmr.msra.gmra.mxu1 %v75_v34  ;;  %v92_v51 = vld [vmem:[%s7165_s24 + $0x90] sm:$0xff]  ;;  %v93_v52 = vld [vmem:[%s7165_s24 + $0x98] sm:$0xff]  ;;  %v94_v53 = vld [vmem:[%s7165_s24 + $0xa0] sm:$0xff] }
  0x30   :  { %v95_v54 = vld [vmem:[%s7165_s24 + $0xa8] sm:$0xff]  ;;  %v96_v55 = vld [vmem:[%s7165_s24 + $0xb0] sm:$0xff]  ;;  %v97_v56 = vld [vmem:[%s7165_s24 + $0xb8] sm:$0xff] }
  0x31   :  { %v98_v57 = vld [vmem:[%s7165_s24 + $0xc0] sm:$0xff]  ;;  %v99_v58 = vld [vmem:[%s7165_s24 + $0xc8] sm:$0xff]  ;;  %v100_v59 = vld [vmem:[%s7165_s24 + $0xd0] sm:$0xff] }
  0x32   :  { %v101_v60 = vld [vmem:[%s7165_s24 + $0xd8] sm:$0xff]  ;;  %v102_v61 = vld [vmem:[%s7165_s24 + $0xe0] sm:$0xff]  ;;  %v103_v62 = vld [vmem:[%s7165_s24 + $0xe8] sm:$0xff] }
  0x33   :  { %v104_v63 = vld [vmem:[%s7165_s24 + $0xf0] sm:$0xff]  ;;  %v105_v0 = vld [vmem:[%s7165_s24 + $0xf8] sm:$0xff] }
  0x36   :  { %157 = vmatmul.f32.gmra.mxu0 %v76_v35 }
  0x37   :  { %222 = vmatmul.f32.gmra.mxu1 %v77_v36 }
  0x3e   :  { %160 = vmatmul.f32.gmra.mxu0 %v78_v37 }
  0x3f   :  { %225 = vmatmul.f32.gmra.mxu1 %v79_v38 }
  0x46   :  { %163 = vmatmul.f32.gmra.mxu0 %v80_v39 }
  0x47   :  { %228 = vmatmul.f32.gmra.mxu1 %v81_v40 }
  0x4e   :  { %166 = vmatmul.f32.gmra.mxu0 %v82_v41 }
  0x4f   :  { %231 = vmatmul.f32.gmra.mxu1 %v83_v42 }
  0x56   :  { %169 = vmatmul.f32.gmra.mxu0 %v84_v43 }
  0x57   :  { %234 = vmatmul.f32.gmra.mxu1 %v85_v44 }
  0x5e   :  { %172 = vmatmul.f32.gmra.mxu0 %v86_v45 }
  0x5f   :  { %237 = vmatmul.f32.gmra.mxu1 %v87_v46 }
  0x66   :  { %175 = vmatmul.f32.gmra.mxu0 %v88_v47 }
  0x67   :  { %240 = vmatmul.f32.gmra.mxu1 %v89_v48 }
  0x6e   :  { %178 = vmatmul.f32.gmra.mxu0 %v90_v49 }
  0x6f   :  { %243 = vmatmul.f32.gmra.mxu1 %v91_v50 }
  0x76   :  { %181 = vmatmul.f32.gmra.mxu0 %v92_v51 }
  0x77   :  { %246 = vmatmul.f32.gmra.mxu1 %v93_v52 }
  0x7e   :  { %184 = vmatmul.f32.gmra.mxu0 %v94_v53 }
  0x7f   :  { %249 = vmatmul.f32.gmra.mxu1 %v95_v54 }
  0x86   :  { %187 = vmatmul.f32.gmra.mxu0 %v96_v55 }
  0x87   :  { %252 = vmatmul.f32.gmra.mxu1 %v97_v56 }
  0x8e   :  { %190 = vmatmul.f32.gmra.mxu0 %v98_v57 }
  0x8f   :  { %255 = vmatmul.f32.gmra.mxu1 %v99_v58 }
  0x96   :  { %193 = vmatmul.f32.gmra.mxu0 %v100_v59 }
  0x97   :  { %258 = vmatmul.f32.gmra.mxu1 %v101_v60 }
  0x9e   :  { %196 = vmatmul.f32.gmra.mxu0 %v102_v61 }
  0x9f   :  { %261 = vmatmul.f32.gmra.mxu1 %v103_v62 }
  0xa6   :  { %199 = vmatmul.f32.gmra.mxu0 %v104_v63 }
  0xa7   :  { %264 = vmatmul.f32.gmra.mxu1 %v105_v0 }
  0xab   :  { %v155_v1 = vpop.f32.mrf.mxu0 }
  0xac   :  { %v220_v2 = vpop.f32.mrf.mxu1 }
  0xad   :  { %v221_v3 = vadd.f32 %v220_v2, %v155_v1 }
  0xaf   :  { %v268_v6 = vmax.f32 %v221_v3, 0.0 }
  0xb1   :  { %v285_v9 = vsel %vm284_vm0, %v268_v6, -inf }
  0xb3   :  { %v158_v4 = vpop.f32.mrf.mxu0 }
  0xb4   :  { %v223_v5 = vpop.f32.mrf.mxu1 }
  0xb5   :  { %v224_v7 = vadd.f32 %v223_v5, %v158_v4 }
  0xb7   :  { %v269_v8 = vmax.f32 %v224_v7, 0.0 }
  0xb9   :  { %v286_v10 = vsel %vm284_vm0, %v269_v8, -inf }
  0xba   :  { %v287_v11 = vmax.f32 %v285_v9, %v286_v10 }
  0xbb   :  { %v161_v15 = vpop.f32.mrf.mxu0 }
  0xbc   :  { %v292_v12 = vsel %vm291_vm1, %v287_v11, -inf  ;;  %v307_v13 = vsel %vm306_vm2, %v287_v11, -inf  ;;  %v322_v14 = vsel %vm321_vm3, %v287_v11, -inf  ;;  %v226_v16 = vpop.f32.mrf.mxu1  ;;  %v337_v22 = vsel %vm336_vm4, %v287_v11, -inf }
  0xbd   :  { %v293_v17 = vrot.slane %v292_v12, 4  ;;  %v308_v18 = vrot.slane %v307_v13, 4  ;;  %v323_v19 = vrot.slane %v322_v14, 4  ;;  %v227_v24 = vadd.f32 %v226_v16, %v161_v15 }
  0xbe   :  { %v338_v29 = vrot.slane %v337_v22, 4 }
  0xbf   :  { %v294_v20 = vmax.f32 %v292_v12, %v293_v17  ;;  %v309_v21 = vmax.f32 %v307_v13, %v308_v18  ;;  %v324_v23 = vmax.f32 %v322_v14, %v323_v19  ;;  %v270_v32 = vmax.f32 %v227_v24, 0.0 }
  0xc0   :  { %v339_v36 = vmax.f32 %v337_v22, %v338_v29 }
  0xc1   :  { %v295_v27 = vrot.slane %v294_v20, 2  ;;  %v310_v28 = vrot.slane %v309_v21, 2  ;;  %v325_v31 = vrot.slane %v324_v23, 2  ;;  %v351_v40 = vsel %vm284_vm0, %v270_v32, -inf }
  0xc2   :  { %v340_v45 = vrot.slane %v339_v36, 2 }
  0xc3   :  { %v164_v25 = vpop.f32.mrf.mxu0  ;;  %v296_v34 = vmax.f32 %v294_v20, %v295_v27  ;;  %v311_v35 = vmax.f32 %v309_v21, %v310_v28  ;;  %v326_v38 = vmax.f32 %v324_v23, %v325_v31 }
  0xc4   :  { %v229_v26 = vpop.f32.mrf.mxu1  ;;  %v341_v57 = vmax.f32 %v339_v36, %v340_v45 }
  0xc5   :  { %v230_v30 = vadd.f32 %v229_v26, %v164_v25  ;;  %v297_v43 = vrot.slane %v296_v34, 1  ;;  %v312_v44 = vrot.slane %v311_v35, 1  ;;  %v327_v47 = vrot.slane %v326_v38, 1 }
  0xc6   :  { %v342_v6 = vrot.slane %v341_v57, 1 }
  0xc7   :  { %v271_v33 = vmax.f32 %v230_v30, 0.0  ;;  %v298_v55 = vmax.f32 %v296_v34, %v297_v43  ;;  %v313_v56 = vmax.f32 %v311_v35, %v312_v44  ;;  %v328_v0 = vmax.f32 %v326_v38, %v327_v47 }
  0xc8   :  { %v343_v19 = vmax.f32 %v341_v57, %v342_v6 }
  0xc9   :  { %v352_v37 = vsel %vm284_vm0, %v271_v33, -inf  ;;  %v544_v9 = vsel %vm543_vm5, %v298_v55, %v313_v56 }
  0xca   :  { %v353_v39 = vmax.f32 %v286_v10, %v352_v37  ;;  %v547_v18 = vsel %vm546_vm6, %v544_v9, %v328_v0 }
  0xcb   :  { %v167_v41 = vpop.f32.mrf.mxu0  ;;  %v550_v26 = vsel %vm549_vm7, %v547_v18, %v343_v19 }
  0xcc   :  { %v232_v42 = vpop.f32.mrf.mxu1  ;;  %v354_v46 = vmax.f32 %v353_v39, %v351_v40 }
  0xcd   :  { %v233_v62 = vadd.f32 %v232_v42, %v167_v41  ;;  %v5391_v42 = vld [vmem:[%s7166_s26] sm:$0xff] }
  0xce   :  { %v359_v48 = vsel %vm291_vm1, %v354_v46, -inf  ;;  %v373_v49 = vsel %vm306_vm2, %v354_v46, -inf  ;;  %v387_v50 = vsel %vm321_vm3, %v354_v46, -inf  ;;  %v401_v54 = vsel %vm336_vm4, %v354_v46, -inf }
  0xcf   :  { %v360_v51 = vrot.slane %v359_v48, 4  ;;  %v374_v52 = vrot.slane %v373_v49, 4  ;;  %v388_v53 = vrot.slane %v387_v50, 4  ;;  %v402_v58 = vrot.slane %v401_v54, 4 }
  0xd0   :  { %v272_v13 = vmax.f32 %v233_v62, 0.0 }
  0xd1   :  { %v361_v59 = vmax.f32 %v359_v48, %v360_v51  ;;  %v375_v60 = vmax.f32 %v373_v49, %v374_v52  ;;  %v389_v61 = vmax.f32 %v387_v50, %v388_v53  ;;  %v403_v63 = vmax.f32 %v401_v54, %v402_v58 }
  0xd2   :  { %v415_v25 = vsel %vm284_vm0, %v272_v13, -inf }
  0xd3   :  { %v362_v1 = vrot.slane %v361_v59, 2  ;;  %v170_v2 = vpop.f32.mrf.mxu0  ;;  %v376_v4 = vrot.slane %v375_v60, 2  ;;  %v390_v5 = vrot.slane %v389_v61, 2  ;;  %v404_v8 = vrot.slane %v403_v63, 2 }
  0xd4   :  { %v235_v3 = vpop.f32.mrf.mxu1 }
  0xd5   :  { %v236_v7 = vadd.f32 %v235_v3, %v170_v2  ;;  %v363_v10 = vmax.f32 %v361_v59, %v362_v1  ;;  %v377_v11 = vmax.f32 %v375_v60, %v376_v4  ;;  %v391_v12 = vmax.f32 %v389_v61, %v390_v5 }
  0xd6   :  { %v405_v17 = vmax.f32 %v403_v63, %v404_v8 }
  0xd7   :  { %v273_v14 = vmax.f32 %v236_v7, 0.0  ;;  %v364_v15 = vrot.slane %v363_v10, 1  ;;  %v378_v16 = vrot.slane %v377_v11, 1  ;;  %v392_v24 = vrot.slane %v391_v12, 1 }
  0xd8   :  { %v406_v30 = vrot.slane %v405_v17, 1 }
  0xd9   :  { %v416_v20 = vsel %vm284_vm0, %v273_v14, -inf  ;;  %v365_v22 = vmax.f32 %v363_v10, %v364_v15  ;;  %v379_v23 = vmax.f32 %v377_v11, %v378_v16  ;;  %v393_v36 = vmax.f32 %v391_v12, %v392_v24 }
  0xda   :  { %v417_v21 = vmax.f32 %v352_v37, %v416_v20  ;;  %v407_v39 = vmax.f32 %v405_v17, %v406_v30 }
  0xdb   :  { %v173_v28 = vpop.f32.mrf.mxu0  ;;  %v553_v31 = vsel %vm552_vm8, %v550_v26, %v365_v22 }
  0xdc   :  { %v418_v27 = vmax.f32 %v417_v21, %v415_v25  ;;  %v238_v29 = vpop.f32.mrf.mxu1  ;;  %v556_v32 = vsel %vm555_vm9, %v553_v31, %v379_v23 }
  0xdd   :  { %v559_v40 = vsel %vm558_vm10, %v556_v32, %v393_v36  ;;  %v239_v47 = vadd.f32 %v238_v29, %v173_v28 }
  0xde   :  { %v423_v33 = vsel %vm291_vm1, %v418_v27, -inf  ;;  %v437_v34 = vsel %vm306_vm2, %v418_v27, -inf  ;;  %v451_v35 = vsel %vm321_vm3, %v418_v27, -inf  ;;  %v465_v45 = vsel %vm336_vm4, %v418_v27, -inf }
  0xdf   :  { %v424_v37 = vrot.slane %v423_v33, 4  ;;  %v438_v38 = vrot.slane %v437_v34, 4  ;;  %v452_v41 = vrot.slane %v451_v35, 4  ;;  %v562_v46 = vsel %vm561_vm11, %v559_v40, %v407_v39 }
  0xe0   :  { %v5396_v48 = vadd.f32 %v5391_v42, %v562_v46  ;;  %v466_v52 = vrot.slane %v465_v45, 4  ;;  %v274_v57 = vmax.f32 %v239_v47, 0.0 }
  0xe1   :  { %v425_v43 = vmax.f32 %v423_v33, %v424_v37  ;;  %v439_v44 = vmax.f32 %v437_v34, %v438_v38  ;;  %v453_v51 = vmax.f32 %v451_v35, %v452_v41 }
  0xe2   :  { %v586_v55 = vsel %vm284_vm0, %v5396_v48, 0.0  ;;  %v467_v62 = vmax.f32 %v465_v45, %v466_v52  ;;  %v479_v1 = vsel %vm284_vm0, %v274_v57, -inf }
  0xe3   :  { %v176_v49 = vpop.f32.mrf.mxu0  ;;  %v426_v53 = vrot.slane %v425_v43, 2  ;;  %v440_v54 = vrot.slane %v439_v44, 2  ;;  %587 = vadd.xlane.f32.xlu0 %v586_v55  ;;  %v454_v59 = vrot.slane %v453_v51, 2 }
  0xe4   :  { %v241_v50 = vpop.f32.mrf.mxu1  ;;  %v468_v8 = vrot.slane %v467_v62, 2 }
  0xe5   :  { %v242_v56 = vadd.f32 %v241_v50, %v176_v49  ;;  %v427_v60 = vmax.f32 %v425_v43, %v426_v53  ;;  %v441_v61 = vmax.f32 %v439_v44, %v440_v54  ;;  %v455_v4 = vmax.f32 %v453_v51, %v454_v59 }
  0xe6   :  { %v469_v25 = vmax.f32 %v467_v62, %v468_v8 }
  0xe7   :  { %v275_v58 = vmax.f32 %v242_v56, 0.0  ;;  %v428_v6 = vrot.slane %v427_v60, 1  ;;  %v442_v7 = vrot.slane %v441_v61, 1  ;;  %v456_v17 = vrot.slane %v455_v4, 1 }
  0xe8   :  { %v470_v37 = vrot.slane %v469_v25, 1 }
  0xe9   :  { %v480_v63 = vsel %vm284_vm0, %v275_v58, -inf  ;;  %v429_v23 = vmax.f32 %v427_v60, %v428_v6  ;;  %v443_v24 = vmax.f32 %v441_v61, %v442_v7  ;;  %v457_v33 = vmax.f32 %v455_v4, %v456_v17 }
  0xea   :  { %v481_v0 = vmax.f32 %v416_v20, %v480_v63  ;;  %v471_v51 = vmax.f32 %v469_v25, %v470_v37 }
  0xeb   :  { %v179_v2 = vpop.f32.mrf.mxu0  ;;  %v564_v40 = vsel %vm543_vm5, %v429_v23, %v443_v24 }
  0xec   :  { %v244_v3 = vpop.f32.mrf.mxu1  ;;  %v482_v5 = vmax.f32 %v481_v0, %v479_v1  ;;  %v566_v50 = vsel %vm546_vm6, %v564_v40, %v457_v33 }
  0xed   :  { %v245_v18 = vadd.f32 %v244_v3, %v179_v2  ;;  %v568_v61 = vsel %vm549_vm7, %v566_v50, %v471_v51 }
  0xee   :  { %v487_v9 = vsel %vm291_vm1, %v482_v5, -inf  ;;  %v501_v10 = vsel %vm306_vm2, %v482_v5, -inf  ;;  %v515_v11 = vsel %vm321_vm3, %v482_v5, -inf  ;;  %v529_v12 = vsel %vm336_vm4, %v482_v5, -inf }
  0xef   :  { %v488_v13 = vrot.slane %v487_v9, 4  ;;  %v502_v14 = vrot.slane %v501_v10, 4  ;;  %v516_v15 = vrot.slane %v515_v11, 4  ;;  %v530_v16 = vrot.slane %v529_v12, 4 }
  0xf0   :  { %v276_v31 = vmax.f32 %v245_v18, 0.0 }
  0xf1   :  { %v489_v19 = vmax.f32 %v487_v9, %v488_v13  ;;  %v503_v20 = vmax.f32 %v501_v10, %v502_v14  ;;  %v517_v21 = vmax.f32 %v515_v11, %v516_v15  ;;  %v531_v22 = vmax.f32 %v529_v12, %v530_v16  ;;  %v5421_v9 = vld [vmem:[%s7166_s26 + $0x8] sm:$0xff] }
  0xf2   :  { %v288_v44 = vsel %vm284_vm0, %v276_v31, -inf }
  0xf3   :  { %v490_v26 = vrot.slane %v489_v19, 2  ;;  %v504_v27 = vrot.slane %v503_v20, 2  ;;  %v182_v28 = vpop.f32.mrf.mxu0  ;;  %v518_v30 = vrot.slane %v517_v21, 2  ;;  %v532_v36 = vrot.slane %v531_v22, 2 }
  0xf4   :  { %v247_v29 = vpop.f32.mrf.mxu1 }
  0xf5   :  { %v248_v32 = vadd.f32 %v247_v29, %v182_v28  ;;  %v491_v34 = vmax.f32 %v489_v19, %v490_v26  ;;  %v505_v35 = vmax.f32 %v503_v20, %v504_v27  ;;  %v519_v39 = vmax.f32 %v517_v21, %v518_v30 }
  0xf6   :  { %v533_v49 = vmax.f32 %v531_v22, %v532_v36 }
  0xf7   :  { %v277_v38 = vmax.f32 %v248_v32, 0.0  ;;  %v492_v41 = vrot.slane %v491_v34, 1  ;;  %v506_v43 = vrot.slane %v505_v35, 1  ;;  %v520_v52 = vrot.slane %v519_v39, 1 }
  0xf8   :  { %v534_v62 = vrot.slane %v533_v49, 1 }
  0xf9   :  { %v289_v45 = vsel %vm284_vm0, %v277_v38, -inf  ;;  %v493_v47 = vmax.f32 %v491_v34, %v492_v41  ;;  %v507_v58 = vmax.f32 %v505_v35, %v506_v43  ;;  %v521_v1 = vmax.f32 %v519_v39, %v520_v52 }
  0xfa   :  { %v290_v46 = vmax.f32 %v288_v44, %v289_v45  ;;  %v535_v6 = vmax.f32 %v533_v49, %v534_v62 }
  0xfb   :  { %v185_v56 = vpop.f32.mrf.mxu0  ;;  %v570_v63 = vsel %vm552_vm8, %v568_v61, %v493_v47 }
  0xfc   :  { %v299_v53 = vsel %vm291_vm1, %v290_v46, -inf  ;;  %v314_v54 = vsel %vm306_vm2, %v290_v46, -inf  ;;  %v329_v55 = vsel %vm321_vm3, %v290_v46, -inf  ;;  %v250_v57 = vpop.f32.mrf.mxu1  ;;  %v572_v2 = vsel %vm555_vm9, %v570_v63, %v507_v58 }
  0xfd   :  { %v300_v59 = vrot.slane %v299_v53, 4  ;;  %v315_v60 = vrot.slane %v314_v54, 4  ;;  %v330_v0 = vrot.slane %v329_v55, 4  ;;  %v344_v5 = vsel %vm336_vm4, %v290_v46, -inf }
  0xfe   :  { %v574_v7 = vsel %vm558_vm10, %v572_v2, %v521_v1  ;;  %v251_v10 = vadd.f32 %v250_v57, %v185_v56  ;;  %v345_v16 = vrot.slane %v344_v5, 4 }
  0xff   :  { %v301_v3 = vmax.f32 %v299_v53, %v300_v59  ;;  %v316_v4 = vmax.f32 %v314_v54, %v315_v60  ;;  %v331_v8 = vmax.f32 %v329_v55, %v330_v0  ;;  %v576_v11 = vsel %vm561_vm11, %v574_v7, %v535_v6 }
 0x100   :  { %v5425_v17 = vadd.f32 %v5421_v9, %v576_v11  ;;  %v278_v20 = vmax.f32 %v251_v10, 0.0  ;;  %v346_v25 = vmax.f32 %v344_v5, %v345_v16 }
 0x101   :  { %v302_v14 = vrot.slane %v301_v3, 2  ;;  %v317_v15 = vrot.slane %v316_v4, 2  ;;  %v332_v19 = vrot.slane %v331_v8, 2 }
 0x102   :  { %v589_v21 = vsel %vm284_vm0, %v5425_v17, 0.0  ;;  %v355_v29 = vsel %vm284_vm0, %v278_v20, -inf  ;;  %v347_v34 = vrot.slane %v346_v25, 2 }
 0x103   :  { %v188_v12 = vpop.f32.mrf.mxu0  ;;  %v303_v23 = vmax.f32 %v301_v3, %v302_v14  ;;  %v318_v24 = vmax.f32 %v316_v4, %v317_v15  ;;  %590 = vadd.xlane.f32.xlu0 %v589_v21  ;;  %v333_v27 = vmax.f32 %v331_v8, %v332_v19 }
 0x104   :  { %v253_v13 = vpop.f32.mrf.mxu1  ;;  %v348_v47 = vmax.f32 %v346_v25, %v347_v34 }
 0x105   :  { %v254_v18 = vadd.f32 %v253_v13, %v188_v12  ;;  %v304_v32 = vrot.slane %v303_v23, 1  ;;  %v319_v33 = vrot.slane %v318_v24, 1  ;;  %v334_v36 = vrot.slane %v333_v27, 1 }
 0x106   :  { %v349_v61 = vrot.slane %v348_v47, 1 }
 0x107   :  { %v279_v22 = vmax.f32 %v254_v18, 0.0  ;;  %v320_v46 = vmax.f32 %v318_v24, %v319_v33  ;;  %v335_v55 = vmax.f32 %v333_v27, %v334_v36 }
 0x108   :  { %v350_v11 = vmax.f32 %v348_v47, %v349_v61 }
 0x109   :  { %v356_v26 = vsel %vm284_vm0, %v279_v22, -inf }
 0x10a   :  { %v357_v28 = vmax.f32 %v289_v45, %v356_v26  ;;  %v305_v45 = vmax.f32 %v303_v23, %v304_v32 }
 0x10b   :  { %v191_v30 = vpop.f32.mrf.mxu0 }
 0x10c   :  { %v256_v31 = vpop.f32.mrf.mxu1  ;;  %v358_v35 = vmax.f32 %v357_v28, %v355_v29  ;;  %v545_v0 = vsel %vm543_vm5, %v305_v45, %v320_v46 }
 0x10d   :  { %v257_v53 = vadd.f32 %v256_v31, %v191_v30  ;;  %v548_v10 = vsel %vm546_vm6, %v545_v0, %v335_v55 }
 0x10e   :  { %v366_v37 = vsel %vm291_vm1, %v358_v35, -inf  ;;  %v380_v38 = vsel %vm306_vm2, %v358_v35, -inf  ;;  %v394_v39 = vsel %vm321_vm3, %v358_v35, -inf  ;;  %v408_v44 = vsel %vm336_vm4, %v358_v35, -inf }
 0x10f   :  { %v367_v40 = vrot.slane %v366_v37, 4  ;;  %v381_v41 = vrot.slane %v380_v38, 4  ;;  %v395_v43 = vrot.slane %v394_v39, 4  ;;  %v409_v49 = vrot.slane %v408_v44, 4 }
 0x110   :  { %v280_v4 = vmax.f32 %v257_v53, 0.0  ;;  %v551_v19 = vsel %vm549_vm7, %v548_v10, %v350_v11 }
 0x111   :  { %v368_v50 = vmax.f32 %v366_v37, %v367_v40  ;;  %v382_v51 = vmax.f32 %v380_v38, %v381_v41  ;;  %v396_v52 = vmax.f32 %v394_v39, %v395_v43  ;;  %v410_v54 = vmax.f32 %v408_v44, %v409_v49 }
 0x112   :  { %v419_v18 = vsel %vm284_vm0, %v280_v4, -inf }
 0x113   :  { %v369_v56 = vrot.slane %v368_v50, 2  ;;  %v194_v57 = vpop.f32.mrf.mxu0  ;;  %v383_v59 = vrot.slane %v382_v51, 2  ;;  %v397_v60 = vrot.slane %v396_v52, 2  ;;  %v411_v63 = vrot.slane %v410_v54, 2 }
 0x114   :  { %v259_v58 = vpop.f32.mrf.mxu1 }
 0x115   :  { %v260_v62 = vadd.f32 %v259_v58, %v194_v57  ;;  %v370_v1 = vmax.f32 %v368_v50, %v369_v56  ;;  %v384_v2 = vmax.f32 %v382_v51, %v383_v59  ;;  %v398_v3 = vmax.f32 %v396_v52, %v397_v60 }
 0x116   :  { %v412_v8 = vmax.f32 %v410_v54, %v411_v63 }
 0x117   :  { %v281_v5 = vmax.f32 %v260_v62, 0.0  ;;  %v371_v6 = vrot.slane %v370_v1, 1  ;;  %v385_v7 = vrot.slane %v384_v2, 1  ;;  %v399_v16 = vrot.slane %v398_v3, 1 }
 0x118   :  { %v413_v23 = vrot.slane %v412_v8, 1 }
 0x119   :  { %v420_v12 = vsel %vm284_vm0, %v281_v5, -inf  ;;  %v372_v14 = vmax.f32 %v370_v1, %v371_v6  ;;  %v386_v15 = vmax.f32 %v384_v2, %v385_v7  ;;  %v400_v29 = vmax.f32 %v398_v3, %v399_v16 }
 0x11a   :  { %v421_v13 = vmax.f32 %v356_v26, %v420_v12  ;;  %v414_v33 = vmax.f32 %v412_v8, %v413_v23 }
 0x11b   :  { %v197_v21 = vpop.f32.mrf.mxu0  ;;  %v554_v24 = vsel %vm552_vm8, %v551_v19, %v372_v14 }
 0x11c   :  { %v422_v20 = vmax.f32 %v421_v13, %v419_v18  ;;  %v262_v22 = vpop.f32.mrf.mxu1  ;;  %v557_v25 = vsel %vm555_vm9, %v554_v24, %v386_v15 }
 0x11d   :  { %v560_v34 = vsel %vm558_vm10, %v557_v25, %v400_v29  ;;  %v263_v40 = vadd.f32 %v262_v22, %v197_v21 }
 0x11e   :  { %v430_v27 = vsel %vm291_vm1, %v422_v20, -inf  ;;  %v444_v28 = vsel %vm306_vm2, %v422_v20, -inf  ;;  %v458_v26 = vsel %vm321_vm3, %v422_v20, -inf  ;;  %v472_v38 = vsel %vm336_vm4, %v422_v20, -inf }
 0x11f   :  { %v431_v30 = vrot.slane %v430_v27, 4  ;;  %v445_v31 = vrot.slane %v444_v28, 4  ;;  %v459_v32 = vrot.slane %v458_v26, 4  ;;  %v563_v39 = vsel %vm561_vm11, %v560_v34, %v414_v33 }
 0x120   :  { %v5449_v41 = vadd.f32 %v5391_v42, %v563_v39  ;;  %v473_v47 = vrot.slane %v472_v38, 4  ;;  %v282_v52 = vmax.f32 %v263_v40, 0.0 }
 0x121   :  { %v432_v35 = vmax.f32 %v430_v27, %v431_v30  ;;  %v446_v36 = vmax.f32 %v444_v28, %v445_v31  ;;  %v460_v37 = vmax.f32 %v458_v26, %v459_v32 }
 0x122   :  { %v592_v50 = vsel %vm284_vm0, %v5449_v41, 0.0  ;;  %v474_v56 = vmax.f32 %v472_v38, %v473_v47  ;;  %v483_v59 = vsel %vm284_vm0, %v282_v52, -inf }
 0x123   :  { %v200_v43 = vpop.f32.mrf.mxu0  ;;  %v433_v45 = vrot.slane %v432_v35, 2  ;;  %v447_v46 = vrot.slane %v446_v36, 2  ;;  %v461_v49 = vrot.slane %v460_v37, 2  ;;  %593 = vadd.xlane.f32.xlu1 %v592_v50 }
 0x124   :  { %v265_v44 = vpop.f32.mrf.mxu1  ;;  %v475_v62 = vrot.slane %v474_v56, 2 }
 0x125   :  { %v266_v51 = vadd.f32 %v265_v44, %v200_v43  ;;  %v434_v54 = vmax.f32 %v432_v35, %v433_v45  ;;  %v448_v55 = vmax.f32 %v446_v36, %v447_v46  ;;  %v462_v57 = vmax.f32 %v460_v37, %v461_v49 }
 0x126   :  { %v5052_v46 = vmov 32.0  }
 0x127   :  { %v283_v53 = vmax.f32 %v266_v51, 0.0  ;;  %v435_v60 = vrot.slane %v434_v54, 1  ;;  %v449_v61 = vrot.slane %v448_v55, 1  ;;  %v463_v0 = vrot.slane %v462_v57, 1 }
 0x128   :  { %4812 = vrcp.f32 %v5052_v46 }
 0x129   :  { %v484_v42 = vsel %vm284_vm0, %v283_v53, -inf  ;;  %v436_v10 = vmax.f32 %v434_v54, %v435_v60  ;;  %v450_v11 = vmax.f32 %v448_v55, %v449_v61  ;;  %v464_v18 = vmax.f32 %v462_v57, %v463_v0 }
 0x12a   :  { %v485_v58 = vmax.f32 %v420_v12, %v484_v42  ;;  %v476_v12 = vmax.f32 %v474_v56, %v475_v62 }
 0x12b   :  { %v565_v24 = vsel %vm543_vm5, %v436_v10, %v450_v11  ;;  %v698_v11 = vld [vmem:[%s7167_s28 + $0x18] sm:$0xff] }
 0x12c   :  { %v486_v63 = vmax.f32 %v485_v58, %v483_v59  ;;  %v477_v23 = vrot.slane %v476_v12, 1  ;;  %v567_v32 = vsel %vm546_vm6, %v565_v24, %v464_v18  ;;  %735 = vmatpush.msra.mxu2 %v698_v11  ;;  %v5528_v18 = vld [vmem:[%s7134_s7 + $0x50] sm:$0xff]  ;;  %v695_v24 = vld [vmem:[%s7167_s28] sm:$0xff]  ;;  %v710_v11 = vld [vmem:[%s7167_s28 + $0x78] sm:$0xff] }
 0x12e   :  { %v494_v1 = vsel %vm291_vm1, %v486_v63, -inf  ;;  %v508_v2 = vsel %vm306_vm2, %v486_v63, -inf  ;;  %v522_v3 = vsel %vm321_vm3, %v486_v63, -inf  ;;  %v536_v4 = vsel %vm336_vm4, %v486_v63, -inf  ;;  %v4813_v50 = vpop.eup %4812 }
 0x12f   :  { %v495_v5 = vrot.slane %v494_v1, 4  ;;  %v509_v6 = vrot.slane %v508_v2, 4  ;;  %v523_v7 = vrot.slane %v522_v3, 4  ;;  %v537_v8 = vrot.slane %v536_v4, 4 }
 0x130   :  { %v478_v33 = vmax.f32 %v476_v12, %v477_v23  ;;  %v599_v51 = vmul.f32 32.0, %v4813_v50  ;;  %vm603_vm12 = vweird.f32 %v4813_v50  ;;  %v702_v12 = vld [vmem:[%s7167_s28 + $0x38] sm:$0xff]  ;;  %v5551_v23 = vld [vmem:[%s7134_s7 + $0x68] sm:$0xff] }
 0x131   :  { %v496_v13 = vmax.f32 %v494_v1, %v495_v5  ;;  %v510_v14 = vmax.f32 %v508_v2, %v509_v6  ;;  %v524_v15 = vmax.f32 %v522_v3, %v523_v7  ;;  %v538_v16 = vmax.f32 %v536_v4, %v537_v8  ;;  %764 = vmatpush.msra.mxu3 %v702_v12  ;;  %v705_v12 = vld [vmem:[%s7167_s28 + $0x50] sm:$0xff] }
 0x132   :  { %v569_v37 = vsel %vm549_vm7, %v567_v32, %v478_v33  ;;  %v600_v52 = vsub.f32 1.0, %v599_v51 }
 0x133   :  { %v497_v19 = vrot.slane %v496_v13, 2  ;;  %v511_v20 = vrot.slane %v510_v14, 2  ;;  %v525_v21 = vrot.slane %v524_v15, 2  ;;  %v539_v22 = vrot.slane %v538_v16, 2 }
 0x134   :  { %v601_v53 = vmul.f32 %v4813_v50, %v600_v52 }
 0x135   :  { %v498_v25 = vmax.f32 %v496_v13, %v497_v19  ;;  %v512_v27 = vmax.f32 %v510_v14, %v511_v20  ;;  %v526_v28 = vmax.f32 %v524_v15, %v525_v21  ;;  %v540_v26 = vmax.f32 %v538_v16, %v539_v22  ;;  %v5510_v13 = vld [vmem:[%s7134_s7 + $0x58] sm:$0xff]  ;;  %v697_v15 = vld [vmem:[%s7167_s28 + $0x10] sm:$0xff]  ;;  %v696_v20 = vld [vmem:[%s7167_s28 + $0x8] sm:$0xff] }
 0x136   :  { %v602_v54 = vadd.f32 %v4813_v50, %v601_v53  ;;  %v5515_v14 = vld [vmem:[%s7134_s7 + $0x78] sm:$0xff]  ;;  %1057 = vmatpush.msrb.mxu0 %v5510_v13  ;;  %v701_v16 = vld [vmem:[%s7167_s28 + $0x30] sm:$0xff]  ;;  %736 = vmatpush.msra.mxu2 %v697_v15  ;;  %v700_v21 = vld [vmem:[%s7167_s28 + $0x28] sm:$0xff] }
 0x137   :  { %v499_v29 = vrot.slane %v498_v25, 1  ;;  %v513_v30 = vrot.slane %v512_v27, 1  ;;  %v527_v31 = vrot.slane %v526_v28, 1  ;;  %v541_v34 = vrot.slane %v540_v26, 1  ;;  %1086 = vmatpush.msrb.mxu1 %v5515_v14  ;;  %765 = vmatpush.msra.mxu3 %v701_v16  ;;  %v5533_v19 = vld [vmem:[%s7134_s7 + $0x70] sm:$0xff]  ;;  %v5546_v22 = vld [vmem:[%s7134_s7 + $0x48] sm:$0xff] }
 0x138   :  { %v5471_v55 = vsel %vm603_vm12, %v4813_v50, %v602_v54  ;;  %1058 = vmatpush.msrb.mxu0 %v5528_v18  ;;  %737 = vmatpush.msra.mxu2 %v696_v20  ;;  %v704_v20 = vld [vmem:[%s7167_s28 + $0x48] sm:$0xff] }
 0x139   :  { %v500_v35 = vmax.f32 %v498_v25, %v499_v29  ;;  %v514_v36 = vmax.f32 %v512_v27, %v513_v30  ;;  %v528_v38 = vmax.f32 %v526_v28, %v527_v31  ;;  %v542_v40 = vmax.f32 %v540_v26, %v541_v34  ;;  %1087 = vmatpush.msrb.mxu1 %v5533_v19  ;;  %v699_v25 = vld [vmem:[%s7167_s28 + $0x20] sm:$0xff] }
 0x13a   :  { %766 = vmatpush.msra.mxu3 %v700_v21  ;;  %1059 = vmatpush.msrb.mxu0 %v5546_v22  ;;  %v5564_v27 = vld [vmem:[%s7134_s7 + $0x40] sm:$0xff]  ;;  %v708_v21 = vld [vmem:[%s7167_s28 + $0x68] sm:$0xff] }
 0x13b   :  { %v571_v39 = vsel %vm552_vm8, %v569_v37, %v500_v35  ;;  %1088 = vmatpush.msrb.mxu1 %v5551_v23  ;;  %v5569_v28 = vld [vmem:[%s7134_s7 + $0x60] sm:$0xff]  ;;  %738 = vmatpush.msra.mxu2 %v695_v24 }
 0x13c   :  { %v573_v43 = vsel %vm555_vm9, %v571_v39, %v514_v36  ;;  %767 = vmatpush.msra.mxu3 %v699_v25  ;;  %1060 = vmatpush.msrb.mxu0 %v5564_v27  ;;  %v5577_v37 = vld [vmem:[%s7168_s0] ss:$0 sm:$0xff] }
 0x13d   :  { %v575_v44 = vsel %vm558_vm10, %v573_v43, %v528_v38  ;;  %1089 = vmatpush.msrb.mxu1 %v5569_v28  ;;  %v5582_v39 = vld [vmem:[%s7169_s5] ss:$0 sm:$0xff]  ;;  %vm1103_vm10 = vcmask 64512  }
 0x13e   :  { %v577_v45 = vsel %vm561_vm11, %v575_v44, %v542_v40  ;;  %822 = vmatpush.msrb.mxu3 %v710_v11  ;;  %v703_v25 = vld [vmem:[%s7167_s28 + $0x40] sm:$0xff]  ;;  %vm1400_vm11 = vcmask 130048  }
 0x13f   :  { %v5467_v47 = vadd.f32 %v5421_v9, %v577_v45 }
 0x141   :  { %v595_v49 = vsel %vm284_vm0, %v5467_v47, 0.0 }
 0x142   :  { %596 = vadd.xlane.f32.xlu1 %v595_v49 }
 0x156   :  { %v588_v56 = vpop.xlane.xlu0 %587 }
 0x157   :  { %v605_v57 = vmul.f32 %v5471_v55, %v588_v56 }
 0x159   :  { %v5475_v42 = vsub.f32 %v5396_v48, %v605_v57 }
 0x15b   :  { %v613_v9 = vmul.f32 %v5475_v42, %v5475_v42 }
 0x15d   :  { %v617_v58 = vsel %vm284_vm0, %v613_v9, 0.0 }
 0x15e   :  { %618 = vadd.xlane.f32.xlu2 %v617_v58 }
 0x176   :  { %v591_v59 = vpop.xlane.xlu0 %590 }
 0x177   :  { %v606_v60 = vmul.f32 %v5471_v55, %v591_v59 }
 0x179   :  { %v5482_v61 = vsub.f32 %v5425_v17, %v606_v60 }
 0x17b   :  { %v614_v62 = vmul.f32 %v5482_v61, %v5482_v61 }
 0x17d   :  { %v620_v63 = vsel %vm284_vm0, %v614_v62, 0.0 }
 0x17e   :  { %621 = vadd.xlane.f32.xlu2 %v620_v63 }
 0x196   :  { %v594_v0 = vpop.xlane.xlu1 %593 }
 0x197   :  { %v607_v1 = vmul.f32 %v5471_v55, %v594_v0 }
 0x199   :  { %v5489_v2 = vsub.f32 %v5449_v41, %v607_v1 }
 0x19b   :  { %v615_v3 = vmul.f32 %v5489_v2, %v5489_v2 }
 0x19d   :  { %v623_v4 = vsel %vm284_vm0, %v615_v3, 0.0 }
 0x19e   :  { %624 = vadd.xlane.f32.xlu0 %v623_v4 }
 0x1b5   :  { %v597_v5 = vpop.xlane.xlu1 %596 }
 0x1b6   :  { %v608_v6 = vmul.f32 %v5471_v55, %v597_v5 }
 0x1b8   :  { %v5496_v7 = vsub.f32 %v5467_v47, %v608_v6 }
 0x1ba   :  { %v616_v8 = vmul.f32 %v5496_v7, %v5496_v7 }
 0x1bc   :  { %v626_v10 = vsel %vm284_vm0, %v616_v8, 0.0 }
 0x1bd   :  { %627 = vadd.xlane.f32.xlu1 %v626_v10  ;;  %v706_v10 = vld [vmem:[%s7167_s28 + $0x58] sm:$0xff] }
 0x1be   :  { %793 = vmatpush.msrb.mxu2 %v706_v10 }
 0x1c0   :  { %794 = vmatpush.msrb.mxu2 %v705_v12 }
 0x1c2   :  { %795 = vmatpush.msrb.mxu2 %v704_v20 }
 0x1c4   :  { %796 = vmatpush.msrb.mxu2 %v703_v25 }
 0x1d1   :  { %v619_v26 = vpop.xlane.xlu2 %618 }
 0x1d2   :  { %v629_v29 = vmul.f32 %v619_v26, %v5471_v55  ;;  %v707_v26 = vld [vmem:[%s7167_s28 + $0x60] sm:$0xff] }
 0x1d4   :  { %v633_v30 = vadd.f32 1e-05, %v629_v29 }
 0x1d6   :  { %4814 = vrsqrt.f32 %v633_v30  ;;  %vm643_vm14 = vweird.f32 %v633_v30 }
 0x1dc   :  { %v4815_v31 = vpop.eup %4814 }
 0x1dd   :  { %v638_v32 = vmul.f32 %v4815_v31, %v633_v30  ;;  %vm644_vm13 = vweird.f32 %v4815_v31 }
 0x1de   :  { %vm645_vm15 = vmor %vm643_vm14, %vm644_vm13 }
 0x1df   :  { %v639_v33 = vmul.f32 %v4815_v31, %v638_v32 }
 0x1e1   :  { %v640_v34 = vmul.f32 0.5, %v639_v33 }
 0x1e3   :  { %v641_v35 = vsub.f32 1.5, %v640_v34 }
 0x1e5   :  { %v642_v36 = vmul.f32 %v4815_v31, %v641_v35 }
 0x1e7   :  { %v646_v38 = vsel %vm645_vm15, %v4815_v31, %v642_v36 }
 0x1e8   :  { %v677_v40 = vmul.f32 %v646_v38, %v5475_v42 }
 0x1ea   :  { %v684_v43 = vmul.f32 %v5577_v37, %v677_v40 }
 0x1ec   :  { %v5587_v44 = vadd.f32 %v5582_v39, %v684_v43 }
 0x1ee   :  { %4467 = vmatmul.msk.f32.vlgmr.msra.gmra.mxu2 %vm284_vm0, %v5587_v44  ;;  %4471 = vmatmul.msk.f32.vlgmr.msra.gmra.mxu3 %vm284_vm0, %v5587_v44 }
 0x1ef   :  { %4507 = vmatmul.msk.f32.vlgmr.msrb.gmra.mxu0 %vm284_vm0, %v5587_v44  ;;  %4511 = vmatmul.msk.f32.vlgmr.msrb.gmra.mxu1 %vm284_vm0, %v5587_v44 }
 0x1f1   :  { %v622_v45 = vpop.xlane.xlu2 %621 }
 0x1f2   :  { %v630_v46 = vmul.f32 %v622_v45, %v5471_v55  ;;  %v842_v45 = vld [vmem:[%s7170_s2 + $0x18] sm:$0xff] }
 0x1f3   :  { %867 = vmatpush.msra.mxu2 %v842_v45 }
 0x1f4   :  { %v634_v49 = vadd.f32 1e-05, %v630_v46  ;;  %v846_v46 = vld [vmem:[%s7170_s2 + $0x38] sm:$0xff] }
 0x1f6   :  { %4816 = vrsqrt.f32 %v634_v49  ;;  %vm653_vm2 = vweird.f32 %v634_v49 }
 0x1fc   :  { %v4817_v50 = vpop.eup %4816 }
 0x1fd   :  { %v648_v51 = vmul.f32 %v4817_v50, %v634_v49  ;;  %vm654_vm1 = vweird.f32 %v4817_v50  ;;  %v844_v49 = vld [vmem:[%s7170_s2 + $0x28] sm:$0xff] }
 0x1fe   :  { %vm655_vm3 = vmor %vm653_vm2, %vm654_vm1 }
 0x1ff   :  { %v649_v52 = vmul.f32 %v4817_v50, %v648_v51  ;;  %v843_v51 = vld [vmem:[%s7170_s2 + $0x20] sm:$0xff] }
 0x201   :  { %v650_v53 = vmul.f32 0.5, %v649_v52  ;;  %v850_v52 = vld [vmem:[%s7170_s2 + $0x58] sm:$0xff] }
 0x203   :  { %v651_v54 = vsub.f32 1.5, %v650_v53  ;;  %v854_v53 = vld [vmem:[%s7170_s2 + $0x78] sm:$0xff] }
 0x205   :  { %v652_v56 = vmul.f32 %v4817_v50, %v651_v54  ;;  %v849_v54 = vld [vmem:[%s7170_s2 + $0x50] sm:$0xff] }
 0x207   :  { %v656_v57 = vsel %vm655_vm3, %v4817_v50, %v652_v56  ;;  %v839_v50 = vld [vmem:[%s7170_s2] sm:$0xff]  ;;  %v853_v56 = vld [vmem:[%s7170_s2 + $0x70] sm:$0xff] }
 0x208   :  { %v678_v42 = vmul.f32 %v656_v57, %v5482_v61  ;;  %v848_v57 = vld [vmem:[%s7170_s2 + $0x48] sm:$0xff] }
 0x20a   :  { %v685_v9 = vmul.f32 %v5577_v37, %v678_v42  ;;  %v852_v42 = vld [vmem:[%s7170_s2 + $0x68] sm:$0xff] }
 0x20c   :  { %v5601_v58 = vadd.f32 %v5582_v39, %v685_v9  ;;  %v847_v9 = vld [vmem:[%s7170_s2 + $0x40] sm:$0xff] }
 0x20e   :  { %4468 = vmatmul.msk.f32.gmra.mxu2 %vm284_vm0, %v5601_v58  ;;  %4472 = vmatmul.msk.f32.gmra.mxu3 %vm284_vm0, %v5601_v58 }
 0x20f   :  { %4508 = vmatmul.msk.f32.gmra.mxu0 %vm284_vm0, %v5601_v58  ;;  %4512 = vmatmul.msk.f32.gmra.mxu1 %vm284_vm0, %v5601_v58 }
 0x211   :  { %v625_v59 = vpop.xlane.xlu0 %624 }
 0x212   :  { %v631_v60 = vmul.f32 %v625_v59, %v5471_v55  ;;  %v851_v59 = vld [vmem:[%s7170_s2 + $0x60] sm:$0xff] }
 0x214   :  { %v635_v61 = vadd.f32 1e-05, %v631_v60  ;;  %v974_v60 = vld [vmem:[%s7134_s7 + $0x18] sm:$0xff] }
 0x216   :  { %4818 = vrsqrt.f32 %v635_v61  ;;  %vm663_vm5 = vweird.f32 %v635_v61 }
 0x21c   :  { %v4819_v62 = vpop.eup %4818 }
 0x21d   :  { %v658_v63 = vmul.f32 %v4819_v62, %v635_v61  ;;  %vm664_vm4 = vweird.f32 %v4819_v62  ;;  %v978_v61 = vld [vmem:[%s7134_s7 + $0x38] sm:$0xff] }
 0x21e   :  { %vm665_vm6 = vmor %vm663_vm5, %vm664_vm4 }
 0x21f   :  { %v659_v0 = vmul.f32 %v4819_v62, %v658_v63  ;;  %v977_v63 = vld [vmem:[%s7134_s7 + $0x30] sm:$0xff] }
 0x221   :  { %v660_v1 = vmul.f32 0.5, %v659_v0  ;;  %v972_v0 = vld [vmem:[%s7134_s7 + $0x8] sm:$0xff] }
 0x223   :  { %v661_v3 = vsub.f32 1.5, %v660_v1  ;;  %v976_v1 = vld [vmem:[%s7134_s7 + $0x28] sm:$0xff] }
 0x225   :  { %v662_v4 = vmul.f32 %v4819_v62, %v661_v3  ;;  %v971_v3 = vld [vmem:[%s7134_s7] sm:$0xff] }
 0x227   :  { %v666_v5 = vsel %vm665_vm6, %v4819_v62, %v662_v4  ;;  %v973_v62 = vld [vmem:[%s7134_s7 + $0x10] sm:$0xff]  ;;  %v975_v4 = vld [vmem:[%s7134_s7 + $0x20] sm:$0xff] }
 0x228   :  { %v679_v6 = vmul.f32 %v666_v5, %v5489_v2  ;;  %v709_v2 = vld [vmem:[%s7167_s28 + $0x70] sm:$0xff] }
 0x229   :  { %823 = vmatpush.msrb.mxu3 %v709_v2 }
 0x22a   :  { %v686_v8 = vmul.f32 %v5577_v37, %v679_v6 }
 0x22b   :  { %824 = vmatpush.msrb.mxu3 %v708_v21 }
 0x22c   :  { %v5627_v15 = vadd.f32 %v5582_v39, %v686_v8 }
 0x22d   :  { %825 = vmatpush.msrb.mxu3 %v707_v26 }
 0x22e   :  { %4469 = vmatmul.msk.f32.gmra.mxu2 %vm284_vm0, %v5627_v15  ;;  %4473 = vmatmul.msk.f32.gmra.mxu3 %vm284_vm0, %v5627_v15 }
 0x22f   :  { %4509 = vmatmul.msk.f32.gmra.mxu0 %vm284_vm0, %v5627_v15  ;;  %4513 = vmatmul.msk.f32.gmra.mxu1 %vm284_vm0, %v5627_v15 }
 0x230   :  { %v628_v16 = vpop.xlane.xlu1 %627  ;;  %896 = vmatpush.msra.mxu3 %v846_v46 }
 0x231   :  { %v632_v24 = vmul.f32 %v628_v16, %v5471_v55 }
 0x233   :  { %v636_v29 = vadd.f32 1e-05, %v632_v24 }
 0x235   :  { %4820 = vrsqrt.f32 %v636_v29  ;;  %vm673_vm8 = vweird.f32 %v636_v29 }
 0x23b   :  { %v4821_v30 = vpop.eup %4820 }
 0x23c   :  { %v668_v31 = vmul.f32 %v4821_v30, %v636_v29  ;;  %vm674_vm7 = vweird.f32 %v4821_v30 }
 0x23d   :  { %vm675_vm9 = vmor %vm673_vm8, %vm674_vm7 }
 0x23e   :  { %v669_v32 = vmul.f32 %v4821_v30, %v668_v31 }
 0x240   :  { %v670_v33 = vmul.f32 0.5, %v669_v32 }
 0x242   :  { %v671_v34 = vsub.f32 1.5, %v670_v33 }
 0x244   :  { %v672_v35 = vmul.f32 %v4821_v30, %v671_v34 }
 0x246   :  { %v676_v36 = vsel %vm675_vm9, %v4821_v30, %v672_v35 }
 0x247   :  { %v680_v38 = vmul.f32 %v676_v36, %v5496_v7  ;;  %v841_v7 = vld [vmem:[%s7170_s2 + $0x10] sm:$0xff] }
 0x248   :  { %868 = vmatpush.msra.mxu2 %v841_v7 }
 0x249   :  { %v687_v40 = vmul.f32 %v5577_v37, %v680_v38  ;;  %v845_v37 = vld [vmem:[%s7170_s2 + $0x30] sm:$0xff] }
 0x24a   :  { %897 = vmatpush.msra.mxu3 %v845_v37 }
 0x24b   :  { %v5653_v43 = vadd.f32 %v5582_v39, %v687_v40  ;;  %v840_v39 = vld [vmem:[%s7170_s2 + $0x8] sm:$0xff] }
 0x24c   :  { %869 = vmatpush.msra.mxu2 %v840_v39  ;;  %898 = vmatpush.msra.mxu3 %v844_v49 }
 0x24d   :  { %4470 = vmatmul.msk.f32.gmra.mxu2 %vm284_vm0, %v5653_v43  ;;  %4474 = vmatmul.msk.f32.gmra.mxu3 %vm284_vm0, %v5653_v43 }
 0x24e   :  { %870 = vmatpush.msra.mxu2 %v839_v50  ;;  %899 = vmatpush.msra.mxu3 %v843_v51 }
 0x255   :  { %4475 = vmatmul.msk.f32.vlgmr.msrb.gmra.mxu2 %vm284_vm0, %v5587_v44  ;;  %4479 = vmatmul.msk.f32.vlgmr.msrb.gmra.mxu3 %vm284_vm0, %v5587_v44 }
 0x256   :  { %925 = vmatpush.msrb.mxu2 %v850_v52  ;;  %954 = vmatpush.msrb.mxu3 %v854_v53 }
 0x258   :  { %926 = vmatpush.msrb.mxu2 %v849_v54  ;;  %955 = vmatpush.msrb.mxu3 %v853_v56 }
 0x25a   :  { %927 = vmatpush.msrb.mxu2 %v848_v57  ;;  %956 = vmatpush.msrb.mxu3 %v852_v42 }
 0x25c   :  { %928 = vmatpush.msrb.mxu2 %v847_v9  ;;  %957 = vmatpush.msrb.mxu3 %v851_v59 }
 0x25d   :  { %4476 = vmatmul.msk.f32.gmra.mxu2 %vm284_vm0, %v5601_v58  ;;  %4480 = vmatmul.msk.f32.gmra.mxu3 %vm284_vm0, %v5601_v58 }
 0x265   :  { %4477 = vmatmul.msk.f32.gmra.mxu2 %vm284_vm0, %v5627_v15  ;;  %4481 = vmatmul.msk.f32.gmra.mxu3 %vm284_vm0, %v5627_v15 }
 0x26c   :  { %v1091_v45 = vpop.f32.mrf.mxu1 }
 0x26d   :  { %4478 = vmatmul.msk.f32.gmra.mxu2 %vm284_vm0, %v5653_v43  ;;  %4482 = vmatmul.msk.f32.gmra.mxu3 %vm284_vm0, %v5653_v43 }
 0x275   :  { %4483 = vmatmul.msk.f32.vlgmr.msra.gmra.mxu2 %vm284_vm0, %v5587_v44  ;;  %4487 = vmatmul.msk.f32.vlgmr.msra.gmra.mxu3 %vm284_vm0, %v5587_v44 }
 0x276   :  { %999 = vmatpush.msra.mxu2 %v974_v60  ;;  %1028 = vmatpush.msra.mxu3 %v978_v61 }
 0x278   :  { %1000 = vmatpush.msra.mxu2 %v973_v62  ;;  %1029 = vmatpush.msra.mxu3 %v977_v63 }
 0x27a   :  { %1001 = vmatpush.msra.mxu2 %v972_v0  ;;  %1030 = vmatpush.msra.mxu3 %v976_v1 }
 0x27c   :  { %1002 = vmatpush.msra.mxu2 %v971_v3  ;;  %1031 = vmatpush.msra.mxu3 %v975_v4 }
 0x27d   :  { %4484 = vmatmul.msk.f32.gmra.mxu2 %vm284_vm0, %v5601_v58  ;;  %4488 = vmatmul.msk.f32.gmra.mxu3 %vm284_vm0, %v5601_v58 }
 0x285   :  { %4485 = vmatmul.msk.f32.gmra.mxu2 %vm284_vm0, %v5627_v15  ;;  %4489 = vmatmul.msk.f32.gmra.mxu3 %vm284_vm0, %v5627_v15 }
 0x28c   :  { %v1094_v39 = vpop.f32.mrf.mxu1 }
 0x28d   :  { %4486 = vmatmul.msk.f32.gmra.mxu2 %vm284_vm0, %v5653_v43  ;;  %4490 = vmatmul.msk.f32.gmra.mxu3 %vm284_vm0, %v5653_v43 }
 0x295   :  { %4491 = vmatmul.msk.f32.vlgmr.msrb.gmra.mxu2 %vm284_vm0, %v5587_v44  ;;  %4495 = vmatmul.msk.f32.vlgmr.msrb.gmra.mxu3 %vm284_vm0, %v5587_v44 }
 0x296   :  { %4779 = vmatpush.msrb.mxu3 %v5510_v13  ;;  %4783 = vmatpush.msrb.mxu2 %v5515_v14  ;;  %v740_v13 = vpop.f32.mrf.mxu2  ;;  %v769_v14 = vpop.f32.mrf.mxu3 }
 0x298   :  { %4780 = vmatpush.msrb.mxu3 %v5528_v18  ;;  %4784 = vmatpush.msrb.mxu2 %v5533_v19 }
 0x29a   :  { %4781 = vmatpush.msrb.mxu3 %v5546_v22  ;;  %4785 = vmatpush.msrb.mxu2 %v5551_v23 }
 0x29c   :  { %4782 = vmatpush.msrb.mxu3 %v5564_v27  ;;  %4786 = vmatpush.msrb.mxu2 %v5569_v28 }
 0x29d   :  { %4492 = vmatmul.msk.f32.gmra.mxu2 %vm284_vm0, %v5601_v58  ;;  %4496 = vmatmul.msk.f32.gmra.mxu3 %vm284_vm0, %v5601_v58 }
 0x29e   :  { %v743_v18 = vpop.f32.mrf.mxu2  ;;  %v772_v19 = vpop.f32.mrf.mxu3 }
 0x2a5   :  { %4493 = vmatmul.msk.f32.gmra.mxu2 %vm284_vm0, %v5627_v15  ;;  %4497 = vmatmul.msk.f32.gmra.mxu3 %vm284_vm0, %v5627_v15 }
 0x2ac   :  { %v1097_v57 = vpop.f32.mrf.mxu1 }
 0x2ad   :  { %4494 = vmatmul.msk.f32.gmra.mxu2 %vm284_vm0, %v5653_v43  ;;  %4498 = vmatmul.msk.f32.gmra.mxu3 %vm284_vm0, %v5653_v43 }
 0x2b1   :  { %v746_v22 = vpop.f32.mrf.mxu2  ;;  %v775_v23 = vpop.f32.mrf.mxu3 }
 0x2b5   :  { %4499 = vmatmul.msk.f32.vlgmr.msra.gmra.mxu2 %vm284_vm0, %v5587_v44  ;;  %4503 = vmatmul.msk.f32.vlgmr.msra.gmra.mxu3 %vm284_vm0, %v5587_v44 }
 0x2bd   :  { %4500 = vmatmul.msk.f32.gmra.mxu2 %vm284_vm0, %v5601_v58  ;;  %4504 = vmatmul.msk.f32.gmra.mxu3 %vm284_vm0, %v5601_v58 }
 0x2c5   :  { %4501 = vmatmul.msk.f32.gmra.mxu2 %vm284_vm0, %v5627_v15  ;;  %4505 = vmatmul.msk.f32.gmra.mxu3 %vm284_vm0, %v5627_v15 }
 0x2cd   :  { %4502 = vmatmul.msk.f32.gmra.mxu2 %vm284_vm0, %v5653_v43  ;;  %4506 = vmatmul.msk.f32.gmra.mxu3 %vm284_vm0, %v5653_v43 }
 0x2d0   :  { %v749_v27 = vpop.f32.mrf.mxu2  ;;  %v778_v28 = vpop.f32.mrf.mxu3 }
 0x2d5   :  { %4510 = vmatmul.msk.f32.vlgmr.msrb.gmra.mxu3 %vm284_vm0, %v5653_v43  ;;  %4514 = vmatmul.msk.f32.vlgmr.msrb.gmra.mxu2 %vm284_vm0, %v5653_v43  ;;  %v1062_v43 = vpop.f32.mrf.mxu0 }
 0x2d8   :  { %v798_v44 = vpop.f32.mrf.mxu2  ;;  %v827_v58 = vpop.f32.mrf.mxu3 }
 0x2dd   :  { %v1065_v37 = vpop.f32.mrf.mxu0 }
 0x2e0   :  { %v801_v5 = vpop.f32.mrf.mxu2  ;;  %v830_v6 = vpop.f32.mrf.mxu3 }
 0x2e5   :  { %v1068_v56 = vpop.f32.mrf.mxu0 }
 0x2e8   :  { %v804_v8 = vpop.f32.mrf.mxu2  ;;  %v833_v10 = vpop.f32.mrf.mxu3 }
 0x2f0   :  { %v807_v11 = vpop.f32.mrf.mxu2  ;;  %v836_v12 = vpop.f32.mrf.mxu3 }
 0x2f8   :  { %v872_v2 = vpop.f32.mrf.mxu2  ;;  %v901_v15 = vpop.f32.mrf.mxu3 }
 0x300   :  { %v875_v16 = vpop.f32.mrf.mxu2  ;;  %v904_v20 = vpop.f32.mrf.mxu3 }
 0x301   :  { %4515 = vmatpush.xpose.msk.msra.mxu2 %vm1103_vm10, %v875_v16 }
 0x305   :  { %4516 = vmatpush.xpose.msk.msra.mxu2 %vm1103_vm10, %v872_v2 }
 0x308   :  { %v878_v21 = vpop.f32.mrf.mxu2  ;;  %v907_v24 = vpop.f32.mrf.mxu3  ;;  %4517 = vmatmul.msk.f32.vlgmr.msra.gmra.mxu2 %vm1103_vm10, %v740_v13 }
 0x309   :  { %4523 = vmatpush.xpose.msk.msrb.mxu2 %vm1103_vm10, %v904_v20 }
 0x30d   :  { %4524 = vmatpush.xpose.msk.msrb.mxu2 %vm1103_vm10, %v901_v15 }
 0x310   :  { %v881_v25 = vpop.f32.mrf.mxu2  ;;  %v910_v26 = vpop.f32.mrf.mxu3  ;;  %4518 = vmatmul.msk.f32.gmra.mxu2 %vm1103_vm10, %v743_v18 }
 0x311   :  { %4519 = vmatpush.xpose.msk.msra.mxu3 %vm1103_vm10, %v881_v25 }
 0x315   :  { %4520 = vmatpush.xpose.msk.msra.mxu3 %vm1103_vm10, %v878_v21 }
 0x318   :  { %v930_v29 = vpop.f32.mrf.mxu2  ;;  %v959_v30 = vpop.f32.mrf.mxu3  ;;  %4521 = vmatmul.msk.f32.vlgmr.msra.gmra.mxu3 %vm1103_vm10, %v746_v22  ;;  %4525 = vmatmul.msk.f32.vlgmr.msrb.gmra.mxu2 %vm1103_vm10, %v769_v14 }
 0x319   :  { %4527 = vmatpush.xpose.msk.msrb.mxu3 %vm1103_vm10, %v910_v26 }
 0x31d   :  { %4528 = vmatpush.xpose.msk.msrb.mxu3 %vm1103_vm10, %v907_v24 }
 0x320   :  { %v933_v31 = vpop.f32.mrf.mxu2  ;;  %v962_v32 = vpop.f32.mrf.mxu3  ;;  %4522 = vmatmul.msk.f32.gmra.mxu3 %vm1103_vm10, %v749_v27  ;;  %4526 = vmatmul.msk.f32.gmra.mxu2 %vm1103_vm10, %v772_v19 }
 0x321   :  { %4531 = vmatpush.xpose.msk.msra.mxu0 %vm1103_vm10, %v933_v31  ;;  %4539 = vmatpush.xpose.msk.msra.mxu2 %vm1103_vm10, %v962_v32 }
 0x325   :  { %4532 = vmatpush.xpose.msk.msra.mxu0 %vm1103_vm10, %v930_v29  ;;  %4540 = vmatpush.xpose.msk.msra.mxu2 %vm1103_vm10, %v959_v30 }
 0x328   :  { %v936_v33 = vpop.f32.mrf.mxu2  ;;  %v965_v34 = vpop.f32.mrf.mxu3  ;;  %4529 = vmatmul.msk.f32.vlgmr.msrb.gmra.mxu3 %vm1103_vm10, %v775_v23  ;;  %4533 = vmatmul.msk.f32.vlgmr.msra.gmra.mxu0 %vm1103_vm10, %v798_v44 }
 0x329   :  { %4541 = vmatmul.msk.f32.vlgmr.msra.gmra.mxu2 %vm1103_vm10, %v827_v58 }
 0x330   :  { %v939_v35 = vpop.f32.mrf.mxu2  ;;  %v968_v36 = vpop.f32.mrf.mxu3  ;;  %4530 = vmatmul.msk.f32.gmra.mxu3 %vm1103_vm10, %v778_v28  ;;  %4534 = vmatmul.msk.f32.gmra.mxu0 %vm1103_vm10, %v801_v5 }
 0x331   :  { %4542 = vmatmul.msk.f32.gmra.mxu2 %vm1103_vm10, %v830_v6  ;;  %4535 = vmatpush.xpose.msk.msra.mxu1 %vm1103_vm10, %v939_v35 }
 0x332   :  { %4543 = vmatpush.xpose.msk.msra.mxu3 %vm1103_vm10, %v968_v36 }
 0x335   :  { %4536 = vmatpush.xpose.msk.msra.mxu1 %vm1103_vm10, %v936_v33 }
 0x336   :  { %4544 = vmatpush.xpose.msk.msra.mxu3 %vm1103_vm10, %v965_v34 }
 0x338   :  { %v1004_v38 = vpop.f32.mrf.mxu2  ;;  %v1033_v40 = vpop.f32.mrf.mxu3  ;;  %4537 = vmatmul.msk.f32.vlgmr.msra.gmra.mxu1 %vm1103_vm10, %v804_v8 }
 0x339   :  { %4545 = vmatmul.msk.f32.vlgmr.msra.gmra.mxu3 %vm1103_vm10, %v833_v10 }
 0x340   :  { %v1007_v46 = vpop.f32.mrf.mxu2  ;;  %v1036_v7 = vpop.f32.mrf.mxu3  ;;  %4538 = vmatmul.msk.f32.gmra.mxu1 %vm1103_vm10, %v807_v11 }
 0x341   :  { %4546 = vmatmul.msk.f32.gmra.mxu3 %vm1103_vm10, %v836_v12  ;;  %1597 = vmatpush.msrb.mxu0 %v1007_v46 }
 0x342   :  { %1655 = vmatpush.msrb.mxu2 %v1036_v7 }
 0x343   :  { %1598 = vmatpush.msrb.mxu0 %v1004_v38 }
 0x344   :  { %1656 = vmatpush.msrb.mxu2 %v1033_v40 }
 0x345   :  { %1713 = vmatpush.msra.mxu0 %v1065_v37 }
 0x346   :  { %1771 = vmatpush.msra.mxu2 %v1094_v39 }
 0x347   :  { %1714 = vmatpush.msra.mxu0 %v1062_v43 }
 0x348   :  { %1772 = vmatpush.msra.mxu2 %v1091_v45  ;;  %v1010_v49 = vpop.f32.mrf.mxu2  ;;  %v1039_v50 = vpop.f32.mrf.mxu3 }
 0x350   :  { %v1013_v51 = vpop.f32.mrf.mxu2  ;;  %v1042_v52 = vpop.f32.mrf.mxu3 }
 0x351   :  { %1626 = vmatpush.msrb.mxu1 %v1013_v51  ;;  %1684 = vmatpush.msrb.mxu3 %v1042_v52 }
 0x353   :  { %1627 = vmatpush.msrb.mxu1 %v1010_v49  ;;  %1685 = vmatpush.msrb.mxu3 %v1039_v50 }
 0x358   :  { %v1071_v53 = vpop.f32.mrf.mxu3  ;;  %v1100_v54 = vpop.f32.mrf.mxu2 }
 0x359   :  { %1742 = vmatpush.msra.mxu1 %v1071_v53  ;;  %1800 = vmatpush.msra.mxu3 %v1100_v54 }
 0x35b   :  { %1743 = vmatpush.msra.mxu1 %v1068_v56  ;;  %1801 = vmatpush.msra.mxu3 %v1097_v57 }
 0x38b   :  { %v1133_v42 = vpop.f32.mrf.mxu2 }
 0x38c   :  { %v5839_v9 = vmul.f32 0.35355338, %v1133_v42 }
 0x38e   :  { %v1401_v59 = vsel %vm1400_vm11, %v5839_v9, -inf }
 0x38f   :  { %1402 = vmax.xlane.f32.xlu0 %v1401_v59 }
 0x393   :  { %v1136_v60 = vpop.f32.mrf.mxu2 }
 0x394   :  { %v5847_v1 = vmul.f32 0.35355338, %v1136_v60 }
 0x396   :  { %v1404_v14 = vsel %vm1400_vm11, %v5847_v1, -inf }
 0x39b   :  { %v1168_v61 = vpop.f32.mrf.mxu3  ;;  %v1203_v62 = vpop.f32.mrf.mxu2 }
 0x39c   :  { %v5843_v63 = vmul.f32 0.35355338, %v1203_v62  ;;  %v5855_v19 = vmul.f32 0.35355338, %v1168_v61 }
 0x39e   :  { %v1413_v0 = vsel %vm1400_vm11, %v5843_v63, -inf  ;;  %v1407_v5 = vsel %vm1400_vm11, %v5855_v19, -inf }
 0x39f   :  { %1414 = vmax.xlane.f32.xlu2 %v1413_v0 }
 0x3a3   :  { %v1171_v3 = vpop.f32.mrf.mxu3  ;;  %v1206_v4 = vpop.f32.mrf.mxu2 }
 0x3a4   :  { %v5849_v13 = vmul.f32 0.35355338, %v1206_v4  ;;  %v5879_v25 = vmul.f32 0.35355338, %v1171_v3 }
 0x3a5   :  { %v1273_v44 = vpop.f32.mrf.mxu0 }
 0x3a6   :  { %v1416_v18 = vsel %vm1400_vm11, %v5849_v13, -inf  ;;  %v5867_v8 = vmul.f32 0.35355338, %v1273_v44  ;;  %v1410_v31 = vsel %vm1400_vm11, %v5879_v25, -inf }
 0x3a7   :  { %1405 = vmax.xlane.f32.xlu2 %v1404_v14  ;;  %1417 = vmax.xlane.f32.xlu1 %v1416_v18 }
 0x3a8   :  { %v1425_v16 = vsel %vm1400_vm11, %v5867_v8, -inf }
 0x3ab   :  { %v1238_v22 = vpop.f32.mrf.mxu3 }
 0x3ac   :  { %v5857_v23 = vmul.f32 0.35355338, %v1238_v22  ;;  %v1343_v27 = vpop.f32.mrf.mxu2 }
 0x3ad   :  { %v5859_v28 = vmul.f32 0.35355338, %v1343_v27  ;;  %v1276_v24 = vpop.f32.mrf.mxu0 }
 0x3ae   :  { %v1419_v58 = vsel %vm1400_vm11, %v5857_v23, -inf  ;;  %v5881_v26 = vmul.f32 0.35355338, %v1276_v24 }
 0x3af   :  { %1420 = vmax.xlane.f32.xlu0 %v1419_v58  ;;  %1408 = vmax.xlane.f32.xlu2 %v1407_v5  ;;  %v1437_v6 = vsel %vm1400_vm11, %v5859_v28, -inf }
 0x3b0   :  { %1438 = vmax.xlane.f32.xlu1 %v1437_v6  ;;  %v1428_v32 = vsel %vm1400_vm11, %v5881_v26, -inf }
 0x3b3   :  { %v1241_v10 = vpop.f32.mrf.mxu3 }
 0x3b4   :  { %v5869_v11 = vmul.f32 0.35355338, %v1241_v10  ;;  %v1346_v12 = vpop.f32.mrf.mxu2 }
 0x3b5   :  { %v5871_v2 = vmul.f32 0.35355338, %v1346_v12  ;;  %v1308_v15 = vpop.f32.mrf.mxu1 }
 0x3b6   :  { %v1422_v20 = vsel %vm1400_vm11, %v5869_v11, -inf  ;;  %v5891_v35 = vmul.f32 0.35355338, %v1308_v15 }
 0x3b7   :  { %1426 = vmax.xlane.f32.xlu0 %v1425_v16  ;;  %v1440_v21 = vsel %vm1400_vm11, %v5871_v2, -inf }
 0x3b8   :  { %1423 = vmax.xlane.f32.xlu1 %v1422_v20  ;;  %1441 = vmax.xlane.f32.xlu2 %v1440_v21  ;;  %v1431_v43 = vsel %vm1400_vm11, %v5891_v35, -inf }
 0x3bc   :  { %v1378_v29 = vpop.f32.mrf.mxu3 }
 0x3bd   :  { %v5883_v30 = vmul.f32 0.35355338, %v1378_v29  ;;  %v1311_v34 = vpop.f32.mrf.mxu1 }
 0x3be   :  { %v5893_v36 = vmul.f32 0.35355338, %v1311_v34 }
 0x3bf   :  { %1411 = vmax.xlane.f32.xlu0 %v1410_v31  ;;  %v1443_v33 = vsel %vm1400_vm11, %v5883_v30, -inf }
 0x3c0   :  { %1429 = vmax.xlane.f32.xlu1 %v1428_v32  ;;  %1444 = vmax.xlane.f32.xlu2 %v1443_v33  ;;  %v1434_v46 = vsel %vm1400_vm11, %v5893_v36, -inf }
 0x3c4   :  { %v1381_v38 = vpop.f32.mrf.mxu3 }
 0x3c5   :  { %v5895_v40 = vmul.f32 0.35355338, %v1381_v38 }
 0x3c7   :  { %1432 = vmax.xlane.f32.xlu0 %v1431_v43  ;;  %v1446_v45 = vsel %vm1400_vm11, %v5895_v40, -inf }
 0x3c8   :  { %1447 = vmax.xlane.f32.xlu1 %v1446_v45  ;;  %1435 = vmax.xlane.f32.xlu2 %v1434_v46 }
 0x402   :  { %v1403_v7 = vpop.xlane.xlu0 %1402 }
 0x403   :  { %v1449_v37 = vsub.f32 %v5839_v9, %v1403_v7 }
 0x405   :  { %v1465_v39 = vmul.f32 1.442695, %v1449_v37 }
 0x407   :  { %4822 = vpow2.f32 %v1465_v39 }
 0x40d   :  { %v5904_v49 = vpop.eup %4822 }
 0x40e   :  { %v1497_v50 = vsel %vm1400_vm11, %v5904_v49, 0.0 }
 0x40f   :  { %1498 = vadd.xlane.f32.xlu1 %v1497_v50 }
 0x412   :  { %v1415_v51 = vpop.xlane.xlu2 %1414 }
 0x413   :  { %v1453_v52 = vsub.f32 %v5843_v63, %v1415_v51 }
 0x415   :  { %v1473_v53 = vmul.f32 1.442695, %v1453_v52 }
 0x417   :  { %4824 = vpow2.f32 %v1473_v53 }
 0x41a   :  { %v1406_v54 = vpop.xlane.xlu2 %1405  ;;  %v1418_v56 = vpop.xlane.xlu1 %1417 }
 0x41b   :  { %v1450_v57 = vsub.f32 %v5847_v1, %v1406_v54  ;;  %v1454_v42 = vsub.f32 %v5849_v13, %v1418_v56 }
 0x41d   :  { %v5911_v9 = vpop.eup %4824  ;;  %v1467_v59 = vmul.f32 1.442695, %v1450_v57  ;;  %v1475_v60 = vmul.f32 1.442695, %v1454_v42 }
 0x41e   :  { %v1509_v61 = vsel %vm1400_vm11, %v5911_v9, 0.0 }
 0x41f   :  { %4826 = vpow2.f32 %v1467_v59  ;;  %1510 = vadd.xlane.f32.xlu0 %v1509_v61 }
 0x420   :  { %4828 = vpow2.f32 %v1475_v60 }
 0x422   :  { %v1421_v62 = vpop.xlane.xlu0 %1420  ;;  %v1409_v63 = vpop.xlane.xlu2 %1408 }
 0x423   :  { %v1455_v0 = vsub.f32 %v5857_v23, %v1421_v62  ;;  %v1451_v3 = vsub.f32 %v5855_v19, %v1409_v63  ;;  %v1439_v4 = vpop.xlane.xlu1 %1438 }
 0x424   :  { %v1461_v1 = vsub.f32 %v5859_v28, %v1439_v4 }
 0x425   :  { %v5918_v13 = vpop.eup %4826  ;;  %v1477_v14 = vmul.f32 1.442695, %v1455_v0  ;;  %v1469_v18 = vmul.f32 1.442695, %v1451_v3 }
 0x426   :  { %v5920_v22 = vpop.eup %4828  ;;  %v1489_v27 = vmul.f32 1.442695, %v1461_v1  ;;  %v1500_v44 = vsel %vm1400_vm11, %v5918_v13, 0.0 }
 0x427   :  { %4830 = vpow2.f32 %v1477_v14  ;;  %1501 = vadd.xlane.f32.xlu0 %v1500_v44  ;;  %v1512_v23 = vsel %vm1400_vm11, %v5920_v22, 0.0 }
 0x428   :  { %4832 = vpow2.f32 %v1469_v18  ;;  %1513 = vadd.xlane.f32.xlu2 %v1512_v23 }
 0x429   :  { %4834 = vpow2.f32 %v1489_v27 }
 0x42a   :  { %v1427_v19 = vpop.xlane.xlu0 %1426 }
 0x42b   :  { %v1457_v28 = vsub.f32 %v5867_v8, %v1427_v19  ;;  %v1424_v58 = vpop.xlane.xlu1 %1423  ;;  %v1442_v5 = vpop.xlane.xlu2 %1441 }
 0x42c   :  { %v1456_v6 = vsub.f32 %v5869_v11, %v1424_v58  ;;  %v1462_v10 = vsub.f32 %v5871_v2, %v1442_v5 }
 0x42d   :  { %v5929_v12 = vpop.eup %4830  ;;  %v1481_v15 = vmul.f32 1.442695, %v1457_v28 }
 0x42e   :  { %v5931_v16 = vpop.eup %4832  ;;  %v1479_v20 = vmul.f32 1.442695, %v1456_v6  ;;  %v1491_v21 = vmul.f32 1.442695, %v1462_v10  ;;  %v1515_v24 = vsel %vm1400_vm11, %v5929_v12, 0.0 }
 0x42f   :  { %v5935_v29 = vpop.eup %4834  ;;  %4836 = vpow2.f32 %v1481_v15  ;;  %v1503_v8 = vsel %vm1400_vm11, %v5931_v16, 0.0  ;;  %1516 = vadd.xlane.f32.xlu1 %v1515_v24 }
 0x430   :  { %4838 = vpow2.f32 %v1479_v20  ;;  %1504 = vadd.xlane.f32.xlu0 %v1503_v8  ;;  %v1533_v11 = vsel %vm1400_vm11, %v5935_v29, 0.0 }
 0x431   :  { %4840 = vpow2.f32 %v1491_v21  ;;  %1534 = vadd.xlane.f32.xlu2 %v1533_v11 }
 0x432   :  { %v1412_v2 = vpop.xlane.xlu0 %1411 }
 0x433   :  { %v1452_v31 = vsub.f32 %v5879_v25, %v1412_v2  ;;  %v1430_v32 = vpop.xlane.xlu1 %1429  ;;  %v1445_v33 = vpop.xlane.xlu2 %1444 }
 0x434   :  { %v1458_v34 = vsub.f32 %v5881_v26, %v1430_v32  ;;  %v1463_v38 = vsub.f32 %v5883_v30, %v1445_v33 }
 0x435   :  { %v5944_v43 = vpop.eup %4836  ;;  %v1471_v45 = vmul.f32 1.442695, %v1452_v31 }
 0x436   :  { %v5946_v46 = vpop.eup %4838  ;;  %v1483_v7 = vmul.f32 1.442695, %v1458_v34  ;;  %v1493_v37 = vmul.f32 1.442695, %v1463_v38  ;;  %v1521_v39 = vsel %vm1400_vm11, %v5944_v43, 0.0 }
 0x437   :  { %v5950_v50 = vpop.eup %4840  ;;  %4842 = vpow2.f32 %v1471_v45  ;;  %1522 = vadd.xlane.f32.xlu1 %v1521_v39  ;;  %v1518_v25 = vsel %vm1400_vm11, %v5946_v46, 0.0 }
 0x438   :  { %4844 = vpow2.f32 %v1483_v7  ;;  %v1536_v26 = vsel %vm1400_vm11, %v5950_v50, 0.0 }
 0x439   :  { %4846 = vpow2.f32 %v1493_v37  ;;  %1519 = vadd.xlane.f32.xlu2 %v1518_v25  ;;  %1537 = vadd.xlane.f32.xlu0 %v1536_v26 }
 0x43a   :  { %v1433_v30 = vpop.xlane.xlu0 %1432 }
 0x43b   :  { %v1459_v51 = vsub.f32 %v5891_v35, %v1433_v30  ;;  %v1448_v52 = vpop.xlane.xlu1 %1447  ;;  %v1436_v53 = vpop.xlane.xlu2 %1435 }
 0x43c   :  { %v1464_v54 = vsub.f32 %v5895_v40, %v1448_v52  ;;  %v1460_v56 = vsub.f32 %v5893_v36, %v1436_v53 }
 0x43d   :  { %v5959_v57 = vpop.eup %4842  ;;  %v1485_v42 = vmul.f32 1.442695, %v1459_v51 }
 0x43e   :  { %v5961_v59 = vpop.eup %4844  ;;  %v1495_v60 = vmul.f32 1.442695, %v1464_v54  ;;  %v1487_v61 = vmul.f32 1.442695, %v1460_v56  ;;  %v1506_v62 = vsel %vm1400_vm11, %v5959_v57, 0.0 }
 0x43f   :  { %v5965_v63 = vpop.eup %4846  ;;  %4848 = vpow2.f32 %v1485_v42  ;;  %1507 = vadd.xlane.f32.xlu1 %v1506_v62  ;;  %v1524_v35 = vsel %vm1400_vm11, %v5961_v59, 0.0  ;;  %v1810_v62 = vld [vmem:[%s7135_s8 + $0x8] sm:$0xff] }
 0x440   :  { %4850 = vpow2.f32 %v1495_v60  ;;  %v1539_v36 = vsel %vm1400_vm11, %v5965_v63, 0.0 }
 0x441   :  { %4852 = vpow2.f32 %v1487_v61  ;;  %1525 = vadd.xlane.f32.xlu2 %v1524_v35  ;;  %1540 = vadd.xlane.f32.xlu0 %v1539_v36  ;;  %v1809_v61 = vld [vmem:[%s7135_s8] sm:$0xff]  ;;  %v1812_v35 = vld [vmem:[%s7135_s8 + $0x18] sm:$0xff]  ;;  %v1811_v36 = vld [vmem:[%s7135_s8 + $0x10] sm:$0xff] }
 0x445   :  { %v5971_v40 = vpop.eup %4848 }
 0x446   :  { %v5973_v0 = vpop.eup %4850  ;;  %v1527_v3 = vsel %vm1400_vm11, %v5971_v40, 0.0 }
 0x447   :  { %v5977_v4 = vpop.eup %4852  ;;  %1528 = vadd.xlane.f32.xlu1 %v1527_v3  ;;  %v1542_v1 = vsel %vm1400_vm11, %v5973_v0, 0.0 }
 0x448   :  { %v1530_v14 = vsel %vm1400_vm11, %v5977_v4, 0.0 }
 0x449   :  { %1543 = vadd.xlane.f32.xlu2 %v1542_v1  ;;  %1531 = vadd.xlane.f32.xlu0 %v1530_v14 }
 0x482   :  { %v1499_v18 = vpop.xlane.xlu1 %1498 }
 0x483   :  { %4854 = vrcp.f32 %v1499_v18 }
 0x489   :  { %v4855_v27 = vpop.eup %4854 }
 0x48a   :  { %v1561_v44 = vmul.f32 %v4855_v27, %v5904_v49 }
 0x48c   :  { %4547 = vmatmul.msk.f32.vlgmr.msrb.gmra.mxu0 %vm1400_vm11, %v1561_v44 }
 0x48d   :  { %1840 = vmatpush.msrb.mxu0 %v1809_v61 }
 0x492   :  { %v1511_v23 = vpop.xlane.xlu0 %1510 }
 0x493   :  { %4856 = vrcp.f32 %v1511_v23 }
 0x499   :  { %v4857_v19 = vpop.eup %4856 }
 0x49a   :  { %v1565_v28 = vmul.f32 %v4857_v19, %v5911_v9  ;;  %v1502_v58 = vpop.xlane.xlu0 %1501 }
 0x49b   :  { %4858 = vrcp.f32 %v1502_v58  ;;  %v1514_v5 = vpop.xlane.xlu2 %1513 }
 0x49c   :  { %4860 = vrcp.f32 %v1514_v5  ;;  %4551 = vmatmul.msk.f32.vlgmr.msrb.gmra.mxu2 %vm1400_vm11, %v1565_v28 }
 0x49d   :  { %1922 = vmatpush.msrb.mxu2 %v1811_v36 }
 0x4a1   :  { %v4859_v6 = vpop.eup %4858 }
 0x4a2   :  { %v4861_v10 = vpop.eup %4860  ;;  %v1517_v15 = vpop.xlane.xlu1 %1516  ;;  %v1562_v20 = vmul.f32 %v4859_v6, %v5918_v13 }
 0x4a3   :  { %v1505_v21 = vpop.xlane.xlu0 %1504  ;;  %4862 = vrcp.f32 %v1517_v15  ;;  %v1566_v49 = vmul.f32 %v4861_v10, %v5920_v22 }
 0x4a4   :  { %4864 = vrcp.f32 %v1505_v21  ;;  %v1535_v24 = vpop.xlane.xlu2 %1534  ;;  %4548 = vmatmul.msk.f32.gmra.mxu0 %vm1400_vm11, %v1562_v20 }
 0x4a5   :  { %4866 = vrcp.f32 %v1535_v24  ;;  %4552 = vmatmul.msk.f32.gmra.mxu2 %vm1400_vm11, %v1566_v49 }
 0x4a9   :  { %v4863_v9 = vpop.eup %4862 }
 0x4aa   :  { %v4865_v8 = vpop.eup %4864  ;;  %v1567_v11 = vmul.f32 %v4863_v9, %v5929_v12  ;;  %v1523_v2 = vpop.xlane.xlu1 %1522 }
 0x4ab   :  { %v4867_v31 = vpop.eup %4866  ;;  %v1563_v32 = vmul.f32 %v4865_v8, %v5931_v16  ;;  %4868 = vrcp.f32 %v1523_v2  ;;  %v4795_v2 = vld [vmem:[%s7136_s9] ss:$0 sm:$0xff] }
 0x4ac   :  { %v1573_v13 = vmul.f32 %v4867_v31, %v5935_v29  ;;  %v1538_v33 = vpop.xlane.xlu0 %1537  ;;  %v1520_v22 = vpop.xlane.xlu2 %1519  ;;  %4553 = vmatmul.msk.f32.vlgmr.msrb.gmra.mxu3 %vm1400_vm11, %v1567_v11 }
 0x4ad   :  { %4870 = vrcp.f32 %v1538_v33  ;;  %4549 = vmatmul.msk.f32.vlgmr.msrb.gmra.mxu1 %vm1400_vm11, %v1563_v32  ;;  %1963 = vmatpush.msrb.mxu3 %v1812_v35 }
 0x4ae   :  { %4872 = vrcp.f32 %v1520_v22  ;;  %4559 = vmatmul.msk.f32.vlgmr.msra.gmra.mxu2 %vm1400_vm11, %v1573_v13  ;;  %1881 = vmatpush.msrb.mxu1 %v1810_v62 }
 0x4b1   :  { %v4869_v34 = vpop.eup %4868 }
 0x4b2   :  { %v1569_v12 = vmul.f32 %v4869_v34, %v5944_v43  ;;  %v1508_v38 = vpop.xlane.xlu1 %1507 }
 0x4b3   :  { %v4871_v45 = vpop.eup %4870  ;;  %4874 = vrcp.f32 %v1508_v38 }
 0x4b4   :  { %v4873_v16 = vpop.eup %4872  ;;  %v1541_v7 = vpop.xlane.xlu0 %1540  ;;  %4555 = vmatmul.msk.f32.vlgmr.msra.gmra.mxu0 %vm1400_vm11, %v1569_v12  ;;  %v1574_v29 = vmul.f32 %v4871_v45, %v5950_v50 }
 0x4b5   :  { %v1526_v37 = vpop.xlane.xlu2 %1525  ;;  %4876 = vrcp.f32 %v1541_v7  ;;  %v1568_v39 = vmul.f32 %v4873_v16, %v5946_v46 }
 0x4b6   :  { %4878 = vrcp.f32 %v1526_v37  ;;  %4560 = vmatmul.msk.f32.gmra.mxu2 %vm1400_vm11, %v1574_v29 }
 0x4b7   :  { %4554 = vmatmul.msk.f32.gmra.mxu3 %vm1400_vm11, %v1568_v39 }
 0x4b9   :  { %v4875_v25 = vpop.eup %4874 }
 0x4ba   :  { %v1529_v43 = vpop.xlane.xlu1 %1528  ;;  %v1564_v26 = vmul.f32 %v4875_v25, %v5959_v57 }
 0x4bb   :  { %v4877_v30 = vpop.eup %4876  ;;  %4880 = vrcp.f32 %v1529_v43 }
 0x4bc   :  { %v4879_v51 = vpop.eup %4878  ;;  %v1575_v52 = vmul.f32 %v4877_v30, %v5965_v63  ;;  %4550 = vmatmul.msk.f32.gmra.mxu1 %vm1400_vm11, %v1564_v26  ;;  %v1532_v46 = vpop.xlane.xlu0 %1531 }
 0x4bd   :  { %v1544_v53 = vpop.xlane.xlu2 %1543  ;;  %v1570_v50 = vmul.f32 %v4879_v51, %v5961_v59 }
 0x4be   :  { %4882 = vrcp.f32 %v1544_v53 }
 0x4bf   :  { %4556 = vmatmul.msk.f32.gmra.mxu0 %vm1400_vm11, %v1570_v50  ;;  %4561 = vmatmul.msk.f32.vlgmr.msra.gmra.mxu3 %vm1400_vm11, %v1575_v52  ;;  %4884 = vrcp.f32 %v1532_v46 }
 0x4c1   :  { %v4881_v54 = vpop.eup %4880 }
 0x4c2   :  { %v1571_v56 = vmul.f32 %v4881_v54, %v5971_v40 }
 0x4c4   :  { %v4883_v57 = vpop.eup %4882  ;;  %4557 = vmatmul.msk.f32.vlgmr.msra.gmra.mxu1 %vm1400_vm11, %v1571_v56 }
 0x4c5   :  { %v1576_v42 = vmul.f32 %v4883_v57, %v5973_v0  ;;  %v4885_v60 = vpop.eup %4884 }
 0x4c6   :  { %v1572_v59 = vmul.f32 %v4885_v60, %v5977_v4 }
 0x4c7   :  { %4562 = vmatmul.msk.f32.gmra.mxu3 %vm1400_vm11, %v1576_v42 }
 0x4cc   :  { %4558 = vmatmul.msk.f32.gmra.mxu1 %vm1400_vm11, %v1572_v59 }
 0x509   :  { %v1600_v63 = vpop.f32.mrf.mxu0 }
 0x50a   :  { %4563 = vmatmul.msk.f32.vlgmr.msrb.gmra.mxu0 %vm1103_vm10, %v1600_v63 }
 0x51f   :  { %v1658_v40 = vpop.f32.mrf.mxu2 }
 0x520   :  { %4567 = vmatmul.msk.f32.vlgmr.msrb.gmra.mxu1 %vm1103_vm10, %v1658_v40 }
 0x521   :  { %v1603_v0 = vpop.f32.mrf.mxu0 }
 0x522   :  { %4564 = vmatmul.msk.f32.gmra.mxu0 %vm1103_vm10, %v1603_v0 }
 0x528   :  { %v1661_v3 = vpop.f32.mrf.mxu2 }
 0x529   :  { %4568 = vmatmul.msk.f32.gmra.mxu1 %vm1103_vm10, %v1661_v3 }
 0x52a   :  { %v1629_v4 = vpop.f32.mrf.mxu1 }
 0x52b   :  { %4565 = vmatmul.msk.f32.gmra.mxu0 %vm1103_vm10, %v1629_v4 }
 0x52f   :  { %v1687_v1 = vpop.f32.mrf.mxu3 }
 0x531   :  { %v1774_v14 = vpop.f32.mrf.mxu2  ;;  %4569 = vmatmul.msk.f32.gmra.mxu1 %vm1103_vm10, %v1687_v1  ;;  %v1716_v18 = vpop.f32.mrf.mxu0 }
 0x532   :  { %4575 = vmatmul.msk.f32.vlgmr.msrb.gmra.mxu3 %vm1103_vm10, %v1774_v14  ;;  %4571 = vmatmul.msk.f32.vlgmr.msrb.gmra.mxu2 %vm1103_vm10, %v1716_v18 }
 0x539   :  { %v1777_v27 = vpop.f32.mrf.mxu2  ;;  %v1632_v44 = vpop.f32.mrf.mxu1 }
 0x53a   :  { %v1690_v23 = vpop.f32.mrf.mxu3  ;;  %4576 = vmatmul.msk.f32.gmra.mxu3 %vm1103_vm10, %v1777_v27  ;;  %4566 = vmatmul.msk.f32.gmra.mxu0 %vm1103_vm10, %v1632_v44 }
 0x53b   :  { %4570 = vmatmul.msk.f32.gmra.mxu1 %vm1103_vm10, %v1690_v23 }
 0x53c   :  { %v1719_v19 = vpop.f32.mrf.mxu0 }
 0x53d   :  { %4572 = vmatmul.msk.f32.gmra.mxu2 %vm1103_vm10, %v1719_v19 }
 0x541   :  { %v1745_v28 = vpop.f32.mrf.mxu1 }
 0x542   :  { %v1803_v58 = vpop.f32.mrf.mxu3 }
 0x543   :  { %4577 = vmatmul.msk.f32.gmra.mxu3 %vm1103_vm10, %v1803_v58 }
 0x545   :  { %4573 = vmatmul.msk.f32.gmra.mxu2 %vm1103_vm10, %v1745_v28 }
 0x549   :  { %v1748_v6 = vpop.f32.mrf.mxu1 }
 0x54a   :  { %v1806_v5 = vpop.f32.mrf.mxu3 }
 0x54b   :  { %4578 = vmatmul.msk.f32.gmra.mxu3 %vm1103_vm10, %v1806_v5 }
 0x54d   :  { %4574 = vmatmul.msk.f32.gmra.mxu2 %vm1103_vm10, %v1748_v6 }
 0x587   :  { %v1842_v15 = vpop.f32.mrf.mxu0 }
 0x588   :  { %v1977_v21 = vsel %vm284_vm0, %v1842_v15, 0.0 }
 0x59d   :  { %v1883_v10 = vpop.f32.mrf.mxu1 }
 0x59e   :  { %v1978_v20 = vsel %vm284_vm0, %v1883_v10, 0.0 }
 0x59f   :  { %v1979_v49 = vadd.f32 %v1978_v20, %v1977_v21  ;;  %v1845_v31 = vpop.f32.mrf.mxu0 }
 0x5a0   :  { %v1984_v45 = vsel %vm284_vm0, %v1845_v31, 0.0 }
 0x5a6   :  { %v1886_v32 = vpop.f32.mrf.mxu1 }
 0x5a7   :  { %v1985_v34 = vsel %vm284_vm0, %v1886_v32, 0.0 }
 0x5a8   :  { %v1986_v7 = vadd.f32 %v1985_v34, %v1984_v45  ;;  %v1848_v39 = vpop.f32.mrf.mxu0  ;;  %v2123_v34 = vld [vmem:[%s7139_s12 + $0x10] sm:$0xff] }
 0x5ae   :  { %v1889_v25 = vpop.f32.mrf.mxu1 }
 0x5af   :  { %v1992_v51 = vsel %vm284_vm0, %v1889_v25, 0.0 }
 0x5b5   :  { %v1965_v24 = vpop.f32.mrf.mxu3  ;;  %v1924_v9 = vpop.f32.mrf.mxu2 }
 0x5b6   :  { %v1980_v8 = vsel %vm284_vm0, %v1924_v9, 0.0  ;;  %v1982_v13 = vsel %vm284_vm0, %v1965_v24, 0.0 }
 0x5b7   :  { %v1981_v11 = vadd.f32 %v1980_v8, %v1979_v49  ;;  %v1851_v57 = vpop.f32.mrf.mxu0 }
 0x5b8   :  { %v1892_v61 = vpop.f32.mrf.mxu1  ;;  %v1998_v63 = vsel %vm284_vm0, %v1851_v57, 0.0  ;;  %v4797_v57 = vld [vmem:[%s7138_s11] ss:$0 sm:$0xff] }
 0x5b9   :  { %v1983_v33 = vadd.f32 %v1982_v13, %v1981_v11  ;;  %v1999_v36 = vsel %vm284_vm0, %v1892_v61, 0.0 }
 0x5ba   :  { %v2000_v40 = vadd.f32 %v1999_v36, %v1998_v63 }
 0x5bb   :  { %v2009_v22 = vadd.f32 %v4795_v2, %v1983_v33 }
 0x5bd   :  { %v1968_v12 = vpop.f32.mrf.mxu3  ;;  %v2013_v38 = vadd.f32 %v2009_v22, %v5396_v48  ;;  %v1991_v48 = vsel %vm284_vm0, %v1848_v39, 0.0  ;;  %v2124_v22 = vld [vmem:[%s7139_s12 + $0x18] sm:$0xff] }
 0x5be   :  { %v1989_v26 = vsel %vm284_vm0, %v1968_v12, 0.0  ;;  %v1993_v50 = vadd.f32 %v1992_v51, %v1991_v48  ;;  %2153 = vmatpush.msra.mxu0 %v2124_v22 }
 0x5bf   :  { %v2019_v16 = vsel %vm284_vm0, %v2013_v38, 0.0 }
 0x5c0   :  { %v1927_v37 = vpop.f32.mrf.mxu2  ;;  %2020 = vadd.xlane.f32.xlu1 %v2019_v16  ;;  %2154 = vmatpush.msra.mxu0 %v2123_v34  ;;  %v2121_v16 = vld [vmem:[%s7139_s12] sm:$0xff]  ;;  %v2343_v34 = vld [vmem:[%s7141_s14 + $0x68] sm:$0xff] }
 0x5c1   :  { %v1987_v29 = vsel %vm284_vm0, %v1927_v37, 0.0 }
 0x5c2   :  { %v1988_v43 = vadd.f32 %v1987_v29, %v1986_v7 }
 0x5c4   :  { %v1990_v30 = vadd.f32 %v1989_v26, %v1988_v43 }
 0x5c6   :  { %v1971_v52 = vpop.f32.mrf.mxu3  ;;  %v2010_v53 = vadd.f32 %v4795_v2, %v1990_v30 }
 0x5c7   :  { %v1996_v59 = vsel %vm284_vm0, %v1971_v52, 0.0 }
 0x5c8   :  { %v1930_v46 = vpop.f32.mrf.mxu2  ;;  %v2014_v54 = vadd.f32 %v2010_v53, %v5425_v17 }
 0x5c9   :  { %v1994_v56 = vsel %vm284_vm0, %v1930_v46, 0.0 }
 0x5ca   :  { %v1995_v42 = vadd.f32 %v1994_v56, %v1993_v50  ;;  %v2022_v60 = vsel %vm284_vm0, %v2014_v54, 0.0  ;;  %v4796_v50 = vld [vmem:[%s7137_s10] ss:$0 sm:$0xff] }
 0x5cb   :  { %2023 = vadd.xlane.f32.xlu2 %v2022_v60 }
 0x5cc   :  { %v1997_v62 = vadd.f32 %v1996_v59, %v1995_v42 }
 0x5ce   :  { %v2011_v35 = vadd.f32 %v4795_v2, %v1997_v62  ;;  %v1974_v0 = vpop.f32.mrf.mxu3 }
 0x5cf   :  { %v2003_v18 = vsel %vm284_vm0, %v1974_v0, 0.0 }
 0x5d0   :  { %v1933_v3 = vpop.f32.mrf.mxu2  ;;  %v2015_v17 = vadd.f32 %v2011_v35, %v5449_v41 }
 0x5d1   :  { %v2001_v4 = vsel %vm284_vm0, %v1933_v3, 0.0 }
 0x5d2   :  { %v2002_v1 = vadd.f32 %v2001_v4, %v2000_v40  ;;  %v2025_v14 = vsel %vm284_vm0, %v2015_v17, 0.0 }
 0x5d3   :  { %2026 = vadd.xlane.f32.xlu0 %v2025_v14 }
 0x5d4   :  { %v2004_v27 = vadd.f32 %v2003_v18, %v2002_v1 }
 0x5d6   :  { %v2012_v44 = vadd.f32 %v4795_v2, %v2004_v27 }
 0x5d8   :  { %v2016_v23 = vadd.f32 %v2012_v44, %v5467_v47 }
 0x5da   :  { %v2028_v19 = vsel %vm284_vm0, %v2016_v23, 0.0 }
 0x5db   :  { %2029 = vadd.xlane.f32.xlu1 %v2028_v19 }
 0x633   :  { %v2021_v28 = vpop.xlane.xlu1 %2020 }
 0x634   :  { %v2031_v58 = vmul.f32 %v2021_v28, %v5471_v55 }
 0x636   :  { %v2035_v5 = vsub.f32 %v2013_v38, %v2031_v58  ;;  %v2122_v38 = vld [vmem:[%s7139_s12 + $0x8] sm:$0xff] }
 0x637   :  { %2155 = vmatpush.msra.mxu0 %v2122_v38  ;;  %v2342_v38 = vld [vmem:[%s7141_s14 + $0x60] sm:$0xff] }
 0x638   :  { %v2039_v41 = vmul.f32 %v2035_v5, %v2035_v5 }
 0x639   :  { %2156 = vmatpush.msra.mxu0 %v2121_v16  ;;  %v2341_v16 = vld [vmem:[%s7141_s14 + $0x58] sm:$0xff] }
 0x63a   :  { %v2043_v6 = vsel %vm284_vm0, %v2039_v41, 0.0 }
 0x63b   :  { %2044 = vadd.xlane.f32.xlu2 %v2043_v6 }
 0x63e   :  { %v2024_v10 = vpop.xlane.xlu2 %2023 }
 0x63f   :  { %v2032_v15 = vmul.f32 %v2024_v10, %v5471_v55 }
 0x641   :  { %v6073_v20 = vsub.f32 %v2014_v54, %v2032_v15 }
 0x643   :  { %v2040_v21 = vmul.f32 %v6073_v20, %v6073_v20 }
 0x645   :  { %v2046_v47 = vsel %vm284_vm0, %v2040_v21, 0.0 }
 0x646   :  { %2047 = vadd.xlane.f32.xlu0 %v2046_v47  ;;  %v2027_v49 = vpop.xlane.xlu0 %2026 }
 0x647   :  { %v2033_v24 = vmul.f32 %v2027_v49, %v5471_v55 }
 0x649   :  { %v6079_v9 = vsub.f32 %v2015_v17, %v2033_v24 }
 0x64b   :  { %v2041_v8 = vmul.f32 %v6079_v9, %v6079_v9 }
 0x64d   :  { %v2049_v11 = vsel %vm284_vm0, %v2041_v8, 0.0 }
 0x64e   :  { %2050 = vadd.xlane.f32.xlu1 %v2049_v11  ;;  %v2030_v2 = vpop.xlane.xlu1 %2029 }
 0x64f   :  { %v2034_v31 = vmul.f32 %v2030_v2, %v5471_v55 }
 0x651   :  { %v6085_v32 = vsub.f32 %v2016_v23, %v2034_v31 }
 0x653   :  { %v2042_v13 = vmul.f32 %v6085_v32, %v6085_v32 }
 0x655   :  { %v2052_v33 = vsel %vm284_vm0, %v2042_v13, 0.0  ;;  %v2345_v13 = vld [vmem:[%s7141_s14 + $0x78] sm:$0xff] }
 0x656   :  { %2053 = vadd.xlane.f32.xlu2 %v2052_v33  ;;  %2350 = vmatpush.msra.mxu1 %v2345_v13 }
 0x6ae   :  { %v2045_v12 = vpop.xlane.xlu2 %2044 }
 0x6af   :  { %v2055_v45 = vmul.f32 %v2045_v12, %v5471_v55 }
 0x6b1   :  { %v2059_v7 = vadd.f32 1e-05, %v2055_v45 }
 0x6b3   :  { %4886 = vrsqrt.f32 %v2059_v7  ;;  %vm2069_vm13 = vweird.f32 %v2059_v7 }
 0x6b9   :  { %v4887_v37 = vpop.eup %4886  ;;  %v2048_v29 = vpop.xlane.xlu0 %2047 }
 0x6ba   :  { %v2064_v39 = vmul.f32 %v4887_v37, %v2059_v7  ;;  %v2056_v25 = vmul.f32 %v2048_v29, %v5471_v55  ;;  %vm2070_vm12 = vweird.f32 %v4887_v37 }
 0x6bb   :  { %vm2071_vm14 = vmor %vm2069_vm13, %vm2070_vm12 }
 0x6bc   :  { %v2065_v43 = vmul.f32 %v4887_v37, %v2064_v39  ;;  %v2060_v26 = vadd.f32 1e-05, %v2056_v25  ;;  %v2339_v25 = vld [vmem:[%s7141_s14 + $0x48] sm:$0xff] }
 0x6be   :  { %v2066_v30 = vmul.f32 0.5, %v2065_v43  ;;  %4888 = vrsqrt.f32 %v2060_v26  ;;  %vm2079_vm1 = vweird.f32 %v2060_v26 }
 0x6c0   :  { %v2067_v51 = vsub.f32 1.5, %v2066_v30 }
 0x6c1   :  { %v2051_v52 = vpop.xlane.xlu1 %2050 }
 0x6c2   :  { %v2068_v53 = vmul.f32 %v4887_v37, %v2067_v51  ;;  %v2057_v48 = vmul.f32 %v2051_v52, %v5471_v55  ;;  %v2337_v51 = vld [vmem:[%s7141_s14 + $0x38] sm:$0xff] }
 0x6c4   :  { %v4889_v46 = vpop.eup %4888  ;;  %v2072_v54 = vsel %vm2071_vm14, %v4887_v37, %v2068_v53  ;;  %v2061_v56 = vadd.f32 1e-05, %v2057_v48  ;;  %v2340_v37 = vld [vmem:[%s7141_s14 + $0x50] sm:$0xff] }
 0x6c5   :  { %v2103_v42 = vmul.f32 %v2072_v54, %v2035_v5  ;;  %v2074_v60 = vmul.f32 %v4889_v46, %v2060_v26  ;;  %vm2080_vm15 = vweird.f32 %v4889_v46  ;;  %v2338_v26 = vld [vmem:[%s7141_s14 + $0x40] sm:$0xff] }
 0x6c6   :  { %4890 = vrsqrt.f32 %v2061_v56  ;;  %vm2081_vm2 = vmor %vm2079_vm1, %vm2080_vm15  ;;  %vm2089_vm4 = vweird.f32 %v2061_v56 }
 0x6c7   :  { %v2110_v59 = vmul.f32 %v4796_v50, %v2103_v42  ;;  %v2075_v61 = vmul.f32 %v4889_v46, %v2074_v60  ;;  %v2335_v42 = vld [vmem:[%s7141_s14 + $0x28] sm:$0xff] }
 0x6c9   :  { %v6111_v62 = vadd.f32 %v4797_v57, %v2110_v59  ;;  %v2076_v63 = vmul.f32 0.5, %v2075_v61  ;;  %v2054_v35 = vpop.xlane.xlu2 %2053 }
 0x6ca   :  { %v2058_v36 = vmul.f32 %v2054_v35, %v5471_v55 }
 0x6cb   :  { %v2077_v40 = vsub.f32 1.5, %v2076_v63  ;;  %4579 = vmatmul.msk.f32.vlgmr.msra.gmra.mxu0 %vm284_vm0, %v6111_v62  ;;  %v2334_v63 = vld [vmem:[%s7141_s14 + $0x20] sm:$0xff] }
 0x6cc   :  { %v4891_v0 = vpop.eup %4890  ;;  %v2062_v3 = vadd.f32 1e-05, %v2058_v36  ;;  %v2333_v36 = vld [vmem:[%s7141_s14 + $0x18] sm:$0xff] }
 0x6cd   :  { %v2078_v17 = vmul.f32 %v4889_v46, %v2077_v40  ;;  %v2084_v4 = vmul.f32 %v4891_v0, %v2061_v56  ;;  %vm2090_vm3 = vweird.f32 %v4891_v0 }
 0x6ce   :  { %4892 = vrsqrt.f32 %v2062_v3  ;;  %vm2091_vm5 = vmor %vm2089_vm4, %vm2090_vm3  ;;  %vm2099_vm7 = vweird.f32 %v2062_v3 }
 0x6cf   :  { %v2082_v1 = vsel %vm2081_vm2, %v4889_v46, %v2078_v17  ;;  %v2085_v14 = vmul.f32 %v4891_v0, %v2084_v4 }
 0x6d0   :  { %v2104_v18 = vmul.f32 %v2082_v1, %v6073_v20  ;;  %v2331_v1 = vld [vmem:[%s7141_s14 + $0x8] sm:$0xff] }
 0x6d1   :  { %v2086_v27 = vmul.f32 0.5, %v2085_v14 }
 0x6d2   :  { %v2111_v44 = vmul.f32 %v4796_v50, %v2104_v18 }
 0x6d3   :  { %v2087_v23 = vsub.f32 1.5, %v2086_v27 }
 0x6d4   :  { %v4893_v19 = vpop.eup %4892  ;;  %v6117_v28 = vadd.f32 %v4797_v57, %v2111_v44 }
 0x6d5   :  { %v2088_v58 = vmul.f32 %v4891_v0, %v2087_v23  ;;  %v2094_v5 = vmul.f32 %v4893_v19, %v2062_v3  ;;  %vm2100_vm6 = vweird.f32 %v4893_v19 }
 0x6d6   :  { %4580 = vmatmul.msk.f32.gmra.mxu0 %vm284_vm0, %v6117_v28  ;;  %vm2101_vm8 = vmor %vm2099_vm7, %vm2100_vm6 }
 0x6d7   :  { %v2092_v41 = vsel %vm2091_vm5, %v4891_v0, %v2088_v58  ;;  %v2095_v6 = vmul.f32 %v4893_v19, %v2094_v5  ;;  %v2332_v0 = vld [vmem:[%s7141_s14 + $0x10] sm:$0xff]  ;;  %v2330_v5 = vld [vmem:[%s7141_s14] sm:$0xff] }
 0x6d8   :  { %v2105_v10 = vmul.f32 %v2092_v41, %v6079_v9  ;;  %v6134_v9 = vld [vmem:[%s7140_s13] ss:$0 sm:$0xff] }
 0x6d9   :  { %v2096_v15 = vmul.f32 0.5, %v2095_v6 }
 0x6da   :  { %v2112_v20 = vmul.f32 %v4796_v50, %v2105_v10 }
 0x6db   :  { %v2097_v21 = vsub.f32 1.5, %v2096_v15 }
 0x6dc   :  { %v6122_v47 = vadd.f32 %v4797_v57, %v2112_v20 }
 0x6dd   :  { %v2098_v49 = vmul.f32 %v4893_v19, %v2097_v21 }
 0x6de   :  { %4581 = vmatmul.msk.f32.gmra.mxu0 %vm284_vm0, %v6122_v47 }
 0x6df   :  { %v2102_v24 = vsel %vm2101_vm8, %v4893_v19, %v2098_v49 }
 0x6e0   :  { %v2106_v8 = vmul.f32 %v2102_v24, %v6085_v32  ;;  %v2344_v32 = vld [vmem:[%s7141_s14 + $0x70] sm:$0xff] }
 0x6e1   :  { %2351 = vmatpush.msra.mxu1 %v2344_v32 }
 0x6e2   :  { %v2113_v11 = vmul.f32 %v4796_v50, %v2106_v8  ;;  %v2336_v50 = vld [vmem:[%s7141_s14 + $0x30] sm:$0xff] }
 0x6e3   :  { %2352 = vmatpush.msra.mxu1 %v2343_v34 }
 0x6e4   :  { %v6127_v2 = vadd.f32 %v4797_v57, %v2113_v11 }
 0x6e5   :  { %2353 = vmatpush.msra.mxu1 %v2342_v38 }
 0x6e6   :  { %4582 = vmatmul.msk.f32.gmra.mxu0 %vm284_vm0, %v6127_v2 }
 0x6e7   :  { %2354 = vmatpush.msra.mxu1 %v2341_v16 }
 0x6e9   :  { %2355 = vmatpush.msra.mxu1 %v2340_v37 }
 0x6eb   :  { %2356 = vmatpush.msra.mxu1 %v2339_v25 }
 0x6ed   :  { %2357 = vmatpush.msra.mxu1 %v2338_v26 }
 0x6ef   :  { %2358 = vmatpush.msra.mxu1 %v2337_v51 }
 0x6f1   :  { %2359 = vmatpush.msra.mxu1 %v2336_v50 }
 0x6f3   :  { %2360 = vmatpush.msra.mxu1 %v2335_v42 }
 0x6f5   :  { %2361 = vmatpush.msra.mxu1 %v2334_v63 }
 0x6f7   :  { %2362 = vmatpush.msra.mxu1 %v2333_v36 }
 0x6f9   :  { %2363 = vmatpush.msra.mxu1 %v2332_v0 }
 0x6fb   :  { %2364 = vmatpush.msra.mxu1 %v2331_v1 }
 0x6fd   :  { %2365 = vmatpush.msra.mxu1 %v2330_v5 }
 0x748   :  { %v2158_v31 = vpop.f32.mrf.mxu0 }
 0x749   :  { %v6140_v33 = vadd.f32 %v6134_v9, %v2158_v31 }
 0x74b   :  { %v6146_v22 = vmul.f32 0.70710677, %v6140_v33 }
 0x74d   :  { %v6152_v12 = vand.u32 2147483647, %v6146_v22 }
 0x74f   :  { %v2182_v45 = vmul.f32 0.3275911, %v6152_v12  ;;  %v2286_v18 = vsub.f32 0.0, %v6152_v12 }
 0x751   :  { %v2186_v7 = vadd.f32 1.0, %v2182_v45  ;;  %v2290_v20 = vmul.f32 %v2286_v18, %v6152_v12 }
 0x753   :  { %4894 = vrcp.f32 %v2186_v7  ;;  %v2161_v29 = vpop.f32.mrf.mxu0  ;;  %v2201_v60 = vand.u32 2147483648, %v2186_v7  ;;  %v2199_v61 = vand.u32 2147483647, %v2186_v7  ;;  %vm2195_vm12 = vweird.f32 %v2186_v7 }
 0x754   :  { %v6165_v39 = vadd.f32 %v6134_v9, %v2161_v29  ;;  %v2294_v32 = vmul.f32 1.442695, %v2290_v20 }
 0x755   :  { %v2202_v3 = vor.u32 1.1754944e-38, %v2201_v60  ;;  %vm2200_vm14 = vcmp.eq.f32.partialorder %v2199_v61, 8.507059e+37 }
 0x756   :  { %v6171_v43 = vmul.f32 0.70710677, %v6165_v39 }
 0x758   :  { %v6177_v30 = vand.u32 2147483647, %v6171_v43 }
 0x759   :  { %v4895_v52 = vpop.eup %4894 }
 0x75a   :  { %v2191_v53 = vmul.f32 %v4895_v52, %v2186_v7  ;;  %v2183_v48 = vmul.f32 0.3275911, %v6177_v30  ;;  %vm2196_vm9 = vweird.f32 %v4895_v52  ;;  %v2287_v25 = vsub.f32 0.0, %v6177_v30 }
 0x75b   :  { %v2164_v46 = vpop.f32.mrf.mxu0  ;;  %vm2197_vm13 = vmor %vm2195_vm12, %vm2196_vm9  ;;  %vm2310_vm9 = vcmp.ge.f32.partialorder %v6146_v22, 0.0 }
 0x75c   :  { %v2192_v54 = vsub.f32 1.0, %v2191_v53  ;;  %v2187_v56 = vadd.f32 1.0, %v2183_v48  ;;  %v6187_v57 = vadd.f32 %v6134_v9, %v2164_v46  ;;  %v2291_v42 = vmul.f32 %v2287_v25, %v6177_v30 }
 0x75e   :  { %v2193_v59 = vmul.f32 %v4895_v52, %v2192_v54  ;;  %4896 = vrcp.f32 %v2187_v56  ;;  %v6196_v35 = vmul.f32 0.70710677, %v6187_v57  ;;  %v2216_v11 = vand.u32 2147483648, %v2187_v56 }
 0x75f   :  { %v2214_v13 = vand.u32 2147483647, %v2187_v56  ;;  %vm2210_vm1 = vweird.f32 %v2187_v56  ;;  %v2296_v18 = vmul.f32 1.442695, %v2291_v42 }
 0x760   :  { %v2194_v40 = vadd.f32 %v4895_v52, %v2193_v59  ;;  %v6205_v17 = vand.u32 2147483647, %v6196_v35  ;;  %v2217_v16 = vor.u32 1.1754944e-38, %v2216_v11 }
 0x761   :  { %vm2215_vm3 = vcmp.eq.f32.partialorder %v2214_v13, 8.507059e+37 }
 0x762   :  { %v2198_v4 = vsel %vm2197_vm13, %v4895_v52, %v2194_v40  ;;  %v2184_v27 = vmul.f32 0.3275911, %v6205_v17 }
 0x763   :  { %v2203_v14 = vsel %vm2200_vm14, %v2202_v3, %v2198_v4  ;;  %v2167_v44 = vpop.f32.mrf.mxu0 }
 0x764   :  { %v4897_v23 = vpop.eup %4896  ;;  %v2250_v19 = vmul.f32 1.0614054, %v2203_v14  ;;  %v6213_v58 = vadd.f32 %v6134_v9, %v2167_v44  ;;  %v2188_v6 = vadd.f32 1.0, %v2184_v27  ;;  %v2288_v27 = vsub.f32 0.0, %v6205_v17 }
 0x765   :  { %v2206_v41 = vmul.f32 %v4897_v23, %v2187_v56  ;;  %vm2211_vm15 = vweird.f32 %v4897_v23 }
 0x766   :  { %v2254_v10 = vadd.f32 -1.4531521, %v2250_v19  ;;  %v6219_v15 = vmul.f32 0.70710677, %v6213_v58  ;;  %4898 = vrcp.f32 %v2188_v6  ;;  %vm2212_vm2 = vmor %vm2210_vm1, %vm2211_vm15  ;;  %v2231_v48 = vand.u32 2147483648, %v2188_v6 }
 0x767   :  { %v2207_v21 = vsub.f32 1.0, %v2206_v41  ;;  %v2229_v50 = vand.u32 2147483647, %v2188_v6  ;;  %vm2225_vm5 = vweird.f32 %v2188_v6  ;;  %vm2311_vm15 = vcmp.ge.f32.partialorder %v6171_v43, 0.0 }
 0x768   :  { %v2258_v49 = vmul.f32 %v2254_v10, %v2203_v14  ;;  %v6223_v24 = vand.u32 2147483647, %v6219_v15  ;;  %v2232_v40 = vor.u32 1.1754944e-38, %v2231_v48  ;;  %vm2312_vm1 = vcmp.ge.f32.partialorder %v6196_v35, 0.0  ;;  %v4799_v35 = vld [vmem:[%s7142_s15] ss:$0 sm:$0xff] }
 0x769   :  { %v2208_v8 = vmul.f32 %v4897_v23, %v2207_v21  ;;  %vm2230_vm7 = vcmp.eq.f32.partialorder %v2229_v50, 8.507059e+37 }
 0x76a   :  { %v2262_v9 = vadd.f32 1.4214138, %v2258_v49  ;;  %v2185_v31 = vmul.f32 0.3275911, %v6223_v24  ;;  %v2292_v49 = vmul.f32 %v2288_v27, %v6205_v17  ;;  %v2289_v22 = vsub.f32 0.0, %v6223_v24 }
 0x76b   :  { %v2209_v34 = vadd.f32 %v4897_v23, %v2208_v8 }
 0x76c   :  { %v2266_v38 = vmul.f32 %v2262_v9, %v2203_v14  ;;  %v6226_v45 = vadd.f32 1.0, %v2185_v31  ;;  %v4899_v12 = vpop.eup %4898  ;;  %v2298_v17 = vmul.f32 1.442695, %v2292_v49 }
 0x76d   :  { %v2213_v7 = vsel %vm2212_vm2, %v4897_v23, %v2209_v34  ;;  %v2221_v29 = vmul.f32 %v4899_v12, %v2188_v6  ;;  %vm2226_vm4 = vweird.f32 %v4899_v12  ;;  %vm2313_vm2 = vcmp.ge.f32.partialorder %v6219_v15, 0.0 }
 0x76e   :  { %v2270_v37 = vadd.f32 -0.28449672, %v2266_v38  ;;  %4900 = vrcp.f32 %v6226_v45  ;;  %v2218_v26 = vsel %vm2215_vm3, %v2217_v16, %v2213_v7  ;;  %vm2227_vm6 = vmor %vm2225_vm5, %vm2226_vm4  ;;  %v2244_v6 = vand.u32 2147483647, %v6226_v45 }
 0x76f   :  { %4902 = vpow2.f32 %v2294_v32  ;;  %v2222_v52 = vsub.f32 1.0, %v2221_v29  ;;  %v2251_v53 = vmul.f32 1.0614054, %v2218_v26  ;;  %vm2240_vm12 = vweird.f32 %v6226_v45 }
 0x770   :  { %v2274_v51 = vmul.f32 %v2270_v37, %v2203_v14  ;;  %4904 = vpow2.f32 %v2296_v18  ;;  %v2170_v32 = vmul.f32 0.5, %v6140_v33  ;;  %vm2245_vm14 = vcmp.eq.f32.partialorder %v2244_v6, 8.507059e+37 }
 0x771   :  { %v2223_v54 = vmul.f32 %v4899_v12, %v2222_v52  ;;  %v2255_v56 = vadd.f32 -1.4531521, %v2251_v53  ;;  %v2293_v53 = vmul.f32 %v2289_v22, %v6223_v24  ;;  %4906 = vpow2.f32 %v2298_v17 }
 0x772   :  { %v2278_v46 = vadd.f32 0.2548296, %v2274_v51 }
 0x773   :  { %v2259_v61 = vmul.f32 %v2255_v56, %v2218_v26  ;;  %v2224_v63 = vadd.f32 %v4899_v12, %v2223_v54  ;;  %v2300_v42 = vmul.f32 1.442695, %v2293_v53 }
 0x774   :  { %v4901_v60 = vpop.eup %4900  ;;  %v2282_v59 = vmul.f32 %v2278_v46, %v2203_v14  ;;  %v2246_v14 = vand.u32 2147483648, %v6226_v45 }
 0x775   :  { %v4903_v36 = vpop.eup %4902  ;;  %v2236_v0 = vmul.f32 %v4901_v60, %v6226_v45  ;;  %v2263_v4 = vadd.f32 1.4214138, %v2259_v61  ;;  %v2228_v1 = vsel %vm2227_vm6, %v4899_v12, %v2224_v63  ;;  %vm2241_vm8 = vweird.f32 %v4901_v60 }
 0x776   :  { %v2302_v3 = vmul.f32 %v4903_v36, %v2282_v59  ;;  %v2233_v23 = vsel %vm2230_vm7, %v2232_v40, %v2228_v1  ;;  %v2247_v9 = vor.u32 1.1754944e-38, %v2246_v14  ;;  %vm2242_vm13 = vmor %vm2240_vm12, %vm2241_vm8  ;;  %v4905_v51 = vpop.eup %4904  ;;  %v2171_v40 = vmul.f32 0.5, %v6165_v39 }
 0x777   :  { %v2237_v44 = vsub.f32 1.0, %v2236_v0  ;;  %v2267_v19 = vmul.f32 %v2263_v4, %v2218_v26  ;;  %v2252_v5 = vmul.f32 1.0614054, %v2233_v23  ;;  %v4907_v36 = vpop.eup %4906  ;;  %4908 = vpow2.f32 %v2300_v42 }
 0x778   :  { %v2306_v30 = vsub.f32 1.0, %v2302_v3 }
 0x779   :  { %v2238_v41 = vmul.f32 %v4901_v60, %v2237_v44  ;;  %v2271_v20 = vadd.f32 -0.28449672, %v2267_v19  ;;  %v2256_v21 = vadd.f32 -1.4531521, %v2252_v5 }
 0x77a   :  { %v2314_v10 = vsub.f32 0.0, %v2306_v30 }
 0x77b   :  { %v2239_v8 = vadd.f32 %v4901_v60, %v2238_v41  ;;  %v2275_v31 = vmul.f32 %v2271_v20, %v2218_v26  ;;  %v2260_v13 = vmul.f32 %v2256_v21, %v2233_v23  ;;  %v2173_v20 = vmul.f32 0.5, %v6213_v58 }
 0x77c   :  { %v2318_v11 = vsel %vm2310_vm9, %v2306_v30, %v2314_v10 }
 0x77d   :  { %v2322_v34 = vadd.f32 1.0, %v2318_v11  ;;  %v2243_v38 = vsel %vm2242_vm13, %v4901_v60, %v2239_v8  ;;  %v2279_v12 = vadd.f32 0.2548296, %v2275_v31  ;;  %v2264_v16 = vadd.f32 1.4214138, %v2260_v13  ;;  %v4909_v43 = vpop.eup %4908 }
 0x77e   :  { %v2248_v7 = vsel %vm2245_vm14, %v2247_v9, %v2243_v38 }
 0x77f   :  { %v2326_v37 = vmul.f32 %v2322_v34, %v2170_v32  ;;  %v2253_v29 = vmul.f32 1.0614054, %v2248_v7  ;;  %v2283_v45 = vmul.f32 %v2279_v12, %v2218_v26  ;;  %v2268_v25 = vmul.f32 %v2264_v16, %v2233_v23 }
 0x781   :  { %2366 = vmatmul.f32.vlgmr.msra.gmra.mxu1 %v2326_v37  ;;  %v2257_v52 = vadd.f32 -1.4531521, %v2253_v29  ;;  %v2303_v48 = vmul.f32 %v4905_v51, %v2283_v45  ;;  %v2272_v33 = vadd.f32 -0.28449672, %v2268_v25 }
 0x783   :  { %v2261_v50 = vmul.f32 %v2257_v52, %v2248_v7  ;;  %v2307_v46 = vsub.f32 1.0, %v2303_v48  ;;  %v2276_v54 = vmul.f32 %v2272_v33, %v2233_v23 }
 0x785   :  { %v2265_v56 = vadd.f32 1.4214138, %v2261_v50  ;;  %v2315_v60 = vsub.f32 0.0, %v2307_v46  ;;  %v2280_v59 = vadd.f32 0.2548296, %v2276_v54 }
 0x787   :  { %v2269_v61 = vmul.f32 %v2265_v56, %v2248_v7  ;;  %v2319_v26 = vsel %vm2311_vm15, %v2307_v46, %v2315_v60  ;;  %v2284_v63 = vmul.f32 %v2280_v59, %v2233_v23  ;;  %v2172_v23 = vmul.f32 0.5, %v6187_v57 }
 0x788   :  { %v2323_v0 = vadd.f32 1.0, %v2319_v26  ;;  %v4592_v26 = vld [vmem:[%s7167_s28 + $0xb8] sm:$0xff] }
 0x789   :  { %v2273_v24 = vadd.f32 -0.28449672, %v2269_v61  ;;  %v2304_v3 = vmul.f32 %v4907_v36, %v2284_v63  ;;  %v4588_v61 = vld [vmem:[%s7167_s28 + $0x98] sm:$0xff]  ;;  %2559 = vmatpush.msra.mxu3 %v4592_v26  ;;  %v4630_v26 = vld [vmem:[%s7170_s2 + $0xe8] sm:$0xff] }
 0x78a   :  { %v2327_v4 = vmul.f32 %v2323_v0, %v2171_v40  ;;  %v4596_v63 = vld [vmem:[%s7167_s28 + $0xd8] sm:$0xff]  ;;  %2530 = vmatpush.msra.mxu2 %v4588_v61  ;;  %v4587_v40 = vld [vmem:[%s7167_s28 + $0x90] sm:$0xff]  ;;  %v4626_v61 = vld [vmem:[%s7170_s2 + $0xc8] sm:$0xff] }
 0x78b   :  { %v2277_v1 = vmul.f32 %v2273_v24, %v2248_v7  ;;  %v2308_v18 = vsub.f32 1.0, %v2304_v3  ;;  %v4600_v36 = vld [vmem:[%s7167_s28 + $0xf8] sm:$0xff]  ;;  %2588 = vmatpush.msrb.mxu0 %v4596_v63  ;;  %v4591_v0 = vld [vmem:[%s7167_s28 + $0xb0] sm:$0xff] }
 0x78c   :  { %2369 = vmatmul.f32.gmra.mxu1 %v2327_v4  ;;  %v4595_v24 = vld [vmem:[%s7167_s28 + $0xd0] sm:$0xff]  ;;  %2531 = vmatpush.msra.mxu2 %v4587_v40  ;;  %v4617_v40 = vld [vmem:[%s7170_s2 + $0x80] sm:$0xff] }
 0x78d   :  { %v2281_v27 = vadd.f32 0.2548296, %v2277_v1  ;;  %v2316_v44 = vsub.f32 0.0, %v2308_v18  ;;  %2617 = vmatpush.msrb.mxu1 %v4600_v36  ;;  %2560 = vmatpush.msra.mxu3 %v4591_v0  ;;  %v4599_v3 = vld [vmem:[%s7167_s28 + $0xf0] sm:$0xff]  ;;  %v4586_v1 = vld [vmem:[%s7167_s28 + $0x88] sm:$0xff]  ;;  %v4621_v0 = vld [vmem:[%s7170_s2 + $0xa0] sm:$0xff] }
 0x78e   :  { %2589 = vmatpush.msrb.mxu0 %v4595_v24  ;;  %2532 = vmatpush.msra.mxu2 %v4586_v1  ;;  %v4625_v24 = vld [vmem:[%s7170_s2 + $0xc0] sm:$0xff] }
 0x78f   :  { %v2285_v30 = vmul.f32 %v2281_v27, %v2248_v7  ;;  %v2320_v14 = vsel %vm2312_vm1, %v2308_v18, %v2316_v44  ;;  %2618 = vmatpush.msrb.mxu1 %v4599_v3  ;;  %v4590_v18 = vld [vmem:[%s7167_s28 + $0xa8] sm:$0xff]  ;;  %v4629_v3 = vld [vmem:[%s7170_s2 + $0xe0] sm:$0xff] }
 0x790   :  { %v2324_v19 = vadd.f32 1.0, %v2320_v14  ;;  %v4594_v27 = vld [vmem:[%s7167_s28 + $0xc8] sm:$0xff]  ;;  %2561 = vmatpush.msra.mxu3 %v4590_v18  ;;  %v4589_v14 = vld [vmem:[%s7167_s28 + $0xa0] sm:$0xff] }
 0x791   :  { %v2305_v5 = vmul.f32 %v4909_v43, %v2285_v30  ;;  %v4598_v30 = vld [vmem:[%s7167_s28 + $0xe8] sm:$0xff]  ;;  %2590 = vmatpush.msrb.mxu0 %v4594_v27  ;;  %v4585_v43 = vld [vmem:[%s7167_s28 + $0x80] sm:$0xff] }
 0x792   :  { %v2328_v39 = vmul.f32 %v2324_v19, %v2172_v23  ;;  %2619 = vmatpush.msrb.mxu1 %v4598_v30  ;;  %v4593_v23 = vld [vmem:[%s7167_s28 + $0xc0] sm:$0xff]  ;;  %2533 = vmatpush.msra.mxu2 %v4585_v43 }
 0x793   :  { %v2309_v41 = vsub.f32 1.0, %v2305_v5  ;;  %2562 = vmatpush.msra.mxu3 %v4589_v14  ;;  %v4597_v5 = vld [vmem:[%s7167_s28 + $0xe0] sm:$0xff]  ;;  %2591 = vmatpush.msrb.mxu0 %v4593_v23 }
 0x794   :  { %2372 = vmatmul.f32.gmra.mxu1 %v2328_v39 }
 0x795   :  { %v2317_v6 = vsub.f32 0.0, %v2309_v41  ;;  %2620 = vmatpush.msrb.mxu1 %v4597_v5 }
 0x797   :  { %v2321_v10 = vsel %vm2313_vm2, %v2309_v41, %v2317_v6 }
 0x798   :  { %v2325_v21 = vadd.f32 1.0, %v2321_v10 }
 0x79a   :  { %v2329_v49 = vmul.f32 %v2325_v21, %v2173_v20 }
 0x79c   :  { %2375 = vmatmul.f32.gmra.mxu1 %v2329_v49 }
 0x7fe   :  { %v2367_v8 = vpop.f32.mrf.mxu1 }
 0x7ff   :  { %v2368_v57 = vadd.f32 %v4799_v35, %v2367_v8 }
 0x801   :  { %v6251_v11 = vadd.f32 %v2368_v57, %v6111_v62 }
 0x803   :  { %v2387_v9 = vsel %vm284_vm0, %v6251_v11, 0.0 }
 0x804   :  { %2388 = vadd.xlane.f32.xlu0 %v2387_v9  ;;  %v6351_v9 = vld [vmem:[%s7168_s0 + $0x1] ss:$0 sm:$0xff] }
 0x809   :  { %v2370_v15 = vpop.f32.mrf.mxu1 }
 0x80a   :  { %v2371_v31 = vadd.f32 %v4799_v35, %v2370_v15 }
 0x80c   :  { %v6256_v58 = vadd.f32 %v2371_v31, %v6117_v28 }
 0x80e   :  { %v2390_v13 = vsel %vm284_vm0, %v6256_v58, 0.0 }
 0x80f   :  { %2391 = vadd.xlane.f32.xlu1 %v2390_v13 }
 0x811   :  { %v2373_v32 = vpop.f32.mrf.mxu1 }
 0x812   :  { %v2374_v34 = vadd.f32 %v4799_v35, %v2373_v32  ;;  %v6357_v32 = vld [vmem:[%s7169_s5 + $0x1] ss:$0 sm:$0xff]  ;;  %s4458_s5 = sshll.u32 %s7149_s22, 4  ;;  %s4459_s5 = int_to_ptr.hbm [resolvable:$true] %s4458_s5 }
 0x814   :  { %v6261_v38 = vadd.f32 %v2374_v34, %v6122_v47 }
 0x816   :  { %v2393_v62 = vsel %vm284_vm0, %v6261_v38, 0.0 }
 0x817   :  { %2394 = vadd.xlane.f32.xlu2 %v2393_v62 }
 0x819   :  { %v2376_v22 = vpop.f32.mrf.mxu1 }
 0x81a   :  { %v2377_v12 = vadd.f32 %v4799_v35, %v2376_v22 }
 0x81c   :  { %v6266_v16 = vadd.f32 %v2377_v12, %v6127_v2 }
 0x81e   :  { %v2396_v28 = vsel %vm284_vm0, %v6266_v16, 0.0 }
 0x81f   :  { %2397 = vadd.xlane.f32.xlu0 %v2396_v28 }
 0x877   :  { %v2389_v7 = vpop.xlane.xlu0 %2388 }
 0x878   :  { %v2399_v37 = vmul.f32 %v2389_v7, %v5471_v55  ;;  %v4620_v7 = vld [vmem:[%s7170_s2 + $0x98] sm:$0xff] }
 0x879   :  { %2663 = vmatpush.msrb.mxu2 %v4620_v7  ;;  %v4649_v7 = vld [vmem:[%s7134_s7 + $0x80] sm:$0xff] }
 0x87a   :  { %v6272_v17 = vsub.f32 %v6251_v11, %v2399_v37  ;;  %v4624_v37 = vld [vmem:[%s7170_s2 + $0xb8] sm:$0xff] }
 0x87b   :  { %2692 = vmatpush.msrb.mxu3 %v4624_v37  ;;  %v4653_v37 = vld [vmem:[%s7134_s7 + $0xa0] sm:$0xff] }
 0x87c   :  { %v2407_v47 = vmul.f32 %v6272_v17, %v6272_v17 }
 0x87e   :  { %v2411_v29 = vsel %vm284_vm0, %v2407_v47, 0.0 }
 0x87f   :  { %2412 = vadd.xlane.f32.xlu1 %v2411_v29  ;;  %v4632_v29 = vld [vmem:[%s7170_s2 + $0xf8] sm:$0xff] }
 0x880   :  { %2750 = vmatpush.msra.mxu1 %v4632_v29  ;;  %v4661_v29 = vld [vmem:[%s7134_s7 + $0xe0] sm:$0xff] }
 0x882   :  { %v2392_v45 = vpop.xlane.xlu1 %2391 }
 0x883   :  { %v2400_v2 = vmul.f32 %v2392_v45, %v5471_v55 }
 0x885   :  { %v6279_v25 = vsub.f32 %v6256_v58, %v2400_v2 }
 0x887   :  { %v2408_v51 = vmul.f32 %v6279_v25, %v6279_v25 }
 0x889   :  { %v2414_v52 = vsel %vm284_vm0, %v2408_v51, 0.0  ;;  %v4619_v51 = vld [vmem:[%s7170_s2 + $0x90] sm:$0xff] }
 0x88a   :  { %v2395_v53 = vpop.xlane.xlu2 %2394  ;;  %2415 = vadd.xlane.f32.xlu2 %v2414_v52  ;;  %v4623_v52 = vld [vmem:[%s7170_s2 + $0xb0] sm:$0xff]  ;;  %2664 = vmatpush.msrb.mxu2 %v4619_v51 }
 0x88b   :  { %v2401_v48 = vmul.f32 %v2395_v53, %v5471_v55  ;;  %2693 = vmatpush.msrb.mxu3 %v4623_v52 }
 0x88d   :  { %v6286_v33 = vsub.f32 %v6261_v38, %v2401_v48  ;;  %v4627_v48 = vld [vmem:[%s7170_s2 + $0xd0] sm:$0xff] }
 0x88f   :  { %v2409_v50 = vmul.f32 %v6286_v33, %v6286_v33 }
 0x891   :  { %v2417_v46 = vsel %vm284_vm0, %v2409_v50, 0.0  ;;  %v4631_v50 = vld [vmem:[%s7170_s2 + $0xf0] sm:$0xff] }
 0x892   :  { %v2398_v54 = vpop.xlane.xlu0 %2397  ;;  %2418 = vadd.xlane.f32.xlu0 %v2417_v46  ;;  %2751 = vmatpush.msra.mxu1 %v4631_v50 }
 0x893   :  { %v2402_v56 = vmul.f32 %v2398_v54, %v5471_v55  ;;  %v4618_v54 = vld [vmem:[%s7170_s2 + $0x88] sm:$0xff] }
 0x894   :  { %2665 = vmatpush.msrb.mxu2 %v4618_v54  ;;  %2752 = vmatpush.msra.mxu1 %v4630_v26 }
 0x895   :  { %v6293_v42 = vsub.f32 %v6266_v16, %v2402_v56  ;;  %v4622_v56 = vld [vmem:[%s7170_s2 + $0xa8] sm:$0xff] }
 0x896   :  { %2694 = vmatpush.msrb.mxu3 %v4622_v56  ;;  %2666 = vmatpush.msrb.mxu2 %v4617_v40 }
 0x897   :  { %v2410_v60 = vmul.f32 %v6293_v42, %v6293_v42  ;;  %2753 = vmatpush.msra.mxu1 %v4629_v3 }
 0x898   :  { %2695 = vmatpush.msrb.mxu3 %v4621_v0 }
 0x899   :  { %v2420_v59 = vsel %vm284_vm0, %v2410_v60, 0.0 }
 0x89a   :  { %2421 = vadd.xlane.f32.xlu1 %v2420_v59 }
 0x8f2   :  { %v2413_v4 = vpop.xlane.xlu1 %2412 }
 0x8f3   :  { %v2423_v44 = vmul.f32 %v2413_v4, %v5471_v55 }
 0x8f5   :  { %v2427_v19 = vadd.f32 1e-05, %v2423_v44 }
 0x8f7   :  { %4910 = vrsqrt.f32 %v2427_v19  ;;  %vm2437_vm4 = vweird.f32 %v2427_v19 }
 0x8fd   :  { %v4911_v39 = vpop.eup %4910  ;;  %v2416_v6 = vpop.xlane.xlu2 %2415 }
 0x8fe   :  { %v2432_v41 = vmul.f32 %v4911_v39, %v2427_v19  ;;  %v2424_v10 = vmul.f32 %v2416_v6, %v5471_v55  ;;  %vm2438_vm3 = vweird.f32 %v4911_v39 }
 0x8ff   :  { %vm2439_vm5 = vmor %vm2437_vm4, %vm2438_vm3 }
 0x900   :  { %v2433_v20 = vmul.f32 %v4911_v39, %v2432_v41  ;;  %v2428_v21 = vadd.f32 1e-05, %v2424_v10 }
 0x902   :  { %v2434_v49 = vmul.f32 0.5, %v2433_v20  ;;  %4912 = vrsqrt.f32 %v2428_v21  ;;  %vm2447_vm7 = vweird.f32 %v2428_v21 }
 0x904   :  { %v2435_v35 = vsub.f32 1.5, %v2434_v49 }
 0x905   :  { %v2419_v57 = vpop.xlane.xlu0 %2418 }
 0x906   :  { %v2436_v8 = vmul.f32 %v4911_v39, %v2435_v35  ;;  %v2425_v15 = vmul.f32 %v2419_v57, %v5471_v55  ;;  %v4656_v57 = vld [vmem:[%s7134_s7 + $0xb8] sm:$0xff] }
 0x908   :  { %v2440_v31 = vsel %vm2439_vm5, %v4911_v39, %v2436_v8  ;;  %v4913_v13 = vpop.eup %4912  ;;  %v6360_v62 = vadd.f32 1e-05, %v2425_v15  ;;  %v4664_v15 = vld [vmem:[%s7134_s7 + $0xf8] sm:$0xff] }
 0x909   :  { %v2471_v34 = vmul.f32 %v2440_v31, %v6272_v17  ;;  %v2442_v22 = vmul.f32 %v4913_v13, %v2428_v21  ;;  %v4628_v17 = vld [vmem:[%s7170_s2 + $0xd8] sm:$0xff]  ;;  %vm2448_vm6 = vweird.f32 %v4913_v13  ;;  %v4651_v31 = vld [vmem:[%s7134_s7 + $0x90] sm:$0xff] }
 0x90a   :  { %4914 = vrsqrt.f32 %v6360_v62  ;;  %2721 = vmatpush.msra.mxu0 %v4628_v17  ;;  %vm2449_vm8 = vmor %vm2447_vm7, %vm2448_vm6  ;;  %vm2457_vm12 = vweird.f32 %v6360_v62  ;;  %v4657_v17 = vld [vmem:[%s7134_s7 + $0xc0] sm:$0xff] }
 0x90b   :  { %v2478_v12 = vmul.f32 %v6351_v9, %v2471_v34  ;;  %v2443_v28 = vmul.f32 %v4913_v13, %v2442_v22  ;;  %v4663_v34 = vld [vmem:[%s7134_s7 + $0xf0] sm:$0xff]  ;;  %v4654_v22 = vld [vmem:[%s7134_s7 + $0xa8] sm:$0xff] }
 0x90c   :  { %2722 = vmatpush.msra.mxu0 %v4627_v48 }
 0x90d   :  { %v6374_v47 = vadd.f32 %v6357_v32, %v2478_v12  ;;  %v2444_v45 = vmul.f32 0.5, %v2443_v28  ;;  %v2422_v2 = vpop.xlane.xlu1 %2421  ;;  %v4658_v12 = vld [vmem:[%s7134_s7 + $0xc8] sm:$0xff] }
 0x90e   :  { %v2426_v53 = vmul.f32 %v2422_v2, %v5471_v55  ;;  %2723 = vmatpush.msra.mxu0 %v4626_v61  ;;  %v4662_v28 = vld [vmem:[%s7134_s7 + $0xe8] sm:$0xff] }
 0x90f   :  { %4601 = vmatmul.msk.f32.vlgmr.msra.gmra.mxu2 %vm284_vm0, %v6374_v47  ;;  %4605 = vmatmul.msk.f32.vlgmr.msra.gmra.mxu3 %vm284_vm0, %v6374_v47  ;;  %v2445_v46 = vsub.f32 1.5, %v2444_v45 }
 0x910   :  { %4609 = vmatmul.msk.f32.vlgmr.msrb.gmra.mxu0 %vm284_vm0, %v6374_v47  ;;  %4613 = vmatmul.msk.f32.vlgmr.msrb.gmra.mxu1 %vm284_vm0, %v6374_v47  ;;  %v4915_v60 = vpop.eup %4914  ;;  %v2430_v59 = vadd.f32 1e-05, %v2426_v53 }
 0x911   :  { %v2446_v63 = vmul.f32 %v4913_v13, %v2445_v46  ;;  %v2452_v36 = vmul.f32 %v4915_v60, %v6360_v62  ;;  %2724 = vmatpush.msra.mxu0 %v4625_v24  ;;  %vm2458_vm9 = vweird.f32 %v4915_v60  ;;  %2825 = vmatpush.msra.mxu3 %v4656_v57  ;;  %v4650_v62 = vld [vmem:[%s7134_s7 + $0x88] sm:$0xff] }
 0x912   :  { %4916 = vrsqrt.f32 %v2430_v59  ;;  %vm2459_vm13 = vmor %vm2457_vm12, %vm2458_vm9  ;;  %vm2467_vm15 = vweird.f32 %v2430_v59  ;;  %2883 = vmatpush.msrb.mxu1 %v4664_v15 }
 0x913   :  { %v2450_v4 = vsel %vm2449_vm8, %v4913_v13, %v2446_v63  ;;  %v2453_v1 = vmul.f32 %v4915_v60, %v2452_v36  ;;  %v4655_v13 = vld [vmem:[%s7134_s7 + $0xb0] sm:$0xff] }
 0x914   :  { %v2472_v18 = vmul.f32 %v2450_v4, %v6279_v25  ;;  %2826 = vmatpush.msra.mxu3 %v4655_v13  ;;  %2884 = vmatpush.msrb.mxu1 %v4663_v34 }
 0x915   :  { %v2454_v27 = vmul.f32 0.5, %v2453_v1 }
 0x916   :  { %v2479_v44 = vmul.f32 %v6351_v9, %v2472_v18  ;;  %2827 = vmatpush.msra.mxu3 %v4654_v22  ;;  %2885 = vmatpush.msrb.mxu1 %v4662_v28 }
 0x917   :  { %v2455_v30 = vsub.f32 1.5, %v2454_v27 }
 0x918   :  { %v4917_v43 = vpop.eup %4916  ;;  %v6429_v14 = vadd.f32 %v6357_v32, %v2479_v44  ;;  %2828 = vmatpush.msra.mxu3 %v4653_v37  ;;  %2886 = vmatpush.msrb.mxu1 %v4661_v29 }
 0x919   :  { %v2456_v23 = vmul.f32 %v4915_v60, %v2455_v30  ;;  %v2462_v19 = vmul.f32 %v4917_v43, %v2430_v59  ;;  %vm2468_vm14 = vweird.f32 %v4917_v43 }
 0x91a   :  { %4602 = vmatmul.msk.f32.gmra.mxu2 %vm284_vm0, %v6429_v14  ;;  %4606 = vmatmul.msk.f32.gmra.mxu3 %vm284_vm0, %v6429_v14  ;;  %vm2469_vm1 = vmor %vm2467_vm15, %vm2468_vm14 }
 0x91b   :  { %v2460_v25 = vsel %vm2459_vm13, %v4915_v60, %v2456_v23  ;;  %v2463_v5 = vmul.f32 %v4917_v43, %v2462_v19  ;;  %4610 = vmatmul.msk.f32.gmra.mxu0 %vm284_vm0, %v6429_v14  ;;  %4614 = vmatmul.msk.f32.gmra.mxu1 %vm284_vm0, %v6429_v14 }
 0x91c   :  { %v2473_v39 = vmul.f32 %v2460_v25, %v6286_v33 }
 0x91d   :  { %v2464_v41 = vmul.f32 0.5, %v2463_v5 }
 0x91e   :  { %v2480_v6 = vmul.f32 %v6351_v9, %v2473_v39 }
 0x91f   :  { %v2465_v10 = vsub.f32 1.5, %v2464_v41 }
 0x920   :  { %v6443_v20 = vadd.f32 %v6357_v32, %v2480_v6 }
 0x921   :  { %v2466_v21 = vmul.f32 %v4917_v43, %v2465_v10 }
 0x922   :  { %4603 = vmatmul.msk.f32.gmra.mxu2 %vm284_vm0, %v6443_v20  ;;  %4607 = vmatmul.msk.f32.gmra.mxu3 %vm284_vm0, %v6443_v20 }
 0x923   :  { %v2470_v49 = vsel %vm2469_vm1, %v4917_v43, %v2466_v21  ;;  %4611 = vmatmul.msk.f32.gmra.mxu0 %vm284_vm0, %v6443_v20  ;;  %4615 = vmatmul.msk.f32.gmra.mxu1 %vm284_vm0, %v6443_v20 }
 0x924   :  { %v2474_v33 = vmul.f32 %v2470_v49, %v6293_v42  ;;  %v4652_v42 = vld [vmem:[%s7134_s7 + $0x98] sm:$0xff] }
 0x925   :  { %2796 = vmatpush.msra.mxu2 %v4652_v42 }
 0x926   :  { %v2481_v35 = vmul.f32 %v6351_v9, %v2474_v33  ;;  %v4660_v9 = vld [vmem:[%s7134_s7 + $0xd8] sm:$0xff] }
 0x927   :  { %2854 = vmatpush.msrb.mxu0 %v4660_v9  ;;  %2797 = vmatpush.msra.mxu2 %v4651_v31 }
 0x928   :  { %v6456_v8 = vadd.f32 %v6357_v32, %v2481_v35  ;;  %v4659_v32 = vld [vmem:[%s7134_s7 + $0xd0] sm:$0xff] }
 0x929   :  { %2855 = vmatpush.msrb.mxu0 %v4659_v32  ;;  %2798 = vmatpush.msra.mxu2 %v4650_v62 }
 0x92a   :  { %4604 = vmatmul.msk.f32.gmra.mxu2 %vm284_vm0, %v6456_v8  ;;  %4608 = vmatmul.msk.f32.gmra.mxu3 %vm284_vm0, %v6456_v8 }
 0x92b   :  { %4612 = vmatmul.msk.f32.gmra.mxu0 %vm284_vm0, %v6456_v8  ;;  %4616 = vmatmul.msk.f32.gmra.mxu1 %vm284_vm0, %v6456_v8 }
 0x92c   :  { %2856 = vmatpush.msrb.mxu0 %v4658_v12  ;;  %2799 = vmatpush.msra.mxu2 %v4649_v7 }
 0x92e   :  { %2857 = vmatpush.msrb.mxu0 %v4657_v17 }
 0x932   :  { %4633 = vmatmul.msk.f32.vlgmr.msrb.gmra.mxu2 %vm284_vm0, %v6374_v47  ;;  %4637 = vmatmul.msk.f32.vlgmr.msrb.gmra.mxu3 %vm284_vm0, %v6374_v47 }
 0x933   :  { %4641 = vmatmul.msk.f32.vlgmr.msra.gmra.mxu0 %vm284_vm0, %v6374_v47  ;;  %4645 = vmatmul.msk.f32.vlgmr.msra.gmra.mxu1 %vm284_vm0, %v6374_v47 }
 0x93a   :  { %4634 = vmatmul.msk.f32.gmra.mxu2 %vm284_vm0, %v6429_v14  ;;  %4638 = vmatmul.msk.f32.gmra.mxu3 %vm284_vm0, %v6429_v14 }
 0x93b   :  { %4642 = vmatmul.msk.f32.gmra.mxu0 %vm284_vm0, %v6429_v14  ;;  %4646 = vmatmul.msk.f32.gmra.mxu1 %vm284_vm0, %v6429_v14 }
 0x942   :  { %4635 = vmatmul.msk.f32.gmra.mxu2 %vm284_vm0, %v6443_v20  ;;  %4639 = vmatmul.msk.f32.gmra.mxu3 %vm284_vm0, %v6443_v20 }
 0x943   :  { %4643 = vmatmul.msk.f32.gmra.mxu0 %vm284_vm0, %v6443_v20  ;;  %4647 = vmatmul.msk.f32.gmra.mxu1 %vm284_vm0, %v6443_v20 }
 0x94a   :  { %4636 = vmatmul.msk.f32.gmra.mxu2 %vm284_vm0, %v6456_v8  ;;  %4640 = vmatmul.msk.f32.gmra.mxu3 %vm284_vm0, %v6456_v8 }
 0x94b   :  { %4644 = vmatmul.msk.f32.gmra.mxu0 %vm284_vm0, %v6456_v8  ;;  %4648 = vmatmul.msk.f32.gmra.mxu1 %vm284_vm0, %v6456_v8 }
 0x952   :  { %4665 = vmatmul.msk.f32.vlgmr.msra.gmra.mxu2 %vm284_vm0, %v6374_v47  ;;  %4669 = vmatmul.msk.f32.vlgmr.msra.gmra.mxu3 %vm284_vm0, %v6374_v47 }
 0x953   :  { %4673 = vmatmul.msk.f32.vlgmr.msrb.gmra.mxu0 %vm284_vm0, %v6374_v47  ;;  %4677 = vmatmul.msk.f32.vlgmr.msrb.gmra.mxu1 %vm284_vm0, %v6374_v47 }
 0x95a   :  { %4666 = vmatmul.msk.f32.gmra.mxu2 %vm284_vm0, %v6429_v14  ;;  %4670 = vmatmul.msk.f32.gmra.mxu3 %vm284_vm0, %v6429_v14 }
 0x95b   :  { %4674 = vmatmul.msk.f32.gmra.mxu0 %vm284_vm0, %v6429_v14  ;;  %4678 = vmatmul.msk.f32.gmra.mxu1 %vm284_vm0, %v6429_v14 }
 0x962   :  { %4667 = vmatmul.msk.f32.gmra.mxu2 %vm284_vm0, %v6443_v20  ;;  %4671 = vmatmul.msk.f32.gmra.mxu3 %vm284_vm0, %v6443_v20 }
 0x963   :  { %4675 = vmatmul.msk.f32.gmra.mxu0 %vm284_vm0, %v6443_v20  ;;  %4679 = vmatmul.msk.f32.gmra.mxu1 %vm284_vm0, %v6443_v20 }
 0x96a   :  { %4668 = vmatmul.msk.f32.gmra.mxu2 %vm284_vm0, %v6456_v8  ;;  %4672 = vmatmul.msk.f32.gmra.mxu3 %vm284_vm0, %v6456_v8 }
 0x96b   :  { %4676 = vmatmul.msk.f32.gmra.mxu0 %vm284_vm0, %v6456_v8  ;;  %4680 = vmatmul.msk.f32.gmra.mxu1 %vm284_vm0, %v6456_v8 }
 0x98d   :  { %v2593_v47 = vpop.f32.mrf.mxu0  ;;  %v6578_v45 = vpop.f32.mrf.mxu1 }
 0x992   :  { %v2535_v2 = vpop.f32.mrf.mxu2  ;;  %v2564_v51 = vpop.f32.mrf.mxu3 }
 0x998   :  { %v2596_v52 = vpop.f32.mrf.mxu0  ;;  %v6580_v53 = vpop.f32.mrf.mxu1 }
 0x99d   :  { %v2538_v48 = vpop.f32.mrf.mxu2  ;;  %v2567_v50 = vpop.f32.mrf.mxu3 }
 0x9a0   :  { %v2599_v46 = vpop.f32.mrf.mxu0  ;;  %v6582_v54 = vpop.f32.mrf.mxu1 }
 0x9a5   :  { %v2541_v56 = vpop.f32.mrf.mxu2  ;;  %v6584_v60 = vpop.f32.mrf.mxu3 }
 0x9a8   :  { %v2602_v59 = vpop.f32.mrf.mxu0  ;;  %v6586_v61 = vpop.f32.mrf.mxu1 }
 0x9ad   :  { %v2544_v26 = vpop.f32.mrf.mxu2  ;;  %v6588_v63 = vpop.f32.mrf.mxu3 }
 0x9b0   :  { %v2726_v36 = vpop.f32.mrf.mxu0  ;;  %v2755_v40 = vpop.f32.mrf.mxu1 }
 0x9b5   :  { %v2668_v0 = vpop.f32.mrf.mxu2  ;;  %v2697_v24 = vpop.f32.mrf.mxu3 }
 0x9b8   :  { %v2729_v3 = vpop.f32.mrf.mxu0  ;;  %v2758_v4 = vpop.f32.mrf.mxu1 }
 0x9b9   :  { %4697 = vmatpush.xpose.msk.msra.mxu0 %vm1103_vm10, %v2729_v3 }
 0x9bd   :  { %4698 = vmatpush.xpose.msk.msra.mxu0 %vm1103_vm10, %v2726_v36  ;;  %v2671_v1 = vpop.f32.mrf.mxu2  ;;  %v2700_v18 = vpop.f32.mrf.mxu3 }
 0x9be   :  { %4681 = vmatpush.xpose.msk.msrb.mxu2 %vm1103_vm10, %v2671_v1 }
 0x9c0   :  { %v2732_v27 = vpop.f32.mrf.mxu0  ;;  %4699 = vmatmul.msk.f32.vlgmr.msra.gmra.mxu0 %vm1103_vm10, %v2593_v47  ;;  %v2761_v44 = vpop.f32.mrf.mxu1 }
 0x9c2   :  { %4682 = vmatpush.xpose.msk.msrb.mxu2 %vm1103_vm10, %v2668_v0 }
 0x9c5   :  { %v2674_v30 = vpop.f32.mrf.mxu2  ;;  %v2703_v43 = vpop.f32.mrf.mxu3  ;;  %4683 = vmatmul.msk.f32.vlgmr.msrb.gmra.mxu2 %vm1103_vm10, %v2535_v2 }
 0x9c6   :  { %4689 = vmatpush.xpose.msk.msra.mxu2 %vm1103_vm10, %v2700_v18 }
 0x9c8   :  { %v2735_v14 = vpop.f32.mrf.mxu0  ;;  %4700 = vmatmul.msk.f32.gmra.mxu0 %vm1103_vm10, %v2596_v52  ;;  %v2764_v23 = vpop.f32.mrf.mxu1 }
 0x9c9   :  { %4701 = vmatpush.xpose.msk.msra.mxu1 %vm1103_vm10, %v2735_v14 }
 0x9ca   :  { %4690 = vmatpush.xpose.msk.msra.mxu2 %vm1103_vm10, %v2697_v24 }
 0x9cd   :  { %4702 = vmatpush.xpose.msk.msra.mxu1 %vm1103_vm10, %v2732_v27  ;;  %v2677_v19 = vpop.f32.mrf.mxu2  ;;  %v2706_v25 = vpop.f32.mrf.mxu3  ;;  %4684 = vmatmul.msk.f32.gmra.mxu2 %vm1103_vm10, %v2538_v48 }
 0x9ce   :  { %4705 = vmatpush.xpose.msk.msrb.mxu2 %vm1103_vm10, %v2758_v4  ;;  %4685 = vmatpush.xpose.msk.msrb.mxu3 %vm1103_vm10, %v2677_v19 }
 0x9d0   :  { %4703 = vmatmul.msk.f32.vlgmr.msra.gmra.mxu1 %vm1103_vm10, %v2599_v46  ;;  %v2859_v5 = vpop.f32.mrf.mxu0  ;;  %v2888_v6 = vpop.f32.mrf.mxu1 }
 0x9d2   :  { %4706 = vmatpush.xpose.msk.msrb.mxu2 %vm1103_vm10, %v2755_v40  ;;  %4686 = vmatpush.xpose.msk.msrb.mxu3 %vm1103_vm10, %v2674_v30 }
 0x9d5   :  { %v2801_v39 = vpop.f32.mrf.mxu2  ;;  %v2830_v41 = vpop.f32.mrf.mxu3  ;;  %4687 = vmatmul.msk.f32.vlgmr.msrb.gmra.mxu3 %vm1103_vm10, %v2541_v56  ;;  %4691 = vmatmul.msk.f32.vlgmr.msra.gmra.mxu2 %vm1103_vm10, %v2564_v51 }
 0x9d6   :  { %4693 = vmatpush.xpose.msk.msra.mxu3 %vm1103_vm10, %v2706_v25 }
 0x9d8   :  { %4704 = vmatmul.msk.f32.gmra.mxu1 %vm1103_vm10, %v2602_v59  ;;  %v2862_v10 = vpop.f32.mrf.mxu0  ;;  %v2891_v49 = vpop.f32.mrf.mxu1 }
 0x9da   :  { %4694 = vmatpush.xpose.msk.msra.mxu3 %vm1103_vm10, %v2703_v43 }
 0x9dd   :  { %v2804_v20 = vpop.f32.mrf.mxu2  ;;  %v2833_v21 = vpop.f32.mrf.mxu3  ;;  %4688 = vmatmul.msk.f32.gmra.mxu3 %vm1103_vm10, %v2544_v26  ;;  %4692 = vmatmul.msk.f32.gmra.mxu2 %vm1103_vm10, %v2567_v50 }
 0x9de   :  { %4709 = vmatpush.xpose.msk.msrb.mxu3 %vm1103_vm10, %v2764_v23  ;;  %3392 = vmatpush.msrb.mxu0 %v2804_v20 }
 0x9df   :  { %3450 = vmatpush.msra.mxu2 %v2833_v21 }
 0x9e0   :  { %3393 = vmatpush.msrb.mxu0 %v2801_v39  ;;  %v2865_v8 = vpop.f32.mrf.mxu0  ;;  %v2894_v42 = vpop.f32.mrf.mxu1 }
 0x9e1   :  { %3451 = vmatpush.msra.mxu2 %v2830_v41 }
 0x9e2   :  { %4710 = vmatpush.xpose.msk.msrb.mxu3 %vm1103_vm10, %v2761_v44  ;;  %3508 = vmatpush.msra.mxu0 %v2862_v10 }
 0x9e4   :  { %3509 = vmatpush.msra.mxu0 %v2859_v5 }
 0x9e5   :  { %v2807_v33 = vpop.f32.mrf.mxu2  ;;  %v2836_v35 = vpop.f32.mrf.mxu3  ;;  %4695 = vmatmul.msk.f32.vlgmr.msra.gmra.mxu3 %vm1103_vm10, %v6584_v60  ;;  %4707 = vmatmul.msk.f32.vlgmr.msrb.gmra.mxu2 %vm1103_vm10, %v6578_v45 }
 0x9e6   :  { %3566 = vmatpush.msrb.mxu2 %v2891_v49 }
 0x9e8   :  { %3567 = vmatpush.msrb.mxu2 %v2888_v6  ;;  %v2868_v15 = vpop.f32.mrf.mxu0  ;;  %v2897_v31 = vpop.f32.mrf.mxu1 }
 0x9ed   :  { %v2810_v57 = vpop.f32.mrf.mxu2  ;;  %v2839_v9 = vpop.f32.mrf.mxu3  ;;  %4696 = vmatmul.msk.f32.gmra.mxu3 %vm1103_vm10, %v6588_v63  ;;  %4708 = vmatmul.msk.f32.gmra.mxu2 %vm1103_vm10, %v6580_v53 }
 0x9ee   :  { %3421 = vmatpush.msrb.mxu1 %v2810_v57  ;;  %3479 = vmatpush.msra.mxu3 %v2839_v9 }
 0x9f0   :  { %3422 = vmatpush.msrb.mxu1 %v2807_v33  ;;  %3480 = vmatpush.msra.mxu3 %v2836_v35 }
 0x9f2   :  { %3537 = vmatpush.msra.mxu1 %v2868_v15 }
 0x9f4   :  { %3538 = vmatpush.msra.mxu1 %v2865_v8 }
 0x9f5   :  { %4711 = vmatmul.msk.f32.vlgmr.msrb.gmra.mxu3 %vm1103_vm10, %v6582_v54 }
 0x9f6   :  { %3595 = vmatpush.msrb.mxu3 %v2897_v31 }
 0x9f8   :  { %3596 = vmatpush.msrb.mxu3 %v2894_v42 }
 0x9fd   :  { %4712 = vmatmul.msk.f32.gmra.mxu3 %vm1103_vm10, %v6586_v61 }
 0xa3d   :  { %v3069_v46 = vpop.f32.mrf.mxu0 }
 0xa3e   :  { %v6656_v59 = vmul.f32 0.35355338, %v3069_v46 }
 0xa40   :  { %v3220_v0 = vsel %vm1400_vm11, %v6656_v59, -inf }
 0xa45   :  { %v3072_v4 = vpop.f32.mrf.mxu0 }
 0xa46   :  { %v6670_v18 = vmul.f32 0.35355338, %v3072_v4 }
 0xa48   :  { %v2929_v13 = vpop.f32.mrf.mxu2  ;;  %v3223_v23 = vsel %vm1400_vm11, %v6670_v18, -inf }
 0xa49   :  { %v6628_v32 = vmul.f32 0.35355338, %v2929_v13 }
 0xa4b   :  { %v3196_v34 = vsel %vm1400_vm11, %v6628_v32, -inf }
 0xa4c   :  { %3197 = vmax.xlane.f32.xlu0 %v3196_v34 }
 0xa4d   :  { %v3104_v40 = vpop.f32.mrf.mxu1 }
 0xa4e   :  { %v6680_v19 = vmul.f32 0.35355338, %v3104_v40 }
 0xa50   :  { %v2932_v62 = vpop.f32.mrf.mxu2  ;;  %v3226_v41 = vsel %vm1400_vm11, %v6680_v19, -inf }
 0xa51   :  { %v6636_v37 = vmul.f32 0.35355338, %v2932_v62 }
 0xa53   :  { %v3199_v45 = vsel %vm1400_vm11, %v6636_v37, -inf }
 0xa55   :  { %v3107_v14 = vpop.f32.mrf.mxu1 }
 0xa56   :  { %v6682_v25 = vmul.f32 0.35355338, %v3107_v14 }
 0xa58   :  { %v2964_v22 = vpop.f32.mrf.mxu3  ;;  %v2999_v12 = vpop.f32.mrf.mxu2  ;;  %v3229_v10 = vsel %vm1400_vm11, %v6682_v25, -inf }
 0xa59   :  { %v6632_v28 = vmul.f32 0.35355338, %v2999_v12  ;;  %v6644_v51 = vmul.f32 0.35355338, %v2964_v22 }
 0xa5b   :  { %v3208_v7 = vsel %vm1400_vm11, %v6632_v28, -inf  ;;  %v3202_v56 = vsel %vm1400_vm11, %v6644_v51, -inf }
 0xa5c   :  { %3209 = vmax.xlane.f32.xlu2 %v3208_v7 }
 0xa60   :  { %v2967_v17 = vpop.f32.mrf.mxu3  ;;  %v3002_v29 = vpop.f32.mrf.mxu2 }
 0xa61   :  { %v6638_v47 = vmul.f32 0.35355338, %v3002_v29  ;;  %v6668_v1 = vmul.f32 0.35355338, %v2967_v17 }
 0xa63   :  { %v3211_v2 = vsel %vm1400_vm11, %v6638_v47, -inf  ;;  %v3205_v30 = vsel %vm1400_vm11, %v6668_v1, -inf }
 0xa64   :  { %3200 = vmax.xlane.f32.xlu2 %v3199_v45  ;;  %3212 = vmax.xlane.f32.xlu1 %v3211_v2 }
 0xa68   :  { %v3034_v52 = vpop.f32.mrf.mxu3  ;;  %v3139_v53 = vpop.f32.mrf.mxu2 }
 0xa69   :  { %v6646_v48 = vmul.f32 0.35355338, %v3034_v52  ;;  %v6648_v50 = vmul.f32 0.35355338, %v3139_v53 }
 0xa6b   :  { %v3214_v54 = vsel %vm1400_vm11, %v6646_v48, -inf  ;;  %v3232_v60 = vsel %vm1400_vm11, %v6648_v50, -inf }
 0xa6c   :  { %3215 = vmax.xlane.f32.xlu0 %v3214_v54  ;;  %3203 = vmax.xlane.f32.xlu2 %v3202_v56 }
 0xa6d   :  { %3233 = vmax.xlane.f32.xlu1 %v3232_v60 }
 0xa70   :  { %v3037_v61 = vpop.f32.mrf.mxu3  ;;  %v3142_v26 = vpop.f32.mrf.mxu2 }
 0xa71   :  { %v6658_v63 = vmul.f32 0.35355338, %v3037_v61  ;;  %v6660_v36 = vmul.f32 0.35355338, %v3142_v26 }
 0xa73   :  { %v3217_v24 = vsel %vm1400_vm11, %v6658_v63, -inf  ;;  %v3235_v3 = vsel %vm1400_vm11, %v6660_v36, -inf }
 0xa74   :  { %3221 = vmax.xlane.f32.xlu0 %v3220_v0  ;;  %3236 = vmax.xlane.f32.xlu2 %v3235_v3 }
 0xa75   :  { %3218 = vmax.xlane.f32.xlu1 %v3217_v24 }
 0xa78   :  { %v3174_v27 = vpop.f32.mrf.mxu3 }
 0xa79   :  { %v6672_v44 = vmul.f32 0.35355338, %v3174_v27 }
 0xa7b   :  { %v3238_v43 = vsel %vm1400_vm11, %v6672_v44, -inf }
 0xa7c   :  { %3206 = vmax.xlane.f32.xlu0 %v3205_v30  ;;  %3239 = vmax.xlane.f32.xlu2 %v3238_v43 }
 0xa7d   :  { %3224 = vmax.xlane.f32.xlu1 %v3223_v23 }
 0xa80   :  { %v3177_v5 = vpop.f32.mrf.mxu3 }
 0xa81   :  { %v6684_v39 = vmul.f32 0.35355338, %v3177_v5 }
 0xa83   :  { %v3241_v6 = vsel %vm1400_vm11, %v6684_v39, -inf }
 0xa84   :  { %3227 = vmax.xlane.f32.xlu0 %v3226_v41  ;;  %3230 = vmax.xlane.f32.xlu2 %v3229_v10 }
 0xa85   :  { %3242 = vmax.xlane.f32.xlu1 %v3241_v6 }
 0xabf   :  { %v3198_v20 = vpop.xlane.xlu0 %3197 }
 0xac0   :  { %v3244_v21 = vsub.f32 %v6628_v32, %v3198_v20 }
 0xac2   :  { %v3260_v49 = vmul.f32 1.442695, %v3244_v21 }
 0xac4   :  { %4918 = vpow2.f32 %v3260_v49 }
 0xaca   :  { %v6693_v33 = vpop.eup %4918 }
 0xacb   :  { %v3292_v35 = vsel %vm1400_vm11, %v6693_v33, 0.0 }
 0xacc   :  { %3293 = vadd.xlane.f32.xlu1 %v3292_v35 }
 0xacf   :  { %v3210_v8 = vpop.xlane.xlu2 %3209 }
 0xad0   :  { %v3248_v42 = vsub.f32 %v6632_v28, %v3210_v8 }
 0xad2   :  { %v3268_v57 = vmul.f32 1.442695, %v3248_v42 }
 0xad4   :  { %4920 = vpow2.f32 %v3268_v57 }
 0xad7   :  { %v3201_v9 = vpop.xlane.xlu2 %3200  ;;  %v3213_v15 = vpop.xlane.xlu1 %3212 }
 0xad8   :  { %v3245_v31 = vsub.f32 %v6636_v37, %v3201_v9  ;;  %v3249_v13 = vsub.f32 %v6638_v47, %v3213_v15 }
 0xada   :  { %v6700_v32 = vpop.eup %4920  ;;  %v3262_v34 = vmul.f32 1.442695, %v3245_v31  ;;  %v3270_v62 = vmul.f32 1.442695, %v3249_v13 }
 0xadb   :  { %v3304_v22 = vsel %vm1400_vm11, %v6700_v32, 0.0 }
 0xadc   :  { %4922 = vpow2.f32 %v3262_v34  ;;  %3305 = vadd.xlane.f32.xlu0 %v3304_v22 }
 0xadd   :  { %4924 = vpow2.f32 %v3270_v62 }
 0xadf   :  { %v3216_v12 = vpop.xlane.xlu0 %3215  ;;  %v3204_v28 = vpop.xlane.xlu2 %3203 }
 0xae0   :  { %v3250_v7 = vsub.f32 %v6646_v48, %v3216_v12  ;;  %v3246_v17 = vsub.f32 %v6644_v51, %v3204_v28  ;;  %v3234_v29 = vpop.xlane.xlu1 %3233 }
 0xae1   :  { %v3256_v37 = vsub.f32 %v6648_v50, %v3234_v29 }
 0xae2   :  { %v6707_v47 = vpop.eup %4922  ;;  %v3272_v45 = vmul.f32 1.442695, %v3250_v7  ;;  %v3264_v2 = vmul.f32 1.442695, %v3246_v17 }
 0xae3   :  { %v6709_v52 = vpop.eup %4924  ;;  %v3284_v53 = vmul.f32 1.442695, %v3256_v37  ;;  %v3295_v46 = vsel %vm1400_vm11, %v6707_v47, 0.0 }
 0xae4   :  { %4926 = vpow2.f32 %v3272_v45  ;;  %3296 = vadd.xlane.f32.xlu0 %v3295_v46  ;;  %v3307_v48 = vsel %vm1400_vm11, %v6709_v52, 0.0 }
 0xae5   :  { %4928 = vpow2.f32 %v3264_v2  ;;  %3308 = vadd.xlane.f32.xlu2 %v3307_v48 }
 0xae6   :  { %4930 = vpow2.f32 %v3284_v53 }
 0xae7   :  { %v3222_v51 = vpop.xlane.xlu0 %3221  ;;  %v3237_v50 = vpop.xlane.xlu2 %3236 }
 0xae8   :  { %v3252_v54 = vsub.f32 %v6656_v59, %v3222_v51  ;;  %v3219_v56 = vpop.xlane.xlu1 %3218  ;;  %v3257_v60 = vsub.f32 %v6660_v36, %v3237_v50 }
 0xae9   :  { %v3251_v61 = vsub.f32 %v6658_v63, %v3219_v56 }
 0xaea   :  { %v6718_v26 = vpop.eup %4926  ;;  %v3276_v40 = vmul.f32 1.442695, %v3252_v54  ;;  %v3286_v0 = vmul.f32 1.442695, %v3257_v60 }
 0xaeb   :  { %v6720_v24 = vpop.eup %4928  ;;  %v3274_v3 = vmul.f32 1.442695, %v3251_v61  ;;  %v3310_v4 = vsel %vm1400_vm11, %v6718_v26, 0.0 }
 0xaec   :  { %v6724_v27 = vpop.eup %4930  ;;  %4932 = vpow2.f32 %v3276_v40  ;;  %v3298_v59 = vsel %vm1400_vm11, %v6720_v24, 0.0  ;;  %3311 = vadd.xlane.f32.xlu1 %v3310_v4 }
 0xaed   :  { %4934 = vpow2.f32 %v3274_v3  ;;  %3299 = vadd.xlane.f32.xlu0 %v3298_v59  ;;  %v3328_v63 = vsel %vm1400_vm11, %v6724_v27, 0.0 }
 0xaee   :  { %4936 = vpow2.f32 %v3286_v0  ;;  %3329 = vadd.xlane.f32.xlu2 %v3328_v63 }
 0xaef   :  { %v3207_v36 = vpop.xlane.xlu0 %3206  ;;  %v3240_v30 = vpop.xlane.xlu2 %3239 }
 0xaf0   :  { %v3247_v43 = vsub.f32 %v6668_v1, %v3207_v36  ;;  %v3225_v14 = vpop.xlane.xlu1 %3224  ;;  %v3258_v23 = vsub.f32 %v6672_v44, %v3240_v30 }
 0xaf1   :  { %v3253_v5 = vsub.f32 %v6670_v18, %v3225_v14 }
 0xaf2   :  { %v6733_v41 = vpop.eup %4932  ;;  %v3266_v6 = vmul.f32 1.442695, %v3247_v43  ;;  %v3288_v10 = vmul.f32 1.442695, %v3258_v23 }
 0xaf3   :  { %v6735_v20 = vpop.eup %4934  ;;  %v3278_v21 = vmul.f32 1.442695, %v3253_v5  ;;  %v3316_v49 = vsel %vm1400_vm11, %v6733_v41, 0.0 }
 0xaf4   :  { %v6739_v35 = vpop.eup %4936  ;;  %4938 = vpow2.f32 %v3266_v6  ;;  %3317 = vadd.xlane.f32.xlu1 %v3316_v49  ;;  %v3313_v1 = vsel %vm1400_vm11, %v6735_v20, 0.0 }
 0xaf5   :  { %4940 = vpow2.f32 %v3278_v21  ;;  %v3331_v18 = vsel %vm1400_vm11, %v6739_v35, 0.0 }
 0xaf6   :  { %4942 = vpow2.f32 %v3288_v10  ;;  %3314 = vadd.xlane.f32.xlu2 %v3313_v1  ;;  %3332 = vadd.xlane.f32.xlu0 %v3331_v18 }
 0xaf7   :  { %v3228_v44 = vpop.xlane.xlu0 %3227  ;;  %v3231_v8 = vpop.xlane.xlu2 %3230 }
 0xaf8   :  { %v3254_v42 = vsub.f32 %v6680_v19, %v3228_v44  ;;  %v3243_v57 = vpop.xlane.xlu1 %3242  ;;  %v3255_v9 = vsub.f32 %v6682_v25, %v3231_v8 }
 0xaf9   :  { %v3259_v15 = vsub.f32 %v6684_v39, %v3243_v57 }
 0xafa   :  { %v6748_v31 = vpop.eup %4938  ;;  %v3280_v13 = vmul.f32 1.442695, %v3254_v42  ;;  %v3282_v34 = vmul.f32 1.442695, %v3255_v9 }
 0xafb   :  { %v6750_v62 = vpop.eup %4940  ;;  %v3290_v22 = vmul.f32 1.442695, %v3259_v15  ;;  %v3301_v12 = vsel %vm1400_vm11, %v6748_v31, 0.0 }
 0xafc   :  { %v6754_v28 = vpop.eup %4942  ;;  %4944 = vpow2.f32 %v3280_v13  ;;  %3302 = vadd.xlane.f32.xlu1 %v3301_v12  ;;  %v3319_v19 = vsel %vm1400_vm11, %v6750_v62, 0.0  ;;  %v4730_v12 = vld [vmem:[%s7135_s8 + $0x28] sm:$0xff] }
 0xafd   :  { %4946 = vpow2.f32 %v3290_v22  ;;  %v3334_v25 = vsel %vm1400_vm11, %v6754_v28, 0.0  ;;  %v4729_v22 = vld [vmem:[%s7135_s8 + $0x20] sm:$0xff] }
 0xafe   :  { %4948 = vpow2.f32 %v3282_v34  ;;  %3320 = vadd.xlane.f32.xlu2 %v3319_v19  ;;  %3335 = vadd.xlane.f32.xlu0 %v3334_v25  ;;  %v4732_v19 = vld [vmem:[%s7135_s8 + $0x38] sm:$0xff]  ;;  %v4731_v25 = vld [vmem:[%s7135_s8 + $0x30] sm:$0xff] }
 0xb02   :  { %v6760_v39 = vpop.eup %4944 }
 0xb03   :  { %v6762_v7 = vpop.eup %4946  ;;  %v3322_v17 = vsel %vm1400_vm11, %v6760_v39, 0.0 }
 0xb04   :  { %v6766_v29 = vpop.eup %4948  ;;  %3323 = vadd.xlane.f32.xlu1 %v3322_v17  ;;  %v3337_v37 = vsel %vm1400_vm11, %v6762_v7, 0.0 }
 0xb05   :  { %v3325_v45 = vsel %vm1400_vm11, %v6766_v29, 0.0 }
 0xb06   :  { %3338 = vadd.xlane.f32.xlu2 %v3337_v37  ;;  %3326 = vadd.xlane.f32.xlu0 %v3325_v45 }
 0xb3f   :  { %v3294_v2 = vpop.xlane.xlu1 %3293 }
 0xb40   :  { %4950 = vrcp.f32 %v3294_v2 }
 0xb46   :  { %v4951_v53 = vpop.eup %4950 }
 0xb47   :  { %v3356_v46 = vmul.f32 %v4951_v53, %v6693_v33 }
 0xb49   :  { %4713 = vmatmul.msk.f32.vlgmr.msrb.gmra.mxu0 %vm1400_vm11, %v3356_v46 }
 0xb4a   :  { %3636 = vmatpush.msrb.mxu0 %v4729_v22 }
 0xb4f   :  { %v3306_v48 = vpop.xlane.xlu0 %3305 }
 0xb50   :  { %4952 = vrcp.f32 %v3306_v48 }
 0xb56   :  { %v4953_v51 = vpop.eup %4952 }
 0xb57   :  { %v3360_v50 = vmul.f32 %v4953_v51, %v6700_v32  ;;  %v3297_v54 = vpop.xlane.xlu0 %3296 }
 0xb58   :  { %4954 = vrcp.f32 %v3297_v54  ;;  %v3309_v56 = vpop.xlane.xlu2 %3308 }
 0xb59   :  { %4956 = vrcp.f32 %v3309_v56  ;;  %4717 = vmatmul.msk.f32.vlgmr.msra.gmra.mxu2 %vm1400_vm11, %v3360_v50 }
 0xb5a   :  { %3718 = vmatpush.msra.mxu2 %v4731_v25 }
 0xb5e   :  { %v4955_v60 = vpop.eup %4954 }
 0xb5f   :  { %v4957_v61 = vpop.eup %4956  ;;  %v3312_v40 = vpop.xlane.xlu1 %3311  ;;  %v3357_v0 = vmul.f32 %v4955_v60, %v6707_v47 }
 0xb60   :  { %v3300_v3 = vpop.xlane.xlu0 %3299  ;;  %4958 = vrcp.f32 %v3312_v40  ;;  %v3361_v33 = vmul.f32 %v4957_v61, %v6709_v52 }
 0xb61   :  { %4960 = vrcp.f32 %v3300_v3  ;;  %v3330_v4 = vpop.xlane.xlu2 %3329  ;;  %4714 = vmatmul.msk.f32.gmra.mxu0 %vm1400_vm11, %v3357_v0 }
 0xb62   :  { %4962 = vrcp.f32 %v3330_v4  ;;  %4718 = vmatmul.msk.f32.gmra.mxu2 %vm1400_vm11, %v3361_v33 }
 0xb66   :  { %v4959_v32 = vpop.eup %4958 }
 0xb67   :  { %v4961_v59 = vpop.eup %4960  ;;  %v3362_v63 = vmul.f32 %v4959_v32, %v6718_v26  ;;  %v3318_v36 = vpop.xlane.xlu1 %3317 }
 0xb68   :  { %v4963_v30 = vpop.eup %4962  ;;  %v3358_v43 = vmul.f32 %v4961_v59, %v6720_v24  ;;  %4964 = vrcp.f32 %v3318_v36  ;;  %v4802_v36 = vld [vmem:[%s7136_s9 + $0x1] ss:$0 sm:$0xff] }
 0xb69   :  { %v3368_v47 = vmul.f32 %v4963_v30, %v6724_v27  ;;  %v3333_v14 = vpop.xlane.xlu0 %3332  ;;  %v3315_v52 = vpop.xlane.xlu2 %3314  ;;  %4719 = vmatmul.msk.f32.vlgmr.msra.gmra.mxu3 %vm1400_vm11, %v3362_v63 }
 0xb6a   :  { %4966 = vrcp.f32 %v3333_v14  ;;  %4715 = vmatmul.msk.f32.vlgmr.msrb.gmra.mxu1 %vm1400_vm11, %v3358_v43  ;;  %3759 = vmatpush.msra.mxu3 %v4732_v19 }
 0xb6b   :  { %4968 = vrcp.f32 %v3315_v52  ;;  %4725 = vmatmul.msk.f32.vlgmr.msrb.gmra.mxu2 %vm1400_vm11, %v3368_v47  ;;  %3677 = vmatpush.msrb.mxu1 %v4730_v12 }
 0xb6e   :  { %v4965_v23 = vpop.eup %4964 }
 0xb6f   :  { %v3364_v26 = vmul.f32 %v4965_v23, %v6733_v41  ;;  %v3303_v5 = vpop.xlane.xlu1 %3302 }
 0xb70   :  { %v4967_v6 = vpop.eup %4966  ;;  %4970 = vrcp.f32 %v3303_v5 }
 0xb71   :  { %v4969_v24 = vpop.eup %4968  ;;  %v3336_v10 = vpop.xlane.xlu0 %3335  ;;  %4721 = vmatmul.msk.f32.vlgmr.msra.gmra.mxu0 %vm1400_vm11, %v3364_v26  ;;  %v3369_v27 = vmul.f32 %v4967_v6, %v6739_v35 }
 0xb72   :  { %v3321_v21 = vpop.xlane.xlu2 %3320  ;;  %4972 = vrcp.f32 %v3336_v10  ;;  %v3363_v49 = vmul.f32 %v4969_v24, %v6735_v20 }
 0xb73   :  { %4974 = vrcp.f32 %v3321_v21  ;;  %4726 = vmatmul.msk.f32.gmra.mxu2 %vm1400_vm11, %v3369_v27 }
 0xb74   :  { %4720 = vmatmul.msk.f32.gmra.mxu3 %vm1400_vm11, %v3363_v49 }
 0xb76   :  { %v4971_v1 = vpop.eup %4970 }
 0xb77   :  { %v3324_v41 = vpop.xlane.xlu1 %3323  ;;  %v3359_v18 = vmul.f32 %v4971_v1, %v6748_v31 }
 0xb78   :  { %v4973_v44 = vpop.eup %4972  ;;  %4976 = vrcp.f32 %v3324_v41 }
 0xb79   :  { %v4975_v8 = vpop.eup %4974  ;;  %v3370_v42 = vmul.f32 %v4973_v44, %v6754_v28  ;;  %4716 = vmatmul.msk.f32.gmra.mxu1 %vm1400_vm11, %v3359_v18  ;;  %v3327_v20 = vpop.xlane.xlu0 %3326 }
 0xb7a   :  { %v3339_v57 = vpop.xlane.xlu2 %3338  ;;  %v3365_v35 = vmul.f32 %v4975_v8, %v6750_v62 }
 0xb7b   :  { %4978 = vrcp.f32 %v3339_v57 }
 0xb7c   :  { %4722 = vmatmul.msk.f32.gmra.mxu0 %vm1400_vm11, %v3365_v35  ;;  %4727 = vmatmul.msk.f32.vlgmr.msrb.gmra.mxu3 %vm1400_vm11, %v3370_v42  ;;  %4980 = vrcp.f32 %v3327_v20 }
 0xb7e   :  { %v4977_v9 = vpop.eup %4976 }
 0xb7f   :  { %v3366_v15 = vmul.f32 %v4977_v9, %v6760_v39 }
 0xb81   :  { %v4979_v31 = vpop.eup %4978  ;;  %4723 = vmatmul.msk.f32.vlgmr.msra.gmra.mxu1 %vm1400_vm11, %v3366_v15 }
 0xb82   :  { %v3371_v13 = vmul.f32 %v4979_v31, %v6762_v7  ;;  %v4981_v34 = vpop.eup %4980 }
 0xb83   :  { %v3367_v62 = vmul.f32 %v4981_v34, %v6766_v29 }
 0xb84   :  { %4728 = vmatmul.msk.f32.gmra.mxu3 %vm1400_vm11, %v3371_v13 }
 0xb89   :  { %4724 = vmatmul.msk.f32.gmra.mxu1 %vm1400_vm11, %v3367_v62 }
 0xbc6   :  { %v3395_v28 = vpop.f32.mrf.mxu0 }
 0xbc7   :  { %4733 = vmatmul.msk.f32.vlgmr.msrb.gmra.mxu0 %vm1103_vm10, %v3395_v28 }
 0xbdc   :  { %v3453_v39 = vpop.f32.mrf.mxu2 }
 0xbdd   :  { %4737 = vmatmul.msk.f32.vlgmr.msrb.gmra.mxu1 %vm1103_vm10, %v3453_v39 }
 0xbde   :  { %v3398_v7 = vpop.f32.mrf.mxu0 }
 0xbdf   :  { %4734 = vmatmul.msk.f32.gmra.mxu0 %vm1103_vm10, %v3398_v7 }
 0xbe5   :  { %v3456_v17 = vpop.f32.mrf.mxu2 }
 0xbe6   :  { %4738 = vmatmul.msk.f32.gmra.mxu1 %vm1103_vm10, %v3456_v17 }
 0xbe7   :  { %v3424_v29 = vpop.f32.mrf.mxu1 }
 0xbe8   :  { %4735 = vmatmul.msk.f32.gmra.mxu0 %vm1103_vm10, %v3424_v29 }
 0xbec   :  { %v3482_v37 = vpop.f32.mrf.mxu3 }
 0xbee   :  { %v3569_v45 = vpop.f32.mrf.mxu2  ;;  %4739 = vmatmul.msk.f32.gmra.mxu1 %vm1103_vm10, %v3482_v37  ;;  %v3511_v2 = vpop.f32.mrf.mxu0 }
 0xbef   :  { %4745 = vmatmul.msk.f32.vlgmr.msra.gmra.mxu3 %vm1103_vm10, %v3569_v45  ;;  %4741 = vmatmul.msk.f32.vlgmr.msra.gmra.mxu2 %vm1103_vm10, %v3511_v2 }
 0xbf6   :  { %v3572_v53 = vpop.f32.mrf.mxu2  ;;  %v3427_v46 = vpop.f32.mrf.mxu1 }
 0xbf7   :  { %v3485_v48 = vpop.f32.mrf.mxu3  ;;  %4746 = vmatmul.msk.f32.gmra.mxu3 %vm1103_vm10, %v3572_v53  ;;  %4736 = vmatmul.msk.f32.gmra.mxu0 %vm1103_vm10, %v3427_v46 }
 0xbf8   :  { %4740 = vmatmul.msk.f32.gmra.mxu1 %vm1103_vm10, %v3485_v48 }
 0xbf9   :  { %v3514_v51 = vpop.f32.mrf.mxu0 }
 0xbfa   :  { %4742 = vmatmul.msk.f32.gmra.mxu2 %vm1103_vm10, %v3514_v51 }
 0xbfe   :  { %v3540_v50 = vpop.f32.mrf.mxu1 }
 0xbff   :  { %v3598_v54 = vpop.f32.mrf.mxu3 }
 0xc00   :  { %4747 = vmatmul.msk.f32.gmra.mxu3 %vm1103_vm10, %v3598_v54 }
 0xc02   :  { %4743 = vmatmul.msk.f32.gmra.mxu2 %vm1103_vm10, %v3540_v50 }
 0xc06   :  { %v3543_v60 = vpop.f32.mrf.mxu1 }
 0xc07   :  { %v3601_v56 = vpop.f32.mrf.mxu3 }
 0xc08   :  { %4748 = vmatmul.msk.f32.gmra.mxu3 %vm1103_vm10, %v3601_v56 }
 0xc0a   :  { %4744 = vmatmul.msk.f32.gmra.mxu2 %vm1103_vm10, %v3543_v60 }
 0xc44   :  { %v3638_v40 = vpop.f32.mrf.mxu0 }
 0xc45   :  { %v3773_v3 = vsel %vm284_vm0, %v3638_v40, 0.0 }
 0xc5a   :  { %v3679_v61 = vpop.f32.mrf.mxu1 }
 0xc5b   :  { %v3774_v0 = vsel %vm284_vm0, %v3679_v61, 0.0 }
 0xc5c   :  { %v3775_v33 = vadd.f32 %v3774_v0, %v3773_v3  ;;  %v3641_v30 = vpop.f32.mrf.mxu0 }
 0xc5d   :  { %v3780_v6 = vsel %vm284_vm0, %v3641_v30, 0.0 }
 0xc63   :  { %v3682_v43 = vpop.f32.mrf.mxu1 }
 0xc64   :  { %v3781_v23 = vsel %vm284_vm0, %v3682_v43, 0.0 }
 0xc65   :  { %v3782_v10 = vadd.f32 %v3781_v23, %v3780_v6  ;;  %v3644_v49 = vpop.f32.mrf.mxu0  ;;  %v4754_v23 = vld [vmem:[%s7139_s12 + $0x30] sm:$0xff] }
 0xc6b   :  { %v3685_v1 = vpop.f32.mrf.mxu1 }
 0xc6c   :  { %v3788_v8 = vsel %vm284_vm0, %v3685_v1, 0.0 }
 0xc72   :  { %v3761_v4 = vpop.f32.mrf.mxu3  ;;  %v3720_v32 = vpop.f32.mrf.mxu2 }
 0xc73   :  { %v3776_v59 = vsel %vm284_vm0, %v3720_v32, 0.0  ;;  %v3778_v47 = vsel %vm284_vm0, %v3761_v4, 0.0 }
 0xc74   :  { %v3777_v63 = vadd.f32 %v3776_v59, %v3775_v33  ;;  %v3647_v31 = vpop.f32.mrf.mxu0 }
 0xc75   :  { %v3688_v22 = vpop.f32.mrf.mxu1  ;;  %v3794_v28 = vsel %vm284_vm0, %v3647_v31, 0.0  ;;  %v4804_v31 = vld [vmem:[%s7138_s11 + $0x1] ss:$0 sm:$0xff] }
 0xc76   :  { %v3779_v14 = vadd.f32 %v3778_v47, %v3777_v63  ;;  %v3795_v25 = vsel %vm284_vm0, %v3688_v22, 0.0 }
 0xc77   :  { %v3796_v39 = vadd.f32 %v3795_v25, %v3794_v28 }
 0xc78   :  { %v3806_v52 = vadd.f32 %v4802_v36, %v3779_v14 }
 0xc7a   :  { %v3764_v26 = vpop.f32.mrf.mxu3  ;;  %v3810_v5 = vadd.f32 %v3806_v52, %v6251_v11  ;;  %v3787_v11 = vsel %vm284_vm0, %v3644_v49, 0.0  ;;  %v4755_v52 = vld [vmem:[%s7139_s12 + $0x38] sm:$0xff] }
 0xc7b   :  { %v3785_v18 = vsel %vm284_vm0, %v3764_v26, 0.0  ;;  %v3789_v35 = vadd.f32 %v3788_v8, %v3787_v11  ;;  %3954 = vmatpush.msra.mxu0 %v4755_v52  ;;  %v4753_v26 = vld [vmem:[%s7139_s12 + $0x28] sm:$0xff] }
 0xc7c   :  { %v3818_v24 = vsel %vm284_vm0, %v3810_v5, 0.0  ;;  %v4774_v52 = vld [vmem:[%s7141_s14 + $0xe8] sm:$0xff] }
 0xc7d   :  { %v3723_v21 = vpop.f32.mrf.mxu2  ;;  %3819 = vadd.xlane.f32.xlu1 %v3818_v24  ;;  %3955 = vmatpush.msra.mxu0 %v4754_v23 }
 0xc7e   :  { %v3783_v27 = vsel %vm284_vm0, %v3723_v21, 0.0 }
 0xc7f   :  { %v3784_v41 = vadd.f32 %v3783_v27, %v3782_v10  ;;  %3956 = vmatpush.msra.mxu0 %v4753_v26  ;;  %v4773_v26 = vld [vmem:[%s7141_s14 + $0xe0] sm:$0xff] }
 0xc81   :  { %v3786_v44 = vadd.f32 %v3785_v18, %v3784_v41 }
 0xc83   :  { %v3767_v42 = vpop.f32.mrf.mxu3  ;;  %v3807_v57 = vadd.f32 %v4802_v36, %v3786_v44 }
 0xc84   :  { %v3792_v62 = vsel %vm284_vm0, %v3767_v42, 0.0 }
 0xc85   :  { %v3726_v20 = vpop.f32.mrf.mxu2  ;;  %v3811_v9 = vadd.f32 %v3807_v57, %v6256_v58 }
 0xc86   :  { %v3790_v15 = vsel %vm284_vm0, %v3726_v20, 0.0 }
 0xc87   :  { %v3791_v13 = vadd.f32 %v3790_v15, %v3789_v35  ;;  %v3821_v34 = vsel %vm284_vm0, %v3811_v9, 0.0  ;;  %v4803_v35 = vld [vmem:[%s7137_s10 + $0x1] ss:$0 sm:$0xff]  ;;  %s5054_s10 = smov [#allocation3]  }
 0xc88   :  { %3822 = vadd.xlane.f32.xlu2 %v3821_v34  ;;  %s4456_s11 = sshll.u32 %s5054_s10, 4  ;;  %s4457_s11 = int_to_ptr.vmem [resolvable:$true] %s4456_s11 }
 0xc89   :  { %v3793_v12 = vadd.f32 %v3792_v62, %v3791_v13 }
 0xc8b   :  { %v3808_v19 = vadd.f32 %v4802_v36, %v3793_v12  ;;  %v3770_v7 = vpop.f32.mrf.mxu3 }
 0xc8c   :  { %v3799_v2 = vsel %vm284_vm0, %v3770_v7, 0.0 }
 0xc8d   :  { %v3729_v17 = vpop.f32.mrf.mxu2  ;;  %v3812_v58 = vadd.f32 %v3808_v19, %v6261_v38 }
 0xc8e   :  { %v3797_v29 = vsel %vm284_vm0, %v3729_v17, 0.0 }
 0xc8f   :  { %v3798_v37 = vadd.f32 %v3797_v29, %v3796_v39  ;;  %v3824_v45 = vsel %vm284_vm0, %v3812_v58, 0.0 }
 0xc90   :  { %3825 = vadd.xlane.f32.xlu0 %v3824_v45 }
 0xc91   :  { %v3800_v53 = vadd.f32 %v3799_v2, %v3798_v37 }
 0xc93   :  { %v3809_v46 = vadd.f32 %v4802_v36, %v3800_v53 }
 0xc95   :  { %v3813_v48 = vadd.f32 %v3809_v46, %v6266_v16 }
 0xc97   :  { %v3827_v51 = vsel %vm284_vm0, %v3813_v48, 0.0 }
 0xc98   :  { %3828 = vadd.xlane.f32.xlu1 %v3827_v51 }
 0xcf0   :  { %v3820_v50 = vpop.xlane.xlu1 %3819 }
 0xcf1   :  { %v3830_v54 = vmul.f32 %v3820_v50, %v5471_v55 }
 0xcf3   :  { %v3834_v56 = vsub.f32 %v3810_v5, %v3830_v54  ;;  %v4752_v5 = vld [vmem:[%s7139_s12 + $0x20] sm:$0xff] }
 0xcf4   :  { %3957 = vmatpush.msra.mxu0 %v4752_v5 }
 0xcf5   :  { %v3838_v38 = vmul.f32 %v3834_v56, %v3834_v56 }
 0xcf7   :  { %v3842_v60 = vsel %vm284_vm0, %v3838_v38, 0.0 }
 0xcf8   :  { %3843 = vadd.xlane.f32.xlu2 %v3842_v60 }
 0xcfb   :  { %v3823_v61 = vpop.xlane.xlu2 %3822 }
 0xcfc   :  { %v3831_v40 = vmul.f32 %v3823_v61, %v5471_v55 }
 0xcfe   :  { %v6862_v0 = vsub.f32 %v3811_v9, %v3831_v40 }
 0xd00   :  { %v3839_v3 = vmul.f32 %v6862_v0, %v6862_v0 }
 0xd02   :  { %v3845_v16 = vsel %vm284_vm0, %v3839_v3, 0.0 }
 0xd03   :  { %3846 = vadd.xlane.f32.xlu0 %v3845_v16  ;;  %v3826_v33 = vpop.xlane.xlu0 %3825 }
 0xd04   :  { %v3832_v4 = vmul.f32 %v3826_v33, %v5471_v55 }
 0xd06   :  { %v6868_v32 = vsub.f32 %v3812_v58, %v3832_v4 }
 0xd08   :  { %v3840_v59 = vmul.f32 %v6868_v32, %v6868_v32 }
 0xd0a   :  { %v3848_v63 = vsel %vm284_vm0, %v3840_v59, 0.0 }
 0xd0b   :  { %3849 = vadd.xlane.f32.xlu1 %v3848_v63  ;;  %v3829_v36 = vpop.xlane.xlu1 %3828 }
 0xd0c   :  { %v3833_v30 = vmul.f32 %v3829_v36, %v5471_v55 }
 0xd0e   :  { %v6874_v43 = vsub.f32 %v3813_v48, %v3833_v30  ;;  %v4776_v30 = vld [vmem:[%s7141_s14 + $0xf8] sm:$0xff] }
 0xd0f   :  { %4153 = vmatpush.msra.mxu1 %v4776_v30 }
 0xd10   :  { %v3841_v47 = vmul.f32 %v6874_v43, %v6874_v43 }
 0xd12   :  { %v3851_v14 = vsel %vm284_vm0, %v3841_v47, 0.0 }
 0xd13   :  { %3852 = vadd.xlane.f32.xlu2 %v3851_v14 }
 0xd6b   :  { %v3844_v6 = vpop.xlane.xlu2 %3843 }
 0xd6c   :  { %v3854_v24 = vmul.f32 %v3844_v6, %v5471_v55  ;;  %v4772_v6 = vld [vmem:[%s7141_s14 + $0xd8] sm:$0xff] }
 0xd6e   :  { %v3858_v10 = vadd.f32 1e-05, %v3854_v24 }
 0xd70   :  { %4982 = vrsqrt.f32 %v3858_v10  ;;  %vm3868_vm11 = vweird.f32 %v3858_v10 }
 0xd76   :  { %v4983_v21 = vpop.eup %4982  ;;  %v3847_v27 = vpop.xlane.xlu0 %3846 }
 0xd77   :  { %v3863_v49 = vmul.f32 %v4983_v21, %v3858_v10  ;;  %v3855_v1 = vmul.f32 %v3847_v27, %v5471_v55  ;;  %vm3869_vm10 = vweird.f32 %v4983_v21  ;;  %v4771_v10 = vld [vmem:[%s7141_s14 + $0xd0] sm:$0xff]  ;;  %v4770_v27 = vld [vmem:[%s7141_s14 + $0xc8] sm:$0xff] }
 0xd78   :  { %vm3870_vm2 = vmor %vm3868_vm11, %vm3869_vm10 }
 0xd79   :  { %v3864_v41 = vmul.f32 %v4983_v21, %v3863_v49  ;;  %v3859_v18 = vadd.f32 1e-05, %v3855_v1 }
 0xd7b   :  { %v3865_v44 = vmul.f32 0.5, %v3864_v41  ;;  %4984 = vrsqrt.f32 %v3859_v18  ;;  %vm3878_vm4 = vweird.f32 %v3859_v18  ;;  %v4769_v41 = vld [vmem:[%s7141_s14 + $0xc0] sm:$0xff] }
 0xd7d   :  { %v3866_v8 = vsub.f32 1.5, %v3865_v44  ;;  %v4768_v44 = vld [vmem:[%s7141_s14 + $0xb8] sm:$0xff] }
 0xd7e   :  { %v3850_v42 = vpop.xlane.xlu1 %3849 }
 0xd7f   :  { %v3867_v57 = vmul.f32 %v4983_v21, %v3866_v8  ;;  %v3856_v11 = vmul.f32 %v3850_v42, %v5471_v55  ;;  %v4767_v42 = vld [vmem:[%s7141_s14 + $0xb0] sm:$0xff] }
 0xd81   :  { %v4985_v20 = vpop.eup %4984  ;;  %v3871_v9 = vsel %vm3870_vm2, %v4983_v21, %v3867_v57  ;;  %v3860_v15 = vadd.f32 1e-05, %v3856_v11 }
 0xd82   :  { %v3902_v13 = vmul.f32 %v3871_v9, %v3834_v56  ;;  %v3873_v34 = vmul.f32 %v4985_v20, %v3859_v18  ;;  %vm3879_vm3 = vweird.f32 %v4985_v20 }
 0xd83   :  { %4986 = vrsqrt.f32 %v3860_v15  ;;  %vm3880_vm5 = vmor %vm3878_vm4, %vm3879_vm3  ;;  %vm3888_vm7 = vweird.f32 %v3860_v15 }
 0xd84   :  { %v3909_v62 = vmul.f32 %v4803_v35, %v3902_v13  ;;  %v3874_v22 = vmul.f32 %v4985_v20, %v3873_v34  ;;  %v4765_v34 = vld [vmem:[%s7141_s14 + $0xa0] sm:$0xff] }
 0xd86   :  { %v6900_v12 = vadd.f32 %v4804_v31, %v3909_v62  ;;  %v3875_v28 = vmul.f32 0.5, %v3874_v22  ;;  %v3853_v19 = vpop.xlane.xlu2 %3852 }
 0xd87   :  { %v3857_v25 = vmul.f32 %v3853_v19, %v5471_v55  ;;  %v4764_v19 = vld [vmem:[%s7141_s14 + $0x98] sm:$0xff] }
 0xd88   :  { %v3876_v39 = vsub.f32 1.5, %v3875_v28  ;;  %4757 = vmatmul.msk.f32.vlgmr.msra.gmra.mxu0 %vm284_vm0, %v6900_v12 }
 0xd89   :  { %v4987_v7 = vpop.eup %4986  ;;  %v3861_v17 = vadd.f32 1e-05, %v3857_v25 }
 0xd8a   :  { %v3877_v58 = vmul.f32 %v4985_v20, %v3876_v39  ;;  %v3883_v29 = vmul.f32 %v4987_v7, %v3860_v15  ;;  %vm3889_vm6 = vweird.f32 %v4987_v7 }
 0xd8b   :  { %4988 = vrsqrt.f32 %v3861_v17  ;;  %vm3890_vm8 = vmor %vm3888_vm7, %vm3889_vm6  ;;  %vm3898_vm12 = vweird.f32 %v3861_v17 }
 0xd8c   :  { %v3881_v37 = vsel %vm3880_vm5, %v4985_v20, %v3877_v58  ;;  %v3884_v45 = vmul.f32 %v4987_v7, %v3883_v29  ;;  %v4766_v20 = vld [vmem:[%s7141_s14 + $0xa8] sm:$0xff] }
 0xd8d   :  { %v3903_v2 = vmul.f32 %v3881_v37, %v6862_v0 }
 0xd8e   :  { %v3885_v53 = vmul.f32 0.5, %v3884_v45  ;;  %v4761_v45 = vld [vmem:[%s7141_s14 + $0x80] sm:$0xff] }
 0xd8f   :  { %v3910_v46 = vmul.f32 %v4803_v35, %v3903_v2 }
 0xd90   :  { %v3886_v48 = vsub.f32 1.5, %v3885_v53 }
 0xd91   :  { %v4989_v51 = vpop.eup %4988  ;;  %v6906_v50 = vadd.f32 %v4804_v31, %v3910_v46 }
 0xd92   :  { %v3887_v54 = vmul.f32 %v4987_v7, %v3886_v48  ;;  %v3893_v56 = vmul.f32 %v4989_v51, %v3861_v17  ;;  %vm3899_vm9 = vweird.f32 %v4989_v51  ;;  %v4762_v17 = vld [vmem:[%s7141_s14 + $0x88] sm:$0xff] }
 0xd93   :  { %4758 = vmatmul.msk.f32.gmra.mxu0 %vm284_vm0, %v6906_v50  ;;  %vm3900_vm13 = vmor %vm3898_vm12, %vm3899_vm9 }
 0xd94   :  { %v3891_v38 = vsel %vm3890_vm8, %v4987_v7, %v3887_v54  ;;  %v3894_v60 = vmul.f32 %v4989_v51, %v3893_v56  ;;  %v4763_v7 = vld [vmem:[%s7141_s14 + $0x90] sm:$0xff] }
 0xd95   :  { %v3904_v61 = vmul.f32 %v3891_v38, %v6868_v32  ;;  %v6923_v32 = vld [vmem:[%s7140_s13 + $0x1] ss:$0 sm:$0xff] }
 0xd96   :  { %v3895_v40 = vmul.f32 0.5, %v3894_v60 }
 0xd97   :  { %v3911_v0 = vmul.f32 %v4803_v35, %v3904_v61 }
 0xd98   :  { %v3896_v3 = vsub.f32 1.5, %v3895_v40 }
 0xd99   :  { %v6911_v16 = vadd.f32 %v4804_v31, %v3911_v0 }
 0xd9a   :  { %v3897_v33 = vmul.f32 %v4989_v51, %v3896_v3 }
 0xd9b   :  { %4759 = vmatmul.msk.f32.gmra.mxu0 %vm284_vm0, %v6911_v16 }
 0xd9c   :  { %v3901_v4 = vsel %vm3900_vm13, %v4989_v51, %v3897_v33 }
 0xd9d   :  { %v3905_v59 = vmul.f32 %v3901_v4, %v6874_v43  ;;  %v4775_v43 = vld [vmem:[%s7141_s14 + $0xf0] sm:$0xff] }
 0xd9e   :  { %4154 = vmatpush.msra.mxu1 %v4775_v43 }
 0xd9f   :  { %v3912_v63 = vmul.f32 %v4803_v35, %v3905_v59 }
 0xda0   :  { %4155 = vmatpush.msra.mxu1 %v4774_v52 }
 0xda1   :  { %v6916_v36 = vadd.f32 %v4804_v31, %v3912_v63 }
 0xda2   :  { %4156 = vmatpush.msra.mxu1 %v4773_v26 }
 0xda3   :  { %4760 = vmatmul.msk.f32.gmra.mxu0 %vm284_vm0, %v6916_v36 }
 0xda4   :  { %4157 = vmatpush.msra.mxu1 %v4772_v6 }
 0xda6   :  { %4158 = vmatpush.msra.mxu1 %v4771_v10 }
 0xda8   :  { %4159 = vmatpush.msra.mxu1 %v4770_v27 }
 0xdaa   :  { %4160 = vmatpush.msra.mxu1 %v4769_v41 }
 0xdac   :  { %4161 = vmatpush.msra.mxu1 %v4768_v44 }
 0xdae   :  { %4162 = vmatpush.msra.mxu1 %v4767_v42 }
 0xdb0   :  { %4163 = vmatpush.msra.mxu1 %v4766_v20 }
 0xdb2   :  { %4164 = vmatpush.msra.mxu1 %v4765_v34 }
 0xdb4   :  { %4165 = vmatpush.msra.mxu1 %v4764_v19 }
 0xdb6   :  { %4166 = vmatpush.msra.mxu1 %v4763_v7 }
 0xdb8   :  { %4167 = vmatpush.msra.mxu1 %v4762_v17 }
 0xdba   :  { %4168 = vmatpush.msra.mxu1 %v4761_v45 }
 0xe05   :  { %v3959_v47 = vpop.f32.mrf.mxu0 }
 0xe06   :  { %v6932_v14 = vadd.f32 %v6923_v32, %v3959_v47 }
 0xe08   :  { %v6938_v23 = vmul.f32 0.70710677, %v6932_v14 }
 0xe0a   :  { %v6944_v5 = vand.u32 2147483647, %v6938_v23  ;;  %vm4111_vm12 = vcmp.ge.f32.partialorder %v6938_v23, 0.0 }
 0xe0c   :  { %v3983_v24 = vmul.f32 0.3275911, %v6944_v5  ;;  %v4087_v53 = vsub.f32 0.0, %v6944_v5 }
 0xe0e   :  { %v3987_v21 = vadd.f32 1.0, %v3983_v24  ;;  %v4091_v0 = vmul.f32 %v4087_v53, %v6944_v5 }
 0xe10   :  { %4990 = vrcp.f32 %v3987_v21  ;;  %v3962_v49 = vpop.f32.mrf.mxu0  ;;  %v4002_v62 = vand.u32 2147483648, %v3987_v21  ;;  %v4000_v28 = vand.u32 2147483647, %v3987_v21  ;;  %vm3996_vm15 = vweird.f32 %v3987_v21 }
 0xe11   :  { %v6957_v1 = vadd.f32 %v6923_v32, %v3962_v49  ;;  %v4095_v47 = vmul.f32 1.442695, %v4091_v0 }
 0xe12   :  { %v4003_v58 = vor.u32 1.1754944e-38, %v4002_v62  ;;  %vm4001_vm10 = vcmp.eq.f32.partialorder %v4000_v28, 8.507059e+37 }
 0xe13   :  { %v6963_v18 = vmul.f32 0.70710677, %v6957_v1 }
 0xe15   :  { %v6969_v8 = vand.u32 2147483647, %v6963_v18 }
 0xe16   :  { %v4991_v57 = vpop.eup %4990 }
 0xe17   :  { %v3992_v11 = vmul.f32 %v4991_v57, %v3987_v21  ;;  %v3984_v35 = vmul.f32 0.3275911, %v6969_v8  ;;  %vm3997_vm14 = vweird.f32 %v4991_v57  ;;  %v4088_v41 = vsub.f32 0.0, %v6969_v8 }
 0xe18   :  { %v3965_v9 = vpop.f32.mrf.mxu0  ;;  %vm3998_vm1 = vmor %vm3996_vm15, %vm3997_vm14 }
 0xe19   :  { %v3993_v15 = vsub.f32 1.0, %v3992_v11  ;;  %v3988_v31 = vadd.f32 1.0, %v3984_v35  ;;  %v6979_v13 = vadd.f32 %v6923_v32, %v3965_v9  ;;  %v4092_v62 = vmul.f32 %v4088_v41, %v6969_v8 }
 0xe1b   :  { %v3994_v22 = vmul.f32 %v4991_v57, %v3993_v15  ;;  %4992 = vrcp.f32 %v3988_v31  ;;  %v6988_v25 = vmul.f32 0.70710677, %v6979_v13  ;;  %vm4011_vm2 = vweird.f32 %v3988_v31 }
 0xe1c   :  { %v4015_v43 = vand.u32 2147483647, %v3988_v31 }
 0xe1d   :  { %v3995_v39 = vadd.f32 %v4991_v57, %v3994_v22  ;;  %v6997_v29 = vand.u32 2147483647, %v6988_v25 }
 0xe1e   :  { %vm4016_vm4 = vcmp.eq.f32.partialorder %v4015_v43, 8.507059e+37 }
 0xe1f   :  { %v3999_v37 = vsel %vm3998_vm1, %v4991_v57, %v3995_v39  ;;  %v3985_v46 = vmul.f32 0.3275911, %v6997_v29  ;;  %vm4112_vm1 = vcmp.ge.f32.partialorder %v6963_v18, 0.0 }
 0xe20   :  { %v4004_v2 = vsel %vm4001_vm10, %v4003_v58, %v3999_v37  ;;  %v3968_v48 = vpop.f32.mrf.mxu0  ;;  %v4089_v37 = vsub.f32 0.0, %v6997_v29  ;;  %vm4113_vm10 = vcmp.ge.f32.partialorder %v6988_v25, 0.0  ;;  %v4806_v25 = vld [vmem:[%s7142_s15 + $0x1] ss:$0 sm:$0xff] }
 0xe21   :  { %v4993_v51 = vpop.eup %4992  ;;  %v4051_v54 = vmul.f32 1.0614054, %v4004_v2  ;;  %v7005_v56 = vadd.f32 %v6923_v32, %v3968_v48  ;;  %v3989_v60 = vadd.f32 1.0, %v3985_v46  ;;  %v4017_v32 = vand.u32 2147483648, %v3988_v31 }
 0xe22   :  { %v4007_v38 = vmul.f32 %v4993_v51, %v3988_v31  ;;  %vm4012_vm11 = vweird.f32 %v4993_v51 }
 0xe23   :  { %v4055_v61 = vadd.f32 -1.4531521, %v4051_v54  ;;  %v7008_v40 = vmul.f32 0.70710677, %v7005_v56  ;;  %4994 = vrcp.f32 %v3989_v60  ;;  %vm4013_vm3 = vmor %vm4011_vm2, %vm4012_vm11  ;;  %v4018_v21 = vor.u32 1.1754944e-38, %v4017_v32 }
 0xe24   :  { %v4008_v3 = vsub.f32 1.0, %v4007_v38  ;;  %v4032_v57 = vand.u32 2147483648, %v3989_v60  ;;  %v4030_v9 = vand.u32 2147483647, %v3989_v60  ;;  %vm4026_vm6 = vweird.f32 %v3989_v60 }
 0xe25   :  { %v4059_v33 = vmul.f32 %v4055_v61, %v4004_v2  ;;  %v7012_v4 = vand.u32 2147483647, %v7008_v40  ;;  %v3971_v61 = vmul.f32 0.5, %v6932_v14  ;;  %vm4114_vm11 = vcmp.ge.f32.partialorder %v7008_v40, 0.0 }
 0xe26   :  { %v4009_v59 = vmul.f32 %v4993_v51, %v4008_v3  ;;  %v4033_v19 = vor.u32 1.1754944e-38, %v4032_v57  ;;  %vm4031_vm8 = vcmp.eq.f32.partialorder %v4030_v9, 8.507059e+37 }
 0xe27   :  { %v4063_v63 = vadd.f32 1.4214138, %v4059_v33  ;;  %v3986_v30 = vmul.f32 0.3275911, %v7012_v4  ;;  %v4093_v33 = vmul.f32 %v4089_v37, %v6997_v29  ;;  %v4090_v14 = vsub.f32 0.0, %v7012_v4 }
 0xe28   :  { %v4010_v52 = vadd.f32 %v4993_v51, %v4009_v59 }
 0xe29   :  { %v4067_v26 = vmul.f32 %v4063_v63, %v4004_v2  ;;  %v3990_v6 = vadd.f32 1.0, %v3986_v30  ;;  %v4995_v5 = vpop.eup %4994 }
 0xe2a   :  { %v4014_v24 = vsel %vm4013_vm3, %v4993_v51, %v4010_v52  ;;  %v4022_v27 = vmul.f32 %v4995_v5, %v3989_v60  ;;  %vm4027_vm5 = vweird.f32 %v4995_v5  ;;  %v4097_v51 = vmul.f32 1.442695, %v4092_v62 }
 0xe2b   :  { %v4071_v10 = vadd.f32 -0.28449672, %v4067_v26  ;;  %4996 = vrcp.f32 %v3990_v6  ;;  %v4019_v42 = vsel %vm4016_vm4, %v4018_v21, %v4014_v24  ;;  %vm4028_vm7 = vmor %vm4026_vm6, %vm4027_vm5  ;;  %v4045_v38 = vand.u32 2147483647, %v3990_v6 }
 0xe2c   :  { %4998 = vpow2.f32 %v4095_v47  ;;  %v4023_v44 = vsub.f32 1.0, %v4022_v27  ;;  %v4052_v11 = vmul.f32 1.0614054, %v4019_v42  ;;  %vm4041_vm13 = vweird.f32 %v3990_v6 }
 0xe2d   :  { %v4075_v49 = vmul.f32 %v4071_v10, %v4004_v2  ;;  %5000 = vpow2.f32 %v4097_v51  ;;  %vm4046_vm15 = vcmp.eq.f32.partialorder %v4045_v38, 8.507059e+37  ;;  %v4099_v10 = vmul.f32 1.442695, %v4093_v33 }
 0xe2e   :  { %v4024_v20 = vmul.f32 %v4995_v5, %v4023_v44  ;;  %v4056_v15 = vadd.f32 -1.4531521, %v4052_v11  ;;  %v4094_v44 = vmul.f32 %v4090_v14, %v7012_v4 }
 0xe2f   :  { %v4079_v35 = vadd.f32 0.2548296, %v4075_v49  ;;  %5002 = vpow2.f32 %v4099_v10 }
 0xe30   :  { %v4025_v22 = vadd.f32 %v4995_v5, %v4024_v20  ;;  %v4060_v7 = vmul.f32 %v4056_v15, %v4019_v42 }
 0xe31   :  { %v4997_v31 = vpop.eup %4996  ;;  %v4083_v34 = vmul.f32 %v4079_v35, %v4004_v2  ;;  %v4047_v2 = vand.u32 2147483648, %v3990_v6 }
 0xe32   :  { %v4999_v28 = vpop.eup %4998  ;;  %v4037_v39 = vmul.f32 %v4997_v31, %v3990_v6  ;;  %v4029_v58 = vsel %vm4028_vm7, %v4995_v5, %v4025_v22  ;;  %v4064_v53 = vadd.f32 1.4214138, %v4060_v7  ;;  %vm4042_vm9 = vweird.f32 %v4997_v31 }
 0xe33   :  { %v4103_v17 = vmul.f32 %v4999_v28, %v4083_v34  ;;  %v4034_v46 = vsel %vm4031_vm8, %v4033_v19, %v4029_v58  ;;  %vm4043_vm14 = vmor %vm4041_vm13, %vm4042_vm9  ;;  %v4048_v30 = vor.u32 1.1754944e-38, %v4047_v2  ;;  %v5001_v41 = vpop.eup %5000  ;;  %v3972_v7 = vmul.f32 0.5, %v6957_v1 }
 0xe34   :  { %v4038_v45 = vsub.f32 1.0, %v4037_v39  ;;  %v4053_v54 = vmul.f32 1.0614054, %v4034_v46  ;;  %v4068_v60 = vmul.f32 %v4064_v53, %v4019_v42 }
 0xe35   :  { %v4107_v48 = vsub.f32 1.0, %v4103_v17  ;;  %v5003_v19 = vpop.eup %5002 }
 0xe36   :  { %v4039_v8 = vmul.f32 %v4997_v31, %v4038_v45  ;;  %v4057_v3 = vadd.f32 -1.4531521, %v4053_v54  ;;  %v4072_v59 = vadd.f32 -0.28449672, %v4068_v60 }
 0xe37   :  { %v4115_v0 = vsub.f32 0.0, %v4107_v48 }
 0xe38   :  { %v4040_v63 = vadd.f32 %v4997_v31, %v4039_v8  ;;  %v4061_v47 = vmul.f32 %v4057_v3, %v4034_v46  ;;  %v4076_v52 = vmul.f32 %v4072_v59, %v4019_v42 }
 0xe39   :  { %v4119_v32 = vsel %vm4111_vm12, %v4107_v48, %v4115_v0  ;;  %v3974_v0 = vmul.f32 0.5, %v7005_v56 }
 0xe3a   :  { %v4123_v43 = vadd.f32 1.0, %v4119_v32  ;;  %v4044_v26 = vsel %vm4043_vm14, %v4997_v31, %v4040_v63  ;;  %v4065_v5 = vadd.f32 1.4214138, %v4061_v47  ;;  %v4080_v21 = vadd.f32 0.2548296, %v4076_v52 }
 0xe3b   :  { %v4049_v23 = vsel %vm4046_vm15, %v4048_v30, %v4044_v26  ;;  %v4101_v31 = vmul.f32 1.442695, %v4094_v44 }
 0xe3c   :  { %v4127_v24 = vmul.f32 %v4123_v43, %v3971_v61  ;;  %v4054_v29 = vmul.f32 1.0614054, %v4049_v23  ;;  %v4069_v6 = vmul.f32 %v4065_v5, %v4034_v46  ;;  %v4084_v27 = vmul.f32 %v4080_v21, %v4019_v42 }
 0xe3d   :  { %5004 = vpow2.f32 %v4101_v31 }
 0xe3e   :  { %4169 = vmatmul.f32.vlgmr.msra.gmra.mxu1 %v4127_v24  ;;  %v4058_v49 = vadd.f32 -1.4531521, %v4054_v29  ;;  %v4073_v57 = vadd.f32 -0.28449672, %v4069_v6  ;;  %v4104_v11 = vmul.f32 %v5001_v41, %v4084_v27 }
 0xe40   :  { %v4062_v35 = vmul.f32 %v4058_v49, %v4049_v23  ;;  %v4077_v20 = vmul.f32 %v4073_v57, %v4034_v46  ;;  %v4108_v9 = vsub.f32 1.0, %v4104_v11 }
 0xe42   :  { %v4066_v15 = vadd.f32 1.4214138, %v4062_v35  ;;  %v4081_v34 = vadd.f32 0.2548296, %v4077_v20  ;;  %v4116_v62 = vsub.f32 0.0, %v4108_v9 }
 0xe43   :  { %v5005_v2 = vpop.eup %5004 }
 0xe44   :  { %v4070_v22 = vmul.f32 %v4066_v15, %v4049_v23  ;;  %v4085_v28 = vmul.f32 %v4081_v34, %v4034_v46  ;;  %v4120_v42 = vsel %vm4112_vm1, %v4108_v9, %v4116_v62  ;;  %v3973_v46 = vmul.f32 0.5, %v6979_v13 }
 0xe45   :  { %v4124_v4 = vadd.f32 1.0, %v4120_v42  ;;  %vm4318_vm1 = vcmask 7168  }
 0xe46   :  { %v4074_v39 = vadd.f32 -0.28449672, %v4070_v22  ;;  %v4105_v17 = vmul.f32 %v5003_v19, %v4085_v28 }
 0xe47   :  { %v4128_v37 = vmul.f32 %v4124_v4, %v3972_v7 }
 0xe48   :  { %v4078_v58 = vmul.f32 %v4074_v39, %v4049_v23  ;;  %v4109_v45 = vsub.f32 1.0, %v4105_v17 }
 0xe49   :  { %4172 = vmatmul.f32.gmra.mxu1 %v4128_v37 }
 0xe4a   :  { %v4082_v53 = vadd.f32 0.2548296, %v4078_v58  ;;  %v4117_v48 = vsub.f32 0.0, %v4109_v45 }
 0xe4c   :  { %v4086_v51 = vmul.f32 %v4082_v53, %v4049_v23  ;;  %v4121_v18 = vsel %vm4113_vm10, %v4109_v45, %v4117_v48  ;;  %vm4425_vm10 = vcmask 1041409  }
 0xe4d   :  { %v4125_v54 = vadd.f32 1.0, %v4121_v18 }
 0xe4e   :  { %v4106_v8 = vmul.f32 %v5005_v2, %v4086_v51  ;;  %v4807_v51 = vld [vmem:[%s7143_s16] ss:$0 sm:$0xff] }
 0xe4f   :  { %v4129_v38 = vmul.f32 %v4125_v54, %v3973_v46  ;;  %v4808_v54 = vld [vmem:[%s7144_s17] ss:$0 sm:$0xff] }
 0xe50   :  { %v4110_v1 = vsub.f32 1.0, %v4106_v8 }
 0xe51   :  { %4175 = vmatmul.f32.gmra.mxu1 %v4129_v38 }
 0xe52   :  { %v4118_v60 = vsub.f32 0.0, %v4110_v1 }
 0xe54   :  { %v4122_v61 = vsel %vm4114_vm11, %v4110_v1, %v4118_v60  ;;  %vm4449_vm11 = vcmask 123904  }
 0xe55   :  { %v4126_v3 = vadd.f32 1.0, %v4122_v61  ;;  %v4809_v61 = vld [vmem:[%s7145_s18] ss:$0 sm:$0xff] }
 0xe57   :  { %v4130_v33 = vmul.f32 %v4126_v3, %v3974_v0 }
 0xe59   :  { %4178 = vmatmul.f32.gmra.mxu1 %v4130_v33 }
 0xebb   :  { %v4170_v59 = vpop.f32.mrf.mxu1 }
 0xebc   :  { %v4171_v13 = vadd.f32 %v4806_v25, %v4170_v59 }
 0xebe   :  { %v4182_v63 = vadd.f32 %v4171_v13, %v6900_v12 }
 0xec0   :  { %v4188_v32 = vsel %vm284_vm0, %v4182_v63, 0.0 }
 0xec1   :  { %4189 = vadd.xlane.f32.xlu0 %v4188_v32 }
 0xec6   :  { %v4173_v30 = vpop.f32.mrf.mxu1 }
 0xec7   :  { %v4174_v40 = vadd.f32 %v4806_v25, %v4173_v30 }
 0xec9   :  { %v4183_v47 = vadd.f32 %v4174_v40, %v6906_v50 }
 0xecb   :  { %v4191_v56 = vsel %vm284_vm0, %v4183_v47, 0.0 }
 0xecc   :  { %4192 = vadd.xlane.f32.xlu1 %v4191_v56 }
 0xece   :  { %v4176_v43 = vpop.f32.mrf.mxu1 }
 0xecf   :  { %v4177_v52 = vadd.f32 %v4806_v25, %v4176_v43 }
 0xed1   :  { %v4184_v26 = vadd.f32 %v4177_v52, %v6911_v16 }
 0xed3   :  { %v4194_v14 = vsel %vm284_vm0, %v4184_v26, 0.0 }
 0xed4   :  { %4195 = vadd.xlane.f32.xlu2 %v4194_v14 }
 0xed6   :  { %v4179_v5 = vpop.f32.mrf.mxu1 }
 0xed7   :  { %v4180_v23 = vadd.f32 %v4806_v25, %v4179_v5 }
 0xed9   :  { %v4185_v12 = vadd.f32 %v4180_v23, %v6916_v36 }
 0xedb   :  { %v4197_v24 = vsel %vm284_vm0, %v4185_v12, 0.0 }
 0xedc   :  { %4198 = vadd.xlane.f32.xlu0 %v4197_v24 }
 0xf34   :  { %v4190_v10 = vpop.xlane.xlu0 %4189 }
 0xf35   :  { %v4200_v50 = vmul.f32 %v4190_v10, %v5471_v55 }
 0xf37   :  { %v4204_v21 = vsub.f32 %v4182_v63, %v4200_v50 }
 0xf39   :  { %v4208_v29 = vmul.f32 %v4204_v21, %v4204_v21 }
 0xf3b   :  { %v4212_v6 = vsel %vm284_vm0, %v4208_v29, 0.0 }
 0xf3c   :  { %4213 = vadd.xlane.f32.xlu1 %v4212_v6 }
 0xf3f   :  { %v4193_v27 = vpop.xlane.xlu1 %4192 }
 0xf40   :  { %v4201_v16 = vmul.f32 %v4193_v27, %v5471_v55 }
 0xf42   :  { %v7043_v49 = vsub.f32 %v4183_v47, %v4201_v16 }
 0xf44   :  { %v4209_v41 = vmul.f32 %v7043_v49, %v7043_v49 }
 0xf46   :  { %v4215_v36 = vsel %vm284_vm0, %v4209_v41, 0.0 }
 0xf47   :  { %v4196_v44 = vpop.xlane.xlu2 %4195  ;;  %4216 = vadd.xlane.f32.xlu2 %v4215_v36 }
 0xf48   :  { %v4202_v57 = vmul.f32 %v4196_v44, %v5471_v55 }
 0xf4a   :  { %v7049_v11 = vsub.f32 %v4184_v26, %v4202_v57 }
 0xf4c   :  { %v4210_v35 = vmul.f32 %v7049_v11, %v7049_v11 }
 0xf4e   :  { %v4218_v20 = vsel %vm284_vm0, %v4210_v35, 0.0 }
 0xf4f   :  { %v4199_v9 = vpop.xlane.xlu0 %4198  ;;  %4219 = vadd.xlane.f32.xlu0 %v4218_v20 }
 0xf50   :  { %v4203_v15 = vmul.f32 %v4199_v9, %v5471_v55 }
 0xf52   :  { %v7055_v31 = vsub.f32 %v4185_v12, %v4203_v15 }
 0xf54   :  { %v4211_v34 = vmul.f32 %v7055_v31, %v7055_v31 }
 0xf56   :  { %v4221_v62 = vsel %vm284_vm0, %v4211_v34, 0.0 }
 0xf57   :  { %4222 = vadd.xlane.f32.xlu1 %v4221_v62 }
 0xfaf   :  { %v4214_v22 = vpop.xlane.xlu1 %4213 }
 0xfb0   :  { %v4224_v28 = vmul.f32 %v4214_v22, %v5471_v55  ;;  %v4810_v22 = vld [vmem:[#allocation2] ss:$0 sm:$0xff] }
 0xfb2   :  { %v4228_v19 = vadd.f32 1e-05, %v4224_v28 }
 0xfb4   :  { %5006 = vrsqrt.f32 %v4228_v19  ;;  %vm4238_vm3 = vweird.f32 %v4228_v19 }
 0xfba   :  { %v5007_v42 = vpop.eup %5006  ;;  %v4217_v7 = vpop.xlane.xlu2 %4216 }
 0xfbb   :  { %v4233_v39 = vmul.f32 %v5007_v42, %v4228_v19  ;;  %v4225_v17 = vmul.f32 %v4217_v7, %v5471_v55  ;;  %vm4239_vm2 = vweird.f32 %v5007_v42 }
 0xfbc   :  { %vm4240_vm4 = vmor %vm4238_vm3, %vm4239_vm2 }
 0xfbd   :  { %v4234_v4 = vmul.f32 %v5007_v42, %v4233_v39  ;;  %v4229_v37 = vadd.f32 1e-05, %v4225_v17 }
 0xfbf   :  { %v4235_v58 = vmul.f32 0.5, %v4234_v4  ;;  %5008 = vrsqrt.f32 %v4229_v37  ;;  %vm4248_vm6 = vweird.f32 %v4229_v37 }
 0xfc1   :  { %v4236_v45 = vsub.f32 1.5, %v4235_v58 }
 0xfc2   :  { %v4220_v48 = vpop.xlane.xlu0 %4219 }
 0xfc3   :  { %v4237_v53 = vmul.f32 %v5007_v42, %v4236_v45  ;;  %v4226_v18 = vmul.f32 %v4220_v48, %v5471_v55 }
 0xfc5   :  { %v4241_v2 = vsel %vm4240_vm4, %v5007_v42, %v4237_v53  ;;  %v5009_v8 = vpop.eup %5008  ;;  %v4230_v38 = vadd.f32 1e-05, %v4226_v18 }
 0xfc6   :  { %v4272_v46 = vmul.f32 %v4241_v2, %v4204_v21  ;;  %v4243_v1 = vmul.f32 %v5009_v8, %v4229_v37  ;;  %vm4249_vm5 = vweird.f32 %v5009_v8 }
 0xfc7   :  { %5010 = vrsqrt.f32 %v4230_v38  ;;  %vm4250_vm7 = vmor %vm4248_vm6, %vm4249_vm5  ;;  %vm4258_vm9 = vweird.f32 %v4230_v38 }
 0xfc8   :  { %v4279_v60 = vmul.f32 %v4807_v51, %v4272_v46  ;;  %v4244_v0 = vmul.f32 %v5009_v8, %v4243_v1 }
 0xfca   :  { %v7072_v3 = vadd.f32 %v4808_v54, %v4279_v60  ;;  %v4245_v33 = vmul.f32 0.5, %v4244_v0  ;;  %v4223_v25 = vpop.xlane.xlu1 %4222 }
 0xfcb   :  { %v4227_v13 = vmul.f32 %v4223_v25, %v5471_v55 }
 0xfcc   :  { %v4294_v59 = vmul.f32 %v4809_v61, %v7072_v3  ;;  %v4246_v63 = vsub.f32 1.5, %v4245_v33  ;;  %v5053_v33 = vmov 0  }
 0xfcd   :  { %v5011_v30 = vpop.eup %5010  ;;  %v4231_v40 = vadd.f32 1e-05, %v4227_v13  ;;  %4791 = vset.pattern.permute.xlu1 %v5053_v33  ;;  %4790 = vset.pattern.permute.xlu0 %v5053_v33 }
 0xfce   :  { %v4298_v32 = vsel %vm284_vm0, %v4294_v59, 0.0  ;;  %v4247_v47 = vmul.f32 %v5009_v8, %v4246_v63  ;;  %v4253_v56 = vmul.f32 %v5011_v30, %v4230_v38  ;;  %vm4259_vm8 = vweird.f32 %v5011_v30  ;;  %4792 = vset.pattern.permute.xlu2 %v5053_v33 }
 0xfcf   :  { %4299 = vadd.xlane.f32.xlu2 %v4298_v32  ;;  %5012 = vrsqrt.f32 %v4231_v40  ;;  %vm4260_vm12 = vmor %vm4258_vm9, %vm4259_vm8  ;;  %vm4268_vm14 = vweird.f32 %v4231_v40 }
 0xfd0   :  { %v4251_v43 = vsel %vm4250_vm7, %v5009_v8, %v4247_v47  ;;  %v4254_v52 = vmul.f32 %v5011_v30, %v4253_v56 }
 0xfd1   :  { %v4273_v26 = vmul.f32 %v4251_v43, %v7043_v49 }
 0xfd2   :  { %v4255_v14 = vmul.f32 0.5, %v4254_v52 }
 0xfd3   :  { %v4280_v5 = vmul.f32 %v4807_v51, %v4273_v26 }
 0xfd4   :  { %v4256_v23 = vsub.f32 1.5, %v4255_v14 }
 0xfd5   :  { %v5013_v55 = vpop.eup %5012  ;;  %v7078_v12 = vadd.f32 %v4808_v54, %v4280_v5 }
 0xfd6   :  { %v4257_v24 = vmul.f32 %v5011_v30, %v4256_v23  ;;  %v4263_v10 = vmul.f32 %v5013_v55, %v4231_v40  ;;  %vm4269_vm13 = vweird.f32 %v5013_v55 }
 0xfd7   :  { %v4295_v50 = vmul.f32 %v4809_v61, %v7078_v12  ;;  %vm4270_vm15 = vmor %vm4268_vm14, %vm4269_vm13 }
 0xfd8   :  { %v4261_v21 = vsel %vm4260_vm12, %v5011_v30, %v4257_v24  ;;  %v4264_v29 = vmul.f32 %v5013_v55, %v4263_v10 }
 0xfd9   :  { %v4301_v6 = vsel %vm284_vm0, %v4295_v50, 0.0  ;;  %v4274_v27 = vmul.f32 %v4261_v21, %v7049_v11 }
 0xfda   :  { %v4265_v16 = vmul.f32 0.5, %v4264_v29  ;;  %4302 = vadd.xlane.f32.xlu0 %v4301_v6 }
 0xfdb   :  { %v4281_v49 = vmul.f32 %v4807_v51, %v4274_v27 }
 0xfdc   :  { %v4266_v41 = vsub.f32 1.5, %v4265_v16 }
 0xfdd   :  { %v7083_v36 = vadd.f32 %v4808_v54, %v4281_v49 }
 0xfde   :  { %v4267_v44 = vmul.f32 %v5013_v55, %v4266_v41 }
 0xfdf   :  { %v4296_v57 = vmul.f32 %v4809_v61, %v7083_v36 }
 0xfe0   :  { %v4271_v35 = vsel %vm4270_vm15, %v5013_v55, %v4267_v44 }
 0xfe1   :  { %v4304_v20 = vsel %vm284_vm0, %v4296_v57, 0.0  ;;  %v4275_v9 = vmul.f32 %v4271_v35, %v7055_v31 }
 0xfe2   :  { %4305 = vadd.xlane.f32.xlu1 %v4304_v20 }
 0xfe3   :  { %v4282_v15 = vmul.f32 %v4807_v51, %v4275_v9 }
 0xfe5   :  { %v7088_v11 = vadd.f32 %v4808_v54, %v4282_v15 }
 0xfe7   :  { %v4297_v34 = vmul.f32 %v4809_v61, %v7088_v11 }
 0xfe9   :  { %v4307_v62 = vsel %vm284_vm0, %v4297_v34, 0.0 }
 0xfea   :  { %4308 = vadd.xlane.f32.xlu2 %v4307_v62 }
0x1042   :  { %v4300_v28 = vpop.xlane.xlu2 %4299 }
0x1043   :  { %v4314_v19 = vadd.f32 %v4810_v22, %v4300_v28 }
0x1045   :  { %v4319_v7 = vsel %vm4318_vm1, %v4314_v19, -inf }
0x104d   :  { %v4303_v42 = vpop.xlane.xlu0 %4302 }
0x104e   :  { %v4315_v39 = vadd.f32 %v4810_v22, %v4303_v42 }
0x1050   :  { %v4320_v4 = vsel %vm4318_vm1, %v4315_v39, -inf }
0x1051   :  { %v4321_v31 = vmax.f32 %v4319_v7, %v4320_v4  ;;  %v4417_v7 = vld [vmem:[%s7147_s20 + $0x10] sm:$0xff]  ;;  %v4416_v4 = vld [vmem:[%s7147_s20 + $0x8] sm:$0xff] }
0x1053   :  { %v4322_v17 = vrot.slane %v4321_v31, 4 }
0x1055   :  { %v4323_v58 = vmax.f32 %v4321_v31, %v4322_v17  ;;  %v4306_v53 = vpop.xlane.xlu1 %4305  ;;  %v4415_v31 = vld [vmem:[%s7147_s20] sm:$0xff] }
0x1056   :  { %v4316_v51 = vadd.f32 %v4810_v22, %v4306_v53 }
0x1057   :  { %v4324_v37 = vrot.slane %v4323_v58, 2 }
0x1058   :  { %v4328_v38 = vsel %vm4318_vm1, %v4316_v51, -inf }
0x1059   :  { %v4325_v45 = vmax.f32 %v4323_v58, %v4324_v37 }
0x105b   :  { %v4326_v48 = vrot.slane %v4325_v45, 1 }
0x105d   :  { %v4327_v2 = vmax.f32 %v4325_v45, %v4326_v48  ;;  %v4309_v18 = vpop.xlane.xlu2 %4308 }
0x105e   :  { %v4317_v46 = vadd.f32 %v4810_v22, %v4309_v18 }
0x105f   :  { %v4337_v54 = vsub.f32 %v4314_v19, %v4327_v2  ;;  %v4338_v8 = vsub.f32 %v4315_v39, %v4327_v2  ;;  %v4418_v39 = vld [vmem:[%s7147_s20 + $0x18] sm:$0xff] }
0x1060   :  { %v4329_v1 = vsel %vm4318_vm1, %v4317_v46, -inf  ;;  %4441 = vmatpush.msrb.mxu2 %v4418_v39 }
0x1061   :  { %v4341_v60 = vmul.f32 1.442695, %v4337_v54  ;;  %v4343_v61 = vmul.f32 1.442695, %v4338_v8  ;;  %v4330_v0 = vmax.f32 %v4328_v38, %v4329_v1 }
0x1062   :  { %4442 = vmatpush.msrb.mxu2 %v4417_v7 }
0x1063   :  { %5014 = vpow2.f32 %v4341_v60  ;;  %v4331_v25 = vrot.slane %v4330_v0, 4 }
0x1064   :  { %5016 = vpow2.f32 %v4343_v61  ;;  %4443 = vmatpush.msrb.mxu2 %v4416_v4 }
0x1065   :  { %v4332_v59 = vmax.f32 %v4330_v0, %v4331_v25 }
0x1066   :  { %4444 = vmatpush.msrb.mxu2 %v4415_v31 }
0x1067   :  { %v4333_v13 = vrot.slane %v4332_v59, 2 }
0x1069   :  { %v5015_v63 = vpop.eup %5014  ;;  %v4334_v32 = vmax.f32 %v4332_v59, %v4333_v13 }
0x106a   :  { %v5017_v30 = vpop.eup %5016  ;;  %v4349_v40 = vsel %vm4318_vm1, %v5015_v63, 0.0 }
0x106b   :  { %v4350_v47 = vsel %vm4318_vm1, %v5017_v30, 0.0  ;;  %v4335_v56 = vrot.slane %v4334_v32, 1 }
0x106c   :  { %v4351_v43 = vadd.f32 %v4350_v47, %v4349_v40 }
0x106d   :  { %v4336_v52 = vmax.f32 %v4334_v32, %v4335_v56 }
0x106e   :  { %v4352_v26 = vrot.slane %v4351_v43, 4 }
0x106f   :  { %v4339_v14 = vsub.f32 %v4316_v51, %v4336_v52  ;;  %v4340_v5 = vsub.f32 %v4317_v46, %v4336_v52 }
0x1070   :  { %v4353_v23 = vadd.f32 %v4352_v26, %v4351_v43 }
0x1071   :  { %v4345_v55 = vmul.f32 1.442695, %v4339_v14  ;;  %v4347_v24 = vmul.f32 1.442695, %v4340_v5 }
0x1072   :  { %v4354_v10 = vrot.slane %v4353_v23, 2 }
0x1073   :  { %5018 = vpow2.f32 %v4345_v55 }
0x1074   :  { %5020 = vpow2.f32 %v4347_v24  ;;  %v4355_v50 = vadd.f32 %v4354_v10, %v4353_v23 }
0x1076   :  { %v4356_v21 = vrot.slane %v4355_v50, 1 }
0x1078   :  { %v4357_v29 = vadd.f32 %v4356_v21, %v4355_v50 }
0x1079   :  { %v5019_v6 = vpop.eup %5018 }
0x107a   :  { %v5021_v27 = vpop.eup %5020  ;;  %v4358_v16 = vsel %vm4318_vm1, %v5019_v6, 0.0  ;;  %5022 = vrcp.f32 %v4357_v29 }
0x107b   :  { %v4359_v49 = vsel %vm4318_vm1, %v5021_v27, 0.0 }
0x107c   :  { %v4360_v41 = vadd.f32 %v4359_v49, %v4358_v16 }
0x107e   :  { %v4361_v44 = vrot.slane %v4360_v41, 4 }
0x1080   :  { %v5023_v57 = vpop.eup %5022  ;;  %v4362_v35 = vadd.f32 %v4361_v44, %v4360_v41 }
0x1081   :  { %v4370_v20 = vmul.f32 %v5023_v57, %v5017_v30  ;;  %v4369_v9 = vmul.f32 %v5023_v57, %v5015_v63  ;;  %v4811_v30 = vld [vmem:[%s7148_s21] ss:$0 sm:$0xff] }
0x1082   :  { %v4363_v15 = vrot.slane %v4362_v35, 2 }
0x1083   :  { %4380 = vperm.xlu1 %4791, %v4370_v20   ;;  %4375 = vperm.xlu0 %4790, %v4369_v9  }
0x1084   :  { %v4364_v34 = vadd.f32 %v4363_v15, %v4362_v35 }
0x1086   :  { %v4365_v62 = vrot.slane %v4364_v34, 1 }
0x1088   :  { %v4366_v22 = vadd.f32 %v4365_v62, %v4364_v34 }
0x108a   :  { %5024 = vrcp.f32 %v4366_v22 }
0x1090   :  { %v5025_v28 = vpop.eup %5024 }
0x1091   :  { %v4371_v19 = vmul.f32 %v5025_v28, %v5019_v6  ;;  %v4372_v42 = vmul.f32 %v5025_v28, %v5021_v27 }
0x1093   :  { %4385 = vperm.xlu2 %4792, %v4371_v19  }
0x109b   :  { %4390 = vperm.xlu2 %4792, %v4372_v42  }
0x10ed   :  { %v4386_v17 = vpop.permute.xlu2 %4385 }
0x10ee   :  { %v4395_v58 = vmul.f32 %v4386_v17, %v7083_v36 }
0x10f0   :  { %v4406_v18 = vsel %vm284_vm0, %v4395_v58, 0.0 }
0x10f5   :  { %v4376_v37 = vpop.permute.xlu0 %4375  ;;  %v4391_v45 = vpop.permute.xlu2 %4390 }
0x10f6   :  { %v4393_v53 = vmul.f32 %v4376_v37, %v7072_v3  ;;  %v4396_v48 = vmul.f32 %v4391_v45, %v7088_v11  ;;  %v4381_v51 = vpop.permute.xlu1 %4380 }
0x10f7   :  { %v4394_v2 = vmul.f32 %v4381_v51, %v7078_v12 }
0x10f8   :  { %v4397_v46 = vsel %vm284_vm0, %v4393_v53, 0.0  ;;  %v4407_v54 = vsel %vm284_vm0, %v4396_v48, 0.0 }
0x10f9   :  { %v4408_v8 = vadd.f32 %v4407_v54, %v4406_v18  ;;  %v4398_v38 = vsel %vm284_vm0, %v4394_v2, 0.0 }
0x10fa   :  { %v4399_v1 = vadd.f32 %v4398_v38, %v4397_v46 }
0x10fb   :  { %v4409_v36 = vrot.slane %v4408_v8, 4 }
0x10fc   :  { %v4400_v60 = vrot.slane %v4399_v1, 4 }
0x10fd   :  { %v4410_v61 = vadd.f32 %v4409_v36, %v4408_v8 }
0x10fe   :  { %v4401_v0 = vadd.f32 %v4400_v60, %v4399_v1 }
0x10ff   :  { %v4411_v3 = vrot.slane %v4410_v61, 2 }
0x1100   :  { %v4402_v33 = vrot.slane %v4401_v0, 2 }
0x1101   :  { %v4412_v11 = vadd.f32 %v4411_v3, %v4410_v61 }
0x1102   :  { %v4403_v25 = vadd.f32 %v4402_v33, %v4401_v0 }
0x1103   :  { %v4413_v59 = vrot.slane %v4412_v11, 1 }
0x1104   :  { %v4404_v12 = vrot.slane %v4403_v25, 1 }
0x1105   :  { %v4414_v13 = vadd.f32 %v4413_v59, %v4412_v11 }
0x1106   :  { %v4405_v63 = vadd.f32 %v4404_v12, %v4403_v25 }
0x1108   :  { %v4426_v32 = vsel %vm4425_vm10, %v4414_v13, %v4405_v63 }
0x1109   :  { %4778 = vmatmul.msk.f32.vlgmr.msrb.gmra.mxu2 %vm284_vm0, %v4426_v32 }
0x118c   :  { %v4446_v40 = vpop.f32.mrf.mxu2 }
0x118d   :  { %v4447_v47 = vadd.f32 %v4811_v30, %v4446_v40 }
0x118f   :  { %4450 = vst.msk [vmem:[#allocation3] sm:$0x3] %vm4449_vm11, %v4447_v47 }
0x1190   :  { %4461 = dma.vmem_to_hbm [thread:$0]  %s4457_s11, 32, %s4459_s5, [#allocation4]  }
0x1191   :  { %5050 = dma.done.wait [#allocation4], 32  }
0x1192   :  { %5051 = vsyncadd [#allocation4], 4294967264 }
0x1193   :  { %4466 = vsyncpa [#allocation4], 1 }

</bundles_post_ra>
